<compile_context>
chip_gen: v7x
topology: tpu7x:2x2x1
jax: 0.10.0
libtpu: 0.0.40
codegen_flags: <defaults>
</compile_context>

<pallas_src>
import functools

import numpy as np
import jax
import jax.numpy as jnp
from jax import lax
from jax.experimental import pallas as pl
from jax.experimental.pallas import tpu as pltpu

DECAY = 0.25
BN_EPS = 1e-5


def _quant4(m):
    # MultiSpike4 forward: round(clamp(m*100, 0, 511)) / 100
    # TODO(synk): custom straight-through backward of quant4 is not implemented
    # (forward pass only).
    return jnp.round(jnp.clip(m * 100.0, 0.0, 511.0)) / 100.0


# ----------------------------------------------------------------------------
# Fused Pallas kernel
# ----------------------------------------------------------------------------
def basic_block_kernel(x_ref, w1_ref, s1_ref, b1_ref, w2_ref, s2_ref, b2_ref,
                       o_ref, mem1_ref, spk1_ref, mem2_ref, spk2_ref):
    """One (n-block, t) grid step of the fused BasicBlock forward.

    x_ref : (C, Bn, H, W)   channel-major input sample(s) at time t
    w*_ref: (C, 9*C)        conv taps, column k = (dy*3 + dx)*C + ci
    s*_ref, b*_ref: (C, 1)  folded BatchNorm scale / bias
    o_ref : (C, Bn*H*W)     spike output at time t (lane-dense store)
    mem*/spk*_ref: (C, Bn*H*W) LIF state carried across the T grid axis
    """
    t = pl.program_id(1)
    C, Bn, H, W = x_ref.shape
    M = Bn * H * W

    def im2col(inp):                               # inp: (C, Bn, H, W) f32
        # zero 'same' padding built in VMEM (no HBM pad copy)
        zw = jnp.zeros((C, Bn, H, 1), jnp.float32)
        zh = jnp.zeros((C, Bn, 1, W + 2), jnp.float32)
        padded = jnp.concatenate([zw, inp, zw], axis=3)
        padded = jnp.concatenate([zh, padded, zh], axis=2)   # (C, Bn, H+2, W+2)
        slabs = [padded[:, :, dy:dy + H, dx:dx + W].reshape(C, M)
                 for dy in range(3) for dx in range(3)]
        return jnp.concatenate(slabs, axis=0)                # (9*C, M)

    x4 = x_ref[...].astype(jnp.float32)
    xid = x4.reshape(C, M)                                   # identity branch

    # ---- conv1 + BN: single K=9C matmul, lanes = Bn*H*W ----
    y1 = jnp.dot(w1_ref[...], im2col(x4), preferred_element_type=jnp.float32)
    y1 = y1 * s1_ref[...] + b1_ref[...]

    # ---- sn1: LIF membrane update over the T grid axis (state in scratch) ----
    @pl.when(t == 0)
    def _():
        mem1_ref[...] = y1

    @pl.when(t > 0)
    def _():
        mem1_ref[...] = (mem1_ref[...] - spk1_ref[...]) * DECAY + y1

    spk1 = _quant4(mem1_ref[...])
    spk1_ref[...] = spk1

    # ---- conv2 + BN + identity ----
    y2 = jnp.dot(w2_ref[...], im2col(spk1.reshape(C, Bn, H, W)),
                 preferred_element_type=jnp.float32)
    y2 = y2 * s2_ref[...] + b2_ref[...] + xid

    # ---- sn2 ----
    @pl.when(t == 0)
    def _():
        mem2_ref[...] = y2

    @pl.when(t > 0)
    def _():
        mem2_ref[...] = (mem2_ref[...] - spk2_ref[...]) * DECAY + y2

    spk2 = _quant4(mem2_ref[...])
    spk2_ref[...] = spk2
    o_ref[...] = spk2.astype(o_ref.dtype)


# ----------------------------------------------------------------------------
# Wrapper
# ----------------------------------------------------------------------------
def fold_bn(gamma, beta, mean, var, eps=BN_EPS):
    scale = gamma / jnp.sqrt(var + eps)
    bias = beta - mean * scale
    return scale, bias


def _weight_to_taps(w_oihw):
    # (Cout, Cin, 3, 3) -> (Cout, 9*Cin), column k = (dy*3 + dx)*Cin + ci
    co, ci = w_oihw.shape[0], w_oihw.shape[1]
    return jnp.transpose(w_oihw, (0, 2, 3, 1)).reshape(co, 9 * ci)


@functools.partial(jax.jit, static_argnums=(2,))
def _basic_block_impl(x, params, n_block):
    T, N, C, H, W = x.shape
    HW = H * W
    Bn = n_block
    NB = N // Bn

    s1, b1 = fold_bn(params["gamma1"], params["beta1"],
                     params["mean1"], params["var1"])
    s2, b2 = fold_bn(params["gamma2"], params["beta2"],
                     params["mean2"], params["var2"])
    w1 = _weight_to_taps(params["w1"]).astype(jnp.float32)
    w2 = _weight_to_taps(params["w2"]).astype(jnp.float32)
    s1 = s1.reshape(C, 1).astype(jnp.float32)
    b1 = b1.reshape(C, 1).astype(jnp.float32)
    s2 = s2.reshape(C, 1).astype(jnp.float32)
    b2 = b2.reshape(C, 1).astype(jnp.float32)

    # Channel-major internally so the conv result / spikes are (C, Bn*H*W)
    # with lanes carrying Bn*H*W.
    x_cm = jnp.transpose(x, (0, 2, 1, 3, 4))          # (T, C, N, H, W)

    out_cm = pl.pallas_call(
        basic_block_kernel,
        out_shape=jax.ShapeDtypeStruct((T, C, N * HW), x.dtype),
        grid=(NB, T),
        in_specs=[
            pl.BlockSpec((None, C, Bn, H, W), lambda nb, t: (t, 0, nb, 0, 0)),
            pl.BlockSpec((C, 9 * C), lambda nb, t: (0, 0)),
            pl.BlockSpec((C, 1), lambda nb, t: (0, 0)),
            pl.BlockSpec((C, 1), lambda nb, t: (0, 0)),
            pl.BlockSpec((C, 9 * C), lambda nb, t: (0, 0)),
            pl.BlockSpec((C, 1), lambda nb, t: (0, 0)),
            pl.BlockSpec((C, 1), lambda nb, t: (0, 0)),
        ],
        out_specs=pl.BlockSpec((None, C, Bn * HW), lambda nb, t: (t, 0, nb)),
        scratch_shapes=[pltpu.VMEM((C, Bn * HW), jnp.float32)
                        for _ in range(4)],           # mem1, spk1, mem2, spk2
        compiler_params=pltpu.CompilerParams(
            dimension_semantics=("parallel", "arbitrary")),
    )(x_cm, w1, s1, b1, w2, s2, b2)

    out = out_cm.reshape(T, C, N, H, W)
    return jnp.transpose(out, (0, 2, 1, 3, 4))        # back to (T, N, C, H, W)


def basic_block_forward(x, params, n_block=None):
    """x: (T, N, C, H, W) float32. BasicBlock with stride=1, downsample=None."""
    T, N, C, H, W = x.shape
    if n_block is None:
        # Prefer two N-blocks (shards the independent per-sample recurrences
        # across the 2 TensorCores on v7x) when lane width stays a multiple
        # of 128; otherwise keep the whole N in one block.
        if N % 2 == 0 and ((N // 2) * H * W) % 128 == 0:
            n_block = N // 2
        else:
            n_block = N
    assert N % n_block == 0
    return _basic_block_impl(x, params, int(n_block))


# ----------------------------------------------------------------------------
# Pure-JAX reference (matches PyTorch semantics, eval-mode BN)
# ----------------------------------------------------------------------------
def basic_block_reference(x, params):
    T, N, C, H, W = x.shape

    def conv_bn(z, w, gamma, beta, mean, var):
        z2 = z.reshape(T * N, C, H, W)
        y = lax.conv_general_dilated(
            z2, w, window_strides=(1, 1), padding="SAME",
            dimension_numbers=("NCHW", "OIHW", "NCHW"))
        scale, bias = fold_bn(gamma, beta, mean, var)
        y = y * scale[None, :, None, None] + bias[None, :, None, None]
        return y.reshape(T, N, C, H, W)

    def memup(z):
        outs = []
        mem = z[0]
        spike = _quant4(mem)
        outs.append(spike)
        mem_old = mem
        for i in range(1, z.shape[0]):
            mem = (mem_old - spike) * DECAY + z[i]
            spike = _quant4(mem)
            mem_old = mem
            outs.append(spike)
        return jnp.stack(outs)

    out = conv_bn(x, params["w1"], params["gamma1"], params["beta1"],
                  params["mean1"], params["var1"])
    out = memup(out)
    out = conv_bn(out, params["w2"], params["gamma2"], params["beta2"],
                  params["mean2"], params["var2"])
    out = out + x
    out = memup(out)
    return out


# ----------------------------------------------------------------------------
# Main
# ----------------------------------------------------------------------------
if __name__ == "__main__":
    T, N, C, H, W = 4, 2, 4, 16, 16        # inplanes = planes = 4, stride = 1
    key = jax.random.PRNGKey(0)
    ks = jax.random.split(key, 12)

    x = jax.random.normal(ks[0], (T, N, C, H, W), jnp.float32)

    params = {
        "w1": 0.3 * jax.random.normal(ks[1], (C, C, 3, 3), jnp.float32),
        "w2": 0.3 * jax.random.normal(ks[2], (C, C, 3, 3), jnp.float32),
        "gamma1": 1.0 + 0.1 * jax.random.normal(ks[3], (C,), jnp.float32),
        "beta1": 0.1 * jax.random.normal(ks[4], (C,), jnp.float32),
        "mean1": 0.1 * jax.random.normal(ks[5], (C,), jnp.float32),
        "var1": 1.0 + 0.1 * jax.random.uniform(ks[6], (C,), jnp.float32),
        "gamma2": 1.0 + 0.1 * jax.random.normal(ks[7], (C,), jnp.float32),
        "beta2": 0.1 * jax.random.normal(ks[8], (C,), jnp.float32),
        "mean2": 0.1 * jax.random.normal(ks[9], (C,), jnp.float32),
        "var2": 1.0 + 0.1 * jax.random.uniform(ks[10], (C,), jnp.float32),
    }

    out = jax.block_until_ready(basic_block_forward(x, params))
    ref = jax.block_until_ready(basic_block_reference(x, params))

    # Both outputs live on the 0.01 quantizer grid; allow a few rounding-
    # boundary flips propagated through conv2 (summation-order differences).
    np.testing.assert_allclose(np.asarray(out), np.asarray(ref), atol=3.5e-2)
    assert out.shape == (T, N, C, H, W) and out.dtype == jnp.float32

    print("KERNEL_OK")
</pallas_src>

<mosaic_0001>
module attributes {stable_mosaic.version = 11 : i64} {
  func.func @basic_block_kernel(%arg0: i32, %arg1: i32, %arg2: memref<1x4x1x16x16xf32, #tpu.memory_space<vmem>>, %arg3: memref<4x36xf32, #tpu.memory_space<vmem>>, %arg4: memref<4x1xf32, #tpu.memory_space<vmem>>, %arg5: memref<4x1xf32, #tpu.memory_space<vmem>>, %arg6: memref<4x36xf32, #tpu.memory_space<vmem>>, %arg7: memref<4x1xf32, #tpu.memory_space<vmem>>, %arg8: memref<4x1xf32, #tpu.memory_space<vmem>>, %arg9: memref<1x4x256xf32, #tpu.memory_space<vmem>>, %arg10: memref<4x256xf32, #tpu.memory_space<vmem>>, %arg11: memref<4x256xf32, #tpu.memory_space<vmem>>, %arg12: memref<4x256xf32, #tpu.memory_space<vmem>>, %arg13: memref<4x256xf32, #tpu.memory_space<vmem>>) attributes {dimension_semantics = [#tpu.dimension_semantics<parallel>, #tpu.dimension_semantics<arbitrary>], iteration_bounds = array<i64: 2, 4>, scalar_prefetch = 0 : i64, scratch_operands = 4 : i64, tpu.core_type = #tpu.core_type<tc>, window_params = [{transform_indices = @transform_0, window_bounds = array<i64: 1, 4, 1, 16, 16>}, {pipeline_mode = #tpu.pipeline_mode<synchronous>, transform_indices = @transform_1, window_bounds = array<i64: 4, 36>}, {pipeline_mode = #tpu.pipeline_mode<synchronous>, transform_indices = @transform_2, window_bounds = array<i64: 4, 1>}, {pipeline_mode = #tpu.pipeline_mode<synchronous>, transform_indices = @transform_3, window_bounds = array<i64: 4, 1>}, {pipeline_mode = #tpu.pipeline_mode<synchronous>, transform_indices = @transform_4, window_bounds = array<i64: 4, 36>}, {pipeline_mode = #tpu.pipeline_mode<synchronous>, transform_indices = @transform_5, window_bounds = array<i64: 4, 1>}, {pipeline_mode = #tpu.pipeline_mode<synchronous>, transform_indices = @transform_6, window_bounds = array<i64: 4, 1>}, {transform_indices = @transform_7, window_bounds = array<i64: 1, 4, 256>}]} {
    %c0 = arith.constant 0 : index
    %c0_0 = arith.constant 0 : index
    %c0_1 = arith.constant 0 : index
    %c0_2 = arith.constant 0 : index
    %c0_3 = arith.constant 0 : index
    %0 = vector.load %arg2[%c0, %c0_0, %c0_1, %c0_2, %c0_3] : memref<1x4x1x16x16xf32, #tpu.memory_space<vmem>>, vector<1x4x1x16x16xf32>
    %1 = vector.shape_cast %0 : vector<1x4x1x16x16xf32> to vector<4x1x16x16xf32>
    %2 = vector.shape_cast %1 : vector<4x1x16x16xf32> to vector<4x256xf32>
    %c0_4 = arith.constant 0 : index
    %c0_5 = arith.constant 0 : index
    %3 = vector.load %arg3[%c0_4, %c0_5] : memref<4x36xf32, #tpu.memory_space<vmem>>, vector<4x36xf32>
    %cst = arith.constant 0.000000e+00 : f32
    %4 = vector.broadcast %cst : f32 to vector<4x1x16x1xf32>
    %cst_6 = arith.constant 0.000000e+00 : f32
    %5 = vector.broadcast %cst_6 : f32 to vector<4x1x1x18xf32>
    %6 = tpu.concatenate %4, %1, %4 in 3 : vector<4x1x16x1xf32>, vector<4x1x16x16xf32>, vector<4x1x16x1xf32> -> vector<4x1x16x18xf32>
    %7 = tpu.concatenate %5, %6, %5 in 2 : vector<4x1x1x18xf32>, vector<4x1x16x18xf32>, vector<4x1x1x18xf32> -> vector<4x1x18x18xf32>
    %8 = vector.extract_strided_slice %7 {offsets = [0, 0, 0, 0], sizes = [4, 1, 16, 16], strides = [1, 1, 1, 1]} : vector<4x1x18x18xf32> to vector<4x1x16x16xf32>
    %9 = vector.shape_cast %8 : vector<4x1x16x16xf32> to vector<4x256xf32>
    %10 = vector.extract_strided_slice %7 {offsets = [0, 0, 0, 1], sizes = [4, 1, 16, 16], strides = [1, 1, 1, 1]} : vector<4x1x18x18xf32> to vector<4x1x16x16xf32>
    %11 = vector.shape_cast %10 : vector<4x1x16x16xf32> to vector<4x256xf32>
    %12 = vector.extract_strided_slice %7 {offsets = [0, 0, 0, 2], sizes = [4, 1, 16, 16], strides = [1, 1, 1, 1]} : vector<4x1x18x18xf32> to vector<4x1x16x16xf32>
    %13 = vector.shape_cast %12 : vector<4x1x16x16xf32> to vector<4x256xf32>
    %14 = vector.extract_strided_slice %7 {offsets = [0, 0, 1, 0], sizes = [4, 1, 16, 16], strides = [1, 1, 1, 1]} : vector<4x1x18x18xf32> to vector<4x1x16x16xf32>
    %15 = vector.shape_cast %14 : vector<4x1x16x16xf32> to vector<4x256xf32>
    %16 = vector.extract_strided_slice %7 {offsets = [0, 0, 1, 1], sizes = [4, 1, 16, 16], strides = [1, 1, 1, 1]} : vector<4x1x18x18xf32> to vector<4x1x16x16xf32>
    %17 = vector.shape_cast %16 : vector<4x1x16x16xf32> to vector<4x256xf32>
    %18 = vector.extract_strided_slice %7 {offsets = [0, 0, 1, 2], sizes = [4, 1, 16, 16], strides = [1, 1, 1, 1]} : vector<4x1x18x18xf32> to vector<4x1x16x16xf32>
    %19 = vector.shape_cast %18 : vector<4x1x16x16xf32> to vector<4x256xf32>
    %20 = vector.extract_strided_slice %7 {offsets = [0, 0, 2, 0], sizes = [4, 1, 16, 16], strides = [1, 1, 1, 1]} : vector<4x1x18x18xf32> to vector<4x1x16x16xf32>
    %21 = vector.shape_cast %20 : vector<4x1x16x16xf32> to vector<4x256xf32>
    %22 = vector.extract_strided_slice %7 {offsets = [0, 0, 2, 1], sizes = [4, 1, 16, 16], strides = [1, 1, 1, 1]} : vector<4x1x18x18xf32> to vector<4x1x16x16xf32>
    %23 = vector.shape_cast %22 : vector<4x1x16x16xf32> to vector<4x256xf32>
    %24 = vector.extract_strided_slice %7 {offsets = [0, 0, 2, 2], sizes = [4, 1, 16, 16], strides = [1, 1, 1, 1]} : vector<4x1x18x18xf32> to vector<4x1x16x16xf32>
    %25 = vector.shape_cast %24 : vector<4x1x16x16xf32> to vector<4x256xf32>
    %26 = tpu.concatenate %9, %11, %13, %15, %17, %19, %21, %23, %25 in 0 : vector<4x256xf32>, vector<4x256xf32>, vector<4x256xf32>, vector<4x256xf32>, vector<4x256xf32>, vector<4x256xf32>, vector<4x256xf32>, vector<4x256xf32>, vector<4x256xf32> -> vector<36x256xf32>
    %cst_7 = arith.constant dense<0.000000e+00> : vector<4x256xf32>
    %27 = tpu.matmul %3, %26, %cst_7 {dimension_numbers = #tpu.dot_dimension_numbers<[1], [0], [0], [1], [0, 0, 1, 1], [], []>} : vector<4x36xf32>, vector<36x256xf32>, vector<4x256xf32> -> vector<4x256xf32>
    %c0_8 = arith.constant 0 : index
    %c0_9 = arith.constant 0 : index
    %28 = vector.load %arg4[%c0_8, %c0_9] : memref<4x1xf32, #tpu.memory_space<vmem>>, vector<4x1xf32>
    %29 = vector.broadcast %28 : vector<4x1xf32> to vector<4x256xf32>
    %30 = arith.mulf %27, %29 : vector<4x256xf32>
    %c0_10 = arith.constant 0 : index
    %c0_11 = arith.constant 0 : index
    %31 = vector.load %arg5[%c0_10, %c0_11] : memref<4x1xf32, #tpu.memory_space<vmem>>, vector<4x1xf32>
    %32 = vector.broadcast %31 : vector<4x1xf32> to vector<4x256xf32>
    %33 = arith.addf %30, %32 : vector<4x256xf32>
    %c0_i32 = arith.constant 0 : i32
    %34 = arith.cmpi eq, %arg1, %c0_i32 : i32
    %35 = arith.extui %34 : i1 to i32
    %c0_i32_12 = arith.constant 0 : i32
    %36 = arith.cmpi ne, %35, %c0_i32_12 : i32
    scf.if %36 {
      %c0_47 = arith.constant 0 : index
      %c0_48 = arith.constant 0 : index
      %104 = vector.load %arg10[%c0_47, %c0_48] : memref<4x256xf32, #tpu.memory_space<vmem>>, vector<4x256xf32>
      tpu.vector_store %arg10[%c0_47, %c0_48], %33 {strides = array<i32>} : memref<4x256xf32, #tpu.memory_space<vmem>>, vector<4x256xf32>,
    } else {
    }
    %c0_i32_13 = arith.constant 0 : i32
    %37 = arith.cmpi sgt, %arg1, %c0_i32_13 : i32
    %38 = arith.extui %37 : i1 to i32
    %c0_i32_14 = arith.constant 0 : i32
    %39 = arith.cmpi ne, %38, %c0_i32_14 : i32
    scf.if %39 {
      %c0_47 = arith.constant 0 : index
      %c0_48 = arith.constant 0 : index
      %104 = vector.load %arg10[%c0_47, %c0_48] : memref<4x256xf32, #tpu.memory_space<vmem>>, vector<4x256xf32>
      %c0_49 = arith.constant 0 : index
      %c0_50 = arith.constant 0 : index
      %105 = vector.load %arg11[%c0_49, %c0_50] : memref<4x256xf32, #tpu.memory_space<vmem>>, vector<4x256xf32>
      %106 = arith.subf %104, %105 : vector<4x256xf32>
      %cst_51 = arith.constant 2.500000e-01 : f32
      %107 = vector.broadcast %cst_51 : f32 to vector<4x256xf32>
      %108 = arith.mulf %106, %107 : vector<4x256xf32>
      %109 = arith.addf %108, %33 : vector<4x256xf32>
      %c0_52 = arith.constant 0 : index
      %c0_53 = arith.constant 0 : index
      %110 = vector.load %arg10[%c0_52, %c0_53] : memref<4x256xf32, #tpu.memory_space<vmem>>, vector<4x256xf32>
      tpu.vector_store %arg10[%c0_52, %c0_53], %109 {strides = array<i32>} : memref<4x256xf32, #tpu.memory_space<vmem>>, vector<4x256xf32>,
    } else {
    }
    %c0_15 = arith.constant 0 : index
    %c0_16 = arith.constant 0 : index
    %40 = vector.load %arg10[%c0_15, %c0_16] : memref<4x256xf32, #tpu.memory_space<vmem>>, vector<4x256xf32>
    %cst_17 = arith.constant 1.000000e+02 : f32
    %41 = vector.broadcast %cst_17 : f32 to vector<4x256xf32>
    %42 = arith.mulf %40, %41 : vector<4x256xf32>
    %cst_18 = arith.constant 0.000000e+00 : f32
    %cst_19 = arith.constant 5.110000e+02 : f32
    %43 = vector.broadcast %cst_18 : f32 to vector<4x256xf32>
    %44 = arith.maximumf %43, %42 : vector<4x256xf32>
    %45 = vector.broadcast %cst_19 : f32 to vector<4x256xf32>
    %46 = arith.minimumf %45, %44 : vector<4x256xf32>
    %47 = math.roundeven %46 : vector<4x256xf32>
    %cst_20 = arith.constant 1.000000e+02 : f32
    %48 = vector.broadcast %cst_20 : f32 to vector<4x256xf32>
    %49 = arith.divf %47, %48 : vector<4x256xf32>
    %c0_21 = arith.constant 0 : index
    %c0_22 = arith.constant 0 : index
    %50 = vector.load %arg11[%c0_21, %c0_22] : memref<4x256xf32, #tpu.memory_space<vmem>>, vector<4x256xf32>
    tpu.vector_store %arg11[%c0_21, %c0_22], %49 {strides = array<i32>} : memref<4x256xf32, #tpu.memory_space<vmem>>, vector<4x256xf32>,
    %c0_23 = arith.constant 0 : index
    %c0_24 = arith.constant 0 : index
    %51 = vector.load %arg6[%c0_23, %c0_24] : memref<4x36xf32, #tpu.memory_space<vmem>>, vector<4x36xf32>
    %52 = vector.shape_cast %49 : vector<4x256xf32> to vector<4x1x16x16xf32>
    %cst_25 = arith.constant 0.000000e+00 : f32
    %53 = vector.broadcast %cst_25 : f32 to vector<4x1x16x1xf32>
    %cst_26 = arith.constant 0.000000e+00 : f32
    %54 = vector.broadcast %cst_26 : f32 to vector<4x1x1x18xf32>
    %55 = tpu.concatenate %53, %52, %53 in 3 : vector<4x1x16x1xf32>, vector<4x1x16x16xf32>, vector<4x1x16x1xf32> -> vector<4x1x16x18xf32>
    %56 = tpu.concatenate %54, %55, %54 in 2 : vector<4x1x1x18xf32>, vector<4x1x16x18xf32>, vector<4x1x1x18xf32> -> vector<4x1x18x18xf32>
    %57 = vector.extract_strided_slice %56 {offsets = [0, 0, 0, 0], sizes = [4, 1, 16, 16], strides = [1, 1, 1, 1]} : vector<4x1x18x18xf32> to vector<4x1x16x16xf32>
    %58 = vector.shape_cast %57 : vector<4x1x16x16xf32> to vector<4x256xf32>
    %59 = vector.extract_strided_slice %56 {offsets = [0, 0, 0, 1], sizes = [4, 1, 16, 16], strides = [1, 1, 1, 1]} : vector<4x1x18x18xf32> to vector<4x1x16x16xf32>
    %60 = vector.shape_cast %59 : vector<4x1x16x16xf32> to vector<4x256xf32>
    %61 = vector.extract_strided_slice %56 {offsets = [0, 0, 0, 2], sizes = [4, 1, 16, 16], strides = [1, 1, 1, 1]} : vector<4x1x18x18xf32> to vector<4x1x16x16xf32>
    %62 = vector.shape_cast %61 : vector<4x1x16x16xf32> to vector<4x256xf32>
    %63 = vector.extract_strided_slice %56 {offsets = [0, 0, 1, 0], sizes = [4, 1, 16, 16], strides = [1, 1, 1, 1]} : vector<4x1x18x18xf32> to vector<4x1x16x16xf32>
    %64 = vector.shape_cast %63 : vector<4x1x16x16xf32> to vector<4x256xf32>
    %65 = vector.extract_strided_slice %56 {offsets = [0, 0, 1, 1], sizes = [4, 1, 16, 16], strides = [1, 1, 1, 1]} : vector<4x1x18x18xf32> to vector<4x1x16x16xf32>
    %66 = vector.shape_cast %65 : vector<4x1x16x16xf32> to vector<4x256xf32>
    %67 = vector.extract_strided_slice %56 {offsets = [0, 0, 1, 2], sizes = [4, 1, 16, 16], strides = [1, 1, 1, 1]} : vector<4x1x18x18xf32> to vector<4x1x16x16xf32>
    %68 = vector.shape_cast %67 : vector<4x1x16x16xf32> to vector<4x256xf32>
    %69 = vector.extract_strided_slice %56 {offsets = [0, 0, 2, 0], sizes = [4, 1, 16, 16], strides = [1, 1, 1, 1]} : vector<4x1x18x18xf32> to vector<4x1x16x16xf32>
    %70 = vector.shape_cast %69 : vector<4x1x16x16xf32> to vector<4x256xf32>
    %71 = vector.extract_strided_slice %56 {offsets = [0, 0, 2, 1], sizes = [4, 1, 16, 16], strides = [1, 1, 1, 1]} : vector<4x1x18x18xf32> to vector<4x1x16x16xf32>
    %72 = vector.shape_cast %71 : vector<4x1x16x16xf32> to vector<4x256xf32>
    %73 = vector.extract_strided_slice %56 {offsets = [0, 0, 2, 2], sizes = [4, 1, 16, 16], strides = [1, 1, 1, 1]} : vector<4x1x18x18xf32> to vector<4x1x16x16xf32>
    %74 = vector.shape_cast %73 : vector<4x1x16x16xf32> to vector<4x256xf32>
    %75 = tpu.concatenate %58, %60, %62, %64, %66, %68, %70, %72, %74 in 0 : vector<4x256xf32>, vector<4x256xf32>, vector<4x256xf32>, vector<4x256xf32>, vector<4x256xf32>, vector<4x256xf32>, vector<4x256xf32>, vector<4x256xf32>, vector<4x256xf32> -> vector<36x256xf32>
    %cst_27 = arith.constant dense<0.000000e+00> : vector<4x256xf32>
    %76 = tpu.matmul %51, %75, %cst_27 {dimension_numbers = #tpu.dot_dimension_numbers<[1], [0], [0], [1], [0, 0, 1, 1], [], []>} : vector<4x36xf32>, vector<36x256xf32>, vector<4x256xf32> -> vector<4x256xf32>
    %c0_28 = arith.constant 0 : index
    %c0_29 = arith.constant 0 : index
    %77 = vector.load %arg7[%c0_28, %c0_29] : memref<4x1xf32, #tpu.memory_space<vmem>>, vector<4x1xf32>
    %78 = vector.broadcast %77 : vector<4x1xf32> to vector<4x256xf32>
    %79 = arith.mulf %76, %78 : vector<4x256xf32>
    %c0_30 = arith.constant 0 : index
    %c0_31 = arith.constant 0 : index
    %80 = vector.load %arg8[%c0_30, %c0_31] : memref<4x1xf32, #tpu.memory_space<vmem>>, vector<4x1xf32>
    %81 = vector.broadcast %80 : vector<4x1xf32> to vector<4x256xf32>
    %82 = arith.addf %79, %81 : vector<4x256xf32>
    %83 = arith.addf %82, %2 : vector<4x256xf32>
    %c0_i32_32 = arith.constant 0 : i32
    %84 = arith.cmpi eq, %arg1, %c0_i32_32 : i32
    %85 = arith.extui %84 : i1 to i32
    %c0_i32_33 = arith.constant 0 : i32
    %86 = arith.cmpi ne, %85, %c0_i32_33 : i32
    scf.if %86 {
      %c0_47 = arith.constant 0 : index
      %c0_48 = arith.constant 0 : index
      %104 = vector.load %arg12[%c0_47, %c0_48] : memref<4x256xf32, #tpu.memory_space<vmem>>, vector<4x256xf32>
      tpu.vector_store %arg12[%c0_47, %c0_48], %83 {strides = array<i32>} : memref<4x256xf32, #tpu.memory_space<vmem>>, vector<4x256xf32>,
    } else {
    }
    %c0_i32_34 = arith.constant 0 : i32
    %87 = arith.cmpi sgt, %arg1, %c0_i32_34 : i32
    %88 = arith.extui %87 : i1 to i32
    %c0_i32_35 = arith.constant 0 : i32
    %89 = arith.cmpi ne, %88, %c0_i32_35 : i32
    scf.if %89 {
      %c0_47 = arith.constant 0 : index
      %c0_48 = arith.constant 0 : index
      %104 = vector.load %arg12[%c0_47, %c0_48] : memref<4x256xf32, #tpu.memory_space<vmem>>, vector<4x256xf32>
      %c0_49 = arith.constant 0 : index
      %c0_50 = arith.constant 0 : index
      %105 = vector.load %arg13[%c0_49, %c0_50] : memref<4x256xf32, #tpu.memory_space<vmem>>, vector<4x256xf32>
      %106 = arith.subf %104, %105 : vector<4x256xf32>
      %cst_51 = arith.constant 2.500000e-01 : f32
      %107 = vector.broadcast %cst_51 : f32 to vector<4x256xf32>
      %108 = arith.mulf %106, %107 : vector<4x256xf32>
      %109 = arith.addf %108, %83 : vector<4x256xf32>
      %c0_52 = arith.constant 0 : index
      %c0_53 = arith.constant 0 : index
      %110 = vector.load %arg12[%c0_52, %c0_53] : memref<4x256xf32, #tpu.memory_space<vmem>>, vector<4x256xf32>
      tpu.vector_store %arg12[%c0_52, %c0_53], %109 {strides = array<i32>} : memref<4x256xf32, #tpu.memory_space<vmem>>, vector<4x256xf32>,
    } else {
    }
    %c0_36 = arith.constant 0 : index
    %c0_37 = arith.constant 0 : index
    %90 = vector.load %arg12[%c0_36, %c0_37] : memref<4x256xf32, #tpu.memory_space<vmem>>, vector<4x256xf32>
    %cst_38 = arith.constant 1.000000e+02 : f32
    %91 = vector.broadcast %cst_38 : f32 to vector<4x256xf32>
    %92 = arith.mulf %90, %91 : vector<4x256xf32>
    %cst_39 = arith.constant 0.000000e+00 : f32
    %cst_40 = arith.constant 5.110000e+02 : f32
    %93 = vector.broadcast %cst_39 : f32 to vector<4x256xf32>
    %94 = arith.maximumf %93, %92 : vector<4x256xf32>
    %95 = vector.broadcast %cst_40 : f32 to vector<4x256xf32>
    %96 = arith.minimumf %95, %94 : vector<4x256xf32>
    %97 = math.roundeven %96 : vector<4x256xf32>
    %cst_41 = arith.constant 1.000000e+02 : f32
    %98 = vector.broadcast %cst_41 : f32 to vector<4x256xf32>
    %99 = arith.divf %97, %98 : vector<4x256xf32>
    %c0_42 = arith.constant 0 : index
    %c0_43 = arith.constant 0 : index
    %100 = vector.load %arg13[%c0_42, %c0_43] : memref<4x256xf32, #tpu.memory_space<vmem>>, vector<4x256xf32>
    tpu.vector_store %arg13[%c0_42, %c0_43], %99 {strides = array<i32>} : memref<4x256xf32, #tpu.memory_space<vmem>>, vector<4x256xf32>,
    %c0_44 = arith.constant 0 : index
    %c0_45 = arith.constant 0 : index
    %c0_46 = arith.constant 0 : index
    %101 = vector.load %arg9[%c0_44, %c0_45, %c0_46] : memref<1x4x256xf32, #tpu.memory_space<vmem>>, vector<1x4x256xf32>
    %102 = vector.shape_cast %101 : vector<1x4x256xf32> to vector<4x256xf32>
    %103 = vector.shape_cast %99 : vector<4x256xf32> to vector<1x4x256xf32>
    tpu.vector_store %arg9[%c0_44, %c0_45, %c0_46], %103 {strides = array<i32>} : memref<1x4x256xf32, #tpu.memory_space<vmem>>, vector<1x4x256xf32>,
    return
  }
  func.func @transform_0(%arg0: i32, %arg1: i32) -> (i32, i32, i32, i32, i32) {
    %c0_i32 = arith.constant 0 : i32
    %c0_i32_0 = arith.constant 0 : i32
    %c0_i32_1 = arith.constant 0 : i32
    %c0_i32_2 = arith.constant 0 : i32
    return %arg1, %c0_i32, %arg0, %c0_i32_0, %c0_i32_1 : i32, i32, i32, i32, i32
  }
  func.func @transform_1(%arg0: i32, %arg1: i32) -> (i32, i32) {
    %c0_i32 = arith.constant 0 : i32
    %c0_i32_0 = arith.constant 0 : i32
    %c0_i32_1 = arith.constant 0 : i32
    return %c0_i32, %c0_i32_0 : i32, i32
  }
  func.func @transform_2(%arg0: i32, %arg1: i32) -> (i32, i32) {
    %c0_i32 = arith.constant 0 : i32
    %c0_i32_0 = arith.constant 0 : i32
    %c0_i32_1 = arith.constant 0 : i32
    return %c0_i32, %c0_i32_0 : i32, i32
  }
  func.func @transform_3(%arg0: i32, %arg1: i32) -> (i32, i32) {
    %c0_i32 = arith.constant 0 : i32
    %c0_i32_0 = arith.constant 0 : i32
    %c0_i32_1 = arith.constant 0 : i32
    return %c0_i32, %c0_i32_0 : i32, i32
  }
  func.func @transform_4(%arg0: i32, %arg1: i32) -> (i32, i32) {
    %c0_i32 = arith.constant 0 : i32
    %c0_i32_0 = arith.constant 0 : i32
    %c0_i32_1 = arith.constant 0 : i32
    return %c0_i32, %c0_i32_0 : i32, i32
  }
  func.func @transform_5(%arg0: i32, %arg1: i32) -> (i32, i32) {
    %c0_i32 = arith.constant 0 : i32
    %c0_i32_0 = arith.constant 0 : i32
    %c0_i32_1 = arith.constant 0 : i32
    return %c0_i32, %c0_i32_0 : i32, i32
  }
  func.func @transform_6(%arg0: i32, %arg1: i32) -> (i32, i32) {
    %c0_i32 = arith.constant 0 : i32
    %c0_i32_0 = arith.constant 0 : i32
    %c0_i32_1 = arith.constant 0 : i32
    return %c0_i32, %c0_i32_0 : i32, i32
  }
  func.func @transform_7(%arg0: i32, %arg1: i32) -> (i32, i32, i32) {
    %c0_i32 = arith.constant 0 : i32
    %c0_i32_0 = arith.constant 0 : i32
    return %arg1, %c0_i32, %arg0 : i32, i32, i32
  }
}

</mosaic_0001>

<bundles_post_ra>
// kernel: _basic_block_impl.1
= control target key start
LH: loop header
LB: loop body
LE: loop exit
PB: predicated region body
PF: predicated region fallthrough
CT: control target
= control target key end

     0   :  { %s6291_s24 = smov 0   ;;  %s6293_s25 = smov 0   ;;  %s9552_s0 = inlined_call_operand.vmem [shape: f32[4,4,2,16,16], index: 0, kind: input, shape index: {}]   ;;  %s9553_s1 = inlined_call_operand.vmem [shape: f32[4,36], index: 1, kind: input, shape index: {}]   ;;  %s9554_s2 = inlined_call_operand.vmem [shape: f32[4,1], index: 2, kind: input, shape index: {}]   ;;  %s9555_s3 = inlined_call_operand.vmem [shape: f32[4,1], index: 3, kind: input, shape index: {}]   ;;  %s9556_s4 = inlined_call_operand.vmem [shape: f32[4,36], index: 4, kind: input, shape index: {}]   ;;  %s9557_s5 = inlined_call_operand.vmem [shape: f32[4,1], index: 5, kind: input, shape index: {}]   ;;  %s9558_s6 = inlined_call_operand.vmem [shape: f32[4,1], index: 6, kind: input, shape index: {}]   ;;  %s9559_s7 = inlined_call_operand.vmem [shape: f32[4,4,512], index: 7, kind: output, shape index: {}]  }
   0x1   :  { %s6295_s26 = smov 0   ;;  %s6297_s27 = smov 0  }
   0x2   :  { %s6299_s28 = smov 0   ;;  %s6301_s29 = smov 0  }
   0x3   :  { %s6303_s30 = smov 0  }
   0x4 LB: > { %s26_s8 = sadd.s32 1, %s6227_s28  ;;  %s29_s9 = sadd.s32 1, %s6231_s29  ;;  %s6235_s30 = sphi %s6303_s30, %s17_s30   ;;  %s6231_s29 = sphi %s6301_s29, %s9695_s29   ;;  %s6227_s28 = sphi %s6299_s28, %s9694_s28   ;;  %s6223_s27 = sphi %s6297_s27, %s9693_s27   ;;  %s6219_s26 = sphi %s6295_s26, %s9692_s26   ;;  %s6215_s25 = sphi %s6293_s25, %s9691_s25   ;;  %s6211_s24 = sphi %s6291_s24, %s9690_s24  }
   0x5   : > { %p27_p0 = scmp.ge.s32.totalorder %s26_s8, 4  ;;  %p45_p1 = scmp.ne.s32.totalorder %s6215_s25, %s6211_s24 }
   0x6   : > { %p46_p2 = scmp.eq.s32.totalorder %s6235_s30, 0  ;;  %s38_s13 = sadd.s32 1, %s6215_s25 }
   0x7   : > { %s9697_s8 = smov (%p27_p0, %s26_s8), 0  ;;  %s9699_s9 = smov (!%p27_p0, %s29_s9), %s6231_s29 }
   0x8   : > { %p47_p3 = por %p46_p2, %p45_p1  ;;  %p31_p4 = scmp.ge.s32.totalorder %s9699_s9, 2 }
   0x9   : > { %s33_s10 = ssub.s32 %s6227_s28, %s9697_s8  ;;  %p5503_p6 = scmp.ge.s32.totalorder %s6235_s30, 8 }
   0xa   : > { %s9701_s9 = smov (%p31_p4, %s9699_s9), 0 }
   0xb   : > { %s34_s11 = ssub.s32 %s6231_s29, %s9701_s9  ;;  %243 = sbr.rel (%p5503_p6) target bundleno = 29 (0x1d), region = 40 }
   0xc   : > { %s35_s12 = sor.u32 %s34_s11, %s33_s10 }
   0xd   : > { %p36_p5 = scmp.eq.s32.totalorder %s35_s12, 0 }
   0xf   : > { %s6342_s14 = scalar_select %p36_p5, %s6215_s25, %s38_s13  }
  0x12   : > { %246 = sbr.rel (!%p47_p3) target bundleno = 29 (0x1d), region = 44  ;;  %s248_s15 = sand.u32 (%p47_p3), 1, %s6215_s25  }
  0x13   : > { %s5505_s16 = sshll.u32 (%p47_p3), %s6231_s29, 1  ;;  %s5504_s17 = sshll.u32 (%p47_p3), %s248_s15, 6 }
  0x14   : > { %s5506_s18 = sshll.u32 (%p47_p3), %s6227_s28, 4  ;;  %s250_s10 = scalar_lea.vmem (%p47_p3), [#allocation6], %s5504_s17 }
  0x15   : > { %s253_s19 = sadd.s32 (%p47_p3), %s5506_s18, %s5505_s16 }
  0x16   : > { %s5507_s20 = sshll.u32 (%p47_p3), %s253_s19, 3 }
  0x17   : > { %s255_s23 = scalar_lea.vmem (%p47_p3), %s9552_s0, %s5507_s20 }
  0x18   : > { %v297_v0 = vld [vmem:[%s255_s23] sm:$0xff] (%p47_p3)  ;;  %v299_v1 = vld [vmem:[%s255_s23 + $0x8] sm:$0xff] (%p47_p3) }
  0x19   : > { %v301_v2 = vld [vmem:[%s255_s23 + $0x20] sm:$0xff]  ;;  %298 = vst [vmem:[%s250_s10] sm:$0xff] %v297_v0  ;;  %300 = vst [vmem:[%s250_s10 + $0x8] sm:$0xff] %v299_v1  ;;  %v303_v3 = vld [vmem:[%s255_s23 + $0x28] sm:$0xff] }
  0x1a   : > { %302 = vst [vmem:[%s250_s10 + $0x10] sm:$0xff] %v301_v2  ;;  %v305_v4 = vld [vmem:[%s255_s23 + $0x40] sm:$0xff]  ;;  %v307_v5 = vld [vmem:[%s255_s23 + $0x48] sm:$0xff]  ;;  %304 = vst [vmem:[%s250_s10 + $0x18] sm:$0xff] %v303_v3 }
  0x1b   : > { %306 = vst [vmem:[%s250_s10 + $0x20] sm:$0xff] %v305_v4  ;;  %308 = vst [vmem:[%s250_s10 + $0x28] sm:$0xff] %v307_v5  ;;  %v309_v6 = vld [vmem:[%s255_s23 + $0x60] sm:$0xff]  ;;  %v311_v7 = vld [vmem:[%s255_s23 + $0x68] sm:$0xff] }
  0x1c   : > { %310 = vst [vmem:[%s250_s10 + $0x30] sm:$0xff] %v309_v6  ;;  %312 = vst [vmem:[%s250_s10 + $0x38] sm:$0xff] %v311_v7 }
  0x1d PF: > { %p5508_p7 = scmp.ge.s32.totalorder %s6235_s30, 1  ;;  %p317_p8 = scmp.lt.s32.totalorder %s6235_s30, 9 }
  0x1f   : > { %p318_p9 = pnand %p5508_p7, %p317_p8 }
  0x21   : > { %321 = sbr.rel (%p318_p9) target bundleno = 1739 (0x6cb), region = 82 }
  0x28   : > { %s324_s11 = sand.u32 1, %s6211_s24   ;;  %v382_v8 = vlaneseq  ;;  %v6237_v9 = vmov 1983009808   ;;  %v6238_v11 = vmov 1934713408   ;;  %v9560_v14 = vmov 0.0  }
  0x29   : > { %s5509_s12 = sshll.u32 %s324_s11, 6  ;;  %v380_v10 = vunpack.c.l.s4 %v6237_v9  ;;  %v412_v12 = vunpack.c.l.s4 %v6238_v11  ;;  %2853 = vmatprep.mubr.f32.mxu0 %v9560_v14  ;;  %s6240_s15 = smov 1   ;;  %vm623_vm0 = vcmask 7168   ;;  %vm632_vm1 = vcmask 138240  }
  0x2a   : > { %v383_v13 = vshrl.u32 %v382_v8, 7  ;;  %s326_s13 = scalar_lea.vmem [#allocation6], %s5509_s12  ;;  %s6241_s24 = smov 16   ;;  %vm649_vm2 = vcmask 1040384   ;;  %vm1356_vm3 = vcmask 1046528   ;;  %vm569_vm4 = vcmask 130048  }
  0x2b   : > { %v371_v15 = vld [vmem:[%s326_s13 + $0x10] sm:$0xff]  ;;  %v369_v16 = vld [vmem:[%s326_s13] sm:$0xff]  ;;  %v381_v17 = vunpack.c.0.s8 %v380_v10  ;;  %v370_v18 = vld [vmem:[%s326_s13 + $0x8] sm:$0xff]  ;;  %v413_v25 = vunpack.c.0.s8 %v412_v12  ;;  %s6242_s16 = smov 32   ;;  %s6243_s17 = smov 48   ;;  %vm571_vm5 = vcmask 261120  }
  0x2c   : > { %603 = vrot.lane.b32.xlu1 %v371_v15, %s6240_s15  ;;  %599 = vrot.lane.b32.xlu0 %v369_v16, %s6240_s15  ;;  %v374_v19 = vld [vmem:[%s326_s13 + $0x28] sm:$0xff]  ;;  %v372_v20 = vld [vmem:[%s326_s13 + $0x18] sm:$0xff]  ;;  %s6244_s18 = smov 64   ;;  %s6245_s19 = smov 80   ;;  %vm573_vm6 = vcmask 392192   ;;  %vm575_vm7 = vcmask 523264  }
  0x2d   : > { %v6357_v21 = vsub.s32 %v381_v17, %v383_v13  ;;  %v446_v22 = vcombine.high %v370_v18, %v374_v19  ;;  %v373_v23 = vld [vmem:[%s326_s13 + $0x20] sm:$0xff]  ;;  %v376_v24 = vld [vmem:[%s326_s13 + $0x38] sm:$0xff]  ;;  %v375_v28 = vld [vmem:[%s326_s13 + $0x30] sm:$0xff]  ;;  %v6369_v36 = vsub.s32 %v413_v25, %v383_v13  ;;  %v445_v37 = vcombine.low %v370_v18, %v374_v19  ;;  %s6246_s20 = smov 96   ;;  %s6247_s21 = smov 112  }
  0x2e   : > { %v377_v26 = vcombine.low %v369_v16, %v373_v23  ;;  %v462_v27 = vcombine.high %v372_v20, %v376_v24  ;;  %v393_v29 = vcombine.low %v371_v15, %v375_v28  ;;  %v378_v30 = vcombine.high %v369_v16, %v373_v23  ;;  %s6248_s22 = smov 127   ;;  %s6249_s23 = smov 126  }
  0x2f   : > { %v394_v32 = vcombine.high %v371_v15, %v375_v28  ;;  %v6363_v33 = vrot.slane %v446_v22, %v6357_v21  ;;  %v461_v38 = vcombine.low %v372_v20, %v376_v24  ;;  %v453_v45 = vrot.slane %v445_v37, %v6357_v21  ;;  %s5510_s10 = sshll.u32 %s6223_s27, 1  ;;  %p360_p10 = scmp.lt.s32.totalorder %s6219_s26, 3 }
  0x30   : > { %605 = vrot.lane.b32.xlu1 %v372_v20, %s6240_s15  ;;  %601 = vrot.lane.b32.xlu0 %v370_v18, %s6240_s15  ;;  %v385_v31 = vrot.slane %v377_v26, %v6357_v21  ;;  %v6366_v34 = vrot.slane %v462_v27, %v6357_v21  ;;  %v401_v35 = vrot.slane %v393_v29, %v6357_v21  ;;  %vm577_vm8 = vcmask 654336   ;;  %p362_p11 = scmp.lt.s32.totalorder %s5510_s10, 3  ;;  %p5516_p12 = scmp.ne.s32.totalorder %s6219_s26, 0 }
  0x31   : > { %9589 = vst [vmem:[#allocation7_spill] sm:$0xff] %v6363_v33  ;;  %v392_v41 = vrot.slane %v378_v30, %v6357_v21  ;;  %v408_v42 = vrot.slane %v394_v32, %v6357_v21  ;;  %v469_v46 = vrot.slane %v461_v38, %v6357_v21  ;;  %vm579_vm9 = vcmask 785408   ;;  %s361_s27 = scalar_select %p360_p10, %s6219_s26, 3 }
  0x32   : > { %9590 = vst [vmem:[#allocation8_spill] sm:$0xff] %v6366_v34  ;;  %v409_v40 = vcombine.low %v385_v31, %v401_v35  ;;  %v410_v43 = vcombine.high %v385_v31, %v401_v35  ;;  %v493_v62 = vcombine.low %v6363_v33, %v6366_v34  ;;  %vm581_vm10 = vcmask 916480   ;;  %s9703_s10 = smov (!%p362_p11, %s5510_s10), 3 }
  0x33   : > { %v425_v49 = vcombine.low %v392_v41, %v408_v42  ;;  %v477_v50 = vcombine.low %v453_v45, %v469_v46  ;;  %v426_v53 = vcombine.high %v392_v41, %v408_v42  ;;  %v478_v57 = vcombine.high %v453_v45, %v469_v46  ;;  %s5511_s11 = sshll.u32 %s361_s27, 2 }
  0x34   : > { %609 = vrot.lane.b32.xlu1 %v374_v19, %s6240_s15  ;;  %607 = vrot.lane.b32.xlu0 %v373_v23, %s6240_s15  ;;  %v6378_v44 = vrot.slane %v409_v40, %v6369_v36  ;;  %v424_v48 = vrot.slane %v410_v43, %v6369_v36  ;;  %v6412_v63 = vrot.slane %v493_v62, %v6369_v36  ;;  %vm2051_vm11 = vcmask 1045504   ;;  %s365_s12 = sadd.s32 %s5511_s11, %s9703_s10 }
  0x35   : > { %v433_v52 = vrot.slane %v425_v49, %v6369_v36  ;;  %v440_v55 = vrot.slane %v426_v53, %v6369_v36  ;;  %v6396_v56 = vrot.slane %v477_v50, %v6369_v36  ;;  %v492_v60 = vrot.slane %v478_v57, %v6369_v36  ;;  %s5512_s13 = sshll.u32 %s365_s12, 2 }
  0x36   : > { %v441_v47 = vcombine.high %v6378_v44, %v9560_v14  ;;  %v442_v51 = vcombine.high %v424_v48, %v9560_v14  ;;  %9592 = vst [vmem:[#allocation10_spill] sm:$0xff] %v6412_v63  ;;  %s7293_s11 = scalar_lea.vmem %s9559_s7, %s5512_s13  ;;  %vm2770_vm12 = vcmask 1043456   ;;  %vm2779_vm13 = vcmask 293888  }
  0x37   : > { %v443_v54 = vcombine.high %v433_v52, %v9560_v14  ;;  %9591 = vst [vmem:[#allocation9_spill] sm:$0xff] %v6396_v56  ;;  %v444_v58 = vcombine.high %v440_v55, %v9560_v14  ;;  %v509_v59 = vcombine.high %v6396_v56, %v9560_v14  ;;  %v510_v61 = vcombine.high %v492_v60, %v9560_v14 }
  0x38   : > { %613 = vrot.lane.b32.xlu1 %v376_v24, %s6240_s15  ;;  %611 = vrot.lane.b32.xlu0 %v375_v28, %s6240_s15 }
  0x3c   : > { %514 = vrot.lane.b32.xlu0 %v441_v47, %s6241_s24  ;;  %518 = vrot.lane.b32.xlu1 %v424_v48, %s6242_s16 }
  0x40   : > { %522 = vrot.lane.b32.xlu0 %v442_v51, %s6243_s17  ;;  %526 = vrot.lane.b32.xlu1 %v433_v52, %s6244_s18 }
  0x44   : > { %530 = vrot.lane.b32.xlu0 %v443_v54, %s6245_s19  ;;  %534 = vrot.lane.b32.xlu1 %v440_v55, %s6246_s20 }
  0x48   : > { %538 = vrot.lane.b32.xlu0 %v444_v58, %s6247_s21  ;;  %542 = vrot.lane.b32.xlu1 %v509_v59, %s6241_s24 }
  0x4c   : > { %546 = vrot.lane.b32.xlu0 %v492_v60, %s6242_s16  ;;  %550 = vrot.lane.b32.xlu1 %v510_v61, %s6243_s17 }
  0x50   : > { %554 = vrot.lane.b32.xlu0 %v6412_v63, %s6244_s18 }
  0x9e   : > { %v604_v0 = vpop.permute.xlu1 %603  ;;  %v600_v1 = vpop.permute.xlu0 %599 }
  0x9f   : > { %v626_v2 = vsel %vm623_vm0, 0.0, %v604_v0  ;;  %v624_v3 = vsel %vm623_vm0, 0.0, %v600_v1 }
  0xa0   : > { %v635_v4 = vsel %vm632_vm1, %v626_v2, 0.0  ;;  %v633_v5 = vsel %vm632_vm1, %v624_v3, 0.0 }
  0xa1   : > { %v653_v12 = vrot.slane %v635_v4, 7  ;;  %v650_v13 = vrot.slane %v633_v5, 7 }
  0xa2   : > { %v606_v6 = vpop.permute.xlu1 %605  ;;  %v602_v7 = vpop.permute.xlu0 %601 }
  0xa3   : > { %v627_v8 = vsel %vm623_vm0, 0.0, %v606_v6  ;;  %v625_v9 = vsel %vm623_vm0, 0.0, %v602_v7  ;;  %v6473_v57 = vsel %vm649_vm2, 0.0, %v650_v13  ;;  %v6491_v1 = vsel %vm649_vm2, 0.0, %v653_v12 }
  0xa4   : > { %v636_v10 = vsel %vm632_vm1, %v627_v8, 0.0  ;;  %v634_v11 = vsel %vm632_vm1, %v625_v9, 0.0  ;;  %v1357_v9 = vrot.slane %v6473_v57, 1 }
  0xa5   : > { %v654_v15 = vrot.slane %v636_v10, 7  ;;  %v651_v16 = vrot.slane %v634_v11, 7 }
  0xa6   : > { %v610_v17 = vpop.permute.xlu1 %609  ;;  %v608_v18 = vpop.permute.xlu0 %607 }
  0xa7   : > { %v6425_v19 = vsel %vm649_vm2, %v653_v12, %v654_v15  ;;  %v6428_v20 = vsel %vm649_vm2, %v650_v13, %v651_v16  ;;  %v6435_v22 = vsel %vm649_vm2, %v651_v16, 0.0  ;;  %v629_v23 = vsel %vm623_vm0, 0.0, %v610_v17 }
  0xa8   : > { %894 = vrot.lane.b32.xlu1 %v6428_v20, %s6248_s22  ;;  %898 = vrot.lane.b32.xlu0 %v6425_v19, %s6248_s22  ;;  %v628_v24 = vsel %vm623_vm0, 0.0, %v608_v18  ;;  %v638_v25 = vsel %vm632_vm1, %v629_v23, 0.0  ;;  %v6444_v35 = vsel %vm649_vm2, %v654_v15, 0.0  ;;  %v1360_v37 = vrot.slane %v6435_v22, 1 }
  0xa9   : > { %v637_v26 = vsel %vm632_vm1, %v628_v24, 0.0  ;;  %v657_v29 = vrot.slane %v638_v25, 7  ;;  %v1358_v45 = vrot.slane %v6428_v20, 1  ;;  %v1365_v50 = vrot.slane %v6444_v35, 1 }
  0xaa   : > { %v614_v27 = vpop.permute.xlu1 %613  ;;  %v612_v28 = vpop.permute.xlu0 %611  ;;  %v656_v30 = vrot.slane %v637_v26, 7  ;;  %v1363_v52 = vrot.slane %v6425_v19, 1  ;;  %v1362_v15 = vrot.slane %v6491_v1, 1  ;;  %v2058_v39 = vrot.slane %v6425_v19, 2 }
  0xab   : > { %v631_v31 = vsel %vm623_vm0, 0.0, %v614_v27  ;;  %v630_v32 = vsel %vm623_vm0, 0.0, %v612_v28  ;;  %v6450_v41 = vsel %vm649_vm2, %v657_v29, 0.0  ;;  %v6478_v58 = vsel %vm1356_vm3, %v1358_v45, %v1360_v37 }
  0xac   : > { %v640_v38 = vsel %vm632_vm1, %v631_v31, 0.0  ;;  %v639_v40 = vsel %vm632_vm1, %v630_v32, 0.0  ;;  %v6453_v42 = vsel %vm649_vm2, %v656_v30, %v657_v29  ;;  %v1370_v46 = vrot.slane %v6450_v41, 1 }
  0xad   : > { %v660_v43 = vrot.slane %v640_v38, 7  ;;  %v659_v47 = vrot.slane %v639_v40, 7  ;;  %902 = vrot.lane.b32.xlu1 %v6453_v42, %s6248_s22  ;;  %v1368_v48 = vrot.slane %v6453_v42, 1  ;;  %v6466_v53 = vsel %vm649_vm2, 0.0, %v656_v30 }
  0xae   : > { %v515_v49 = vpop.permute.xlu0 %514  ;;  %v519_v0 = vpop.permute.xlu1 %518  ;;  %v6494_v2 = vsel %vm1356_vm3, %v1363_v52, %v1365_v50  ;;  %v1367_v4 = vrot.slane %v6466_v53, 1  ;;  %v6516_v11 = vsel %vm1356_vm3, %v1357_v9, %v1358_v45  ;;  %v6527_v18 = vsel %vm1356_vm3, %v1362_v15, %v1363_v52 }
  0xaf   : > { %v6462_v51 = vsel %vm649_vm2, %v660_v43, 0.0  ;;  %v6470_v55 = vsel %vm649_vm2, %v659_v47, %v660_v43  ;;  %v6481_v59 = vsel %vm1356_vm3, %v1368_v48, %v1370_v46  ;;  %v6501_v6 = vsel %vm649_vm2, 0.0, %v659_v47 }
  0xb0   : > { %v1375_v54 = vrot.slane %v6462_v51, 1  ;;  %906 = vrot.lane.b32.xlu0 %v6470_v55, %s6248_s22  ;;  %v1373_v60 = vrot.slane %v6470_v55, 1  ;;  %v1453_v61 = vcombine.low %v6478_v58, %v6481_v59  ;;  %v1454_v62 = vcombine.high %v6478_v58, %v6481_v59 }
  0xb1   : > { %892 = vrot.lane.b32.xlu1 %v6473_v57, %s6248_s22  ;;  %v6511_v10 = vsel %vm1356_vm3, %v1367_v4, %v1368_v48  ;;  %v1372_v16 = vrot.slane %v6501_v6, 1  ;;  %v570_v28 = vsel %vm569_vm4, %v6378_v44, %v515_v49  ;;  %v750_v47 = vcombine.low %v6428_v20, %v6453_v42 }
  0xb2   : > { %v6497_v3 = vsel %vm1356_vm3, %v1373_v60, %v1375_v54  ;;  %v523_v5 = vpop.permute.xlu0 %522  ;;  %v1385_v12 = vcombine.low %v6516_v11, %v6511_v10  ;;  %v1386_v13 = vcombine.high %v6516_v11, %v6511_v10  ;;  %v527_v17 = vpop.permute.xlu1 %526  ;;  %v6544_v29 = vrot.slane %v1453_v61, %v6357_v21 }
  0xb3   : > { %v1469_v7 = vcombine.low %v6494_v2, %v6497_v3  ;;  %v1470_v8 = vcombine.high %v6494_v2, %v6497_v3  ;;  %v6530_v23 = vsel %vm1356_vm3, %v1372_v16, %v1373_v60  ;;  %v572_v32 = vsel %vm571_vm5, %v570_v28, %v519_v0 }
  0xb4   : > { %896 = vrot.lane.b32.xlu0 %v6491_v1, %s6248_s22  ;;  %v1401_v26 = vcombine.low %v6527_v18, %v6530_v23  ;;  %v1402_v27 = vcombine.high %v6527_v18, %v6530_v23  ;;  %v6552_v31 = vrot.slane %v1385_v12, %v6357_v21  ;;  %v574_v37 = vsel %vm573_vm6, %v572_v32, %v523_v5 }
  0xb5   : > { %900 = vrot.lane.b32.xlu1 %v6466_v53, %s6248_s22  ;;  %v6535_v25 = vrot.slane %v1469_v7, %v6357_v21  ;;  %v6558_v44 = vrot.slane %v1470_v8, %v6357_v21  ;;  %v576_v43 = vsel %vm575_vm7, %v574_v37, %v527_v17  ;;  %v6569_v48 = vrot.slane %v1454_v62, %v6357_v21 }
  0xb6   : > { %v531_v24 = vpop.permute.xlu0 %530  ;;  %v6547_v30 = vrot.slane %v1401_v26, %v6357_v21  ;;  %v535_v38 = vpop.permute.xlu1 %534  ;;  %v6572_v49 = vrot.slane %v1402_v27, %v6357_v21  ;;  %v6578_v52 = vrot.slane %v1386_v13, %v6357_v21  ;;  %v766_v60 = vcombine.low %v6425_v19, %v6470_v55 }
  0xb7   : > { %v1486_v40 = vcombine.high %v6544_v29, %v6535_v25  ;;  %v578_v50 = vsel %vm577_vm8, %v576_v43, %v531_v24  ;;  %v683_v0 = vcombine.high %v6473_v57, %v6466_v53  ;;  %v699_v4 = vcombine.high %v6491_v1, %v6501_v6 }
  0xb8   : > { %904 = vrot.lane.b32.xlu0 %v6501_v6, %s6248_s22  ;;  %v1418_v46 = vcombine.high %v6552_v31, %v6547_v30  ;;  %v580_v54 = vsel %vm579_vm9, %v578_v50, %v535_v38  ;;  %v6595_v5 = vrot.slane %v750_v47, %v6357_v21  ;;  %v6598_v7 = vrot.slane %v766_v60, %v6357_v21 }
  0xb9   : > { %1124 = vrot.lane.b32.xlu1 %v6428_v20, %s6249_s23  ;;  %v682_v8 = vcombine.low %v6473_v57, %v6466_v53  ;;  %v698_v9 = vcombine.low %v6491_v1, %v6501_v6  ;;  %v6605_v12 = vrot.slane %v683_v0, %v6357_v21  ;;  %v6608_v13 = vrot.slane %v699_v4, %v6357_v21 }
  0xba   : > { %v539_v45 = vpop.permute.xlu0 %538  ;;  %v751_v28 = vcombine.high %v6428_v20, %v6453_v42  ;;  %v767_v32 = vcombine.high %v6425_v19, %v6470_v55  ;;  %v2065_v4 = vrot.slane %v6450_v41, 2 }
  0xbb   : > { %v6586_v61 = vsel %vm581_vm10, %v580_v54, %v539_v45  ;;  %v6617_v17 = vrot.slane %v682_v8, %v6357_v21  ;;  %v6620_v24 = vrot.slane %v698_v9, %v6357_v21  ;;  %v2055_v9 = vrot.slane %v6435_v22, 2 }
  0xbc   : > { %1128 = vrot.lane.b32.xlu0 %v6425_v19, %s6249_s23  ;;  %9593 = vst [vmem:[#allocation11_spill] sm:$0xff] %v6586_v61  ;;  %v6637_v43 = vrot.slane %v751_v28, %v6357_v21  ;;  %v6640_v45 = vrot.slane %v767_v32, %v6357_v21  ;;  %v2053_v28 = vrot.slane %v6428_v20, 2  ;;  %v2060_v32 = vrot.slane %v6444_v35, 2 }
  0xbd   : > { %1132 = vrot.lane.b32.xlu1 %v6453_v42, %s6249_s23  ;;  %v2063_v22 = vrot.slane %v6453_v42, 2  ;;  %v2070_v20 = vrot.slane %v6462_v51, 2  ;;  %v2068_v19 = vrot.slane %v6470_v55, 2  ;;  %v2052_v42 = vrot.slane %v6473_v57, 2 }
  0xbe   : > { %v6670_v14 = vsel %vm2051_vm11, %v2053_v28, %v2055_v9  ;;  %v6679_v8 = vsel %vm2051_vm11, %v2058_v39, %v2060_v32  ;;  %v2067_v32 = vrot.slane %v6501_v6, 2 }
  0xbf   : > { %v6683_v35 = vsel %vm2051_vm11, %v2063_v22, %v2065_v4  ;;  %v6690_v41 = vsel %vm2051_vm11, %v2068_v19, %v2070_v20  ;;  %v6702_v51 = vsel %vm2051_vm11, %v2052_v42, %v2053_v28  ;;  %v2057_v4 = vrot.slane %v6491_v1, 2 }
  0xc0   : > { %1136 = vrot.lane.b32.xlu0 %v6470_v55, %s6249_s23  ;;  %v2062_v55 = vrot.slane %v6466_v53, 2 }
  0xc1   : > { %1122 = vrot.lane.b32.xlu1 %v6473_v57, %s6249_s23  ;;  %v6711_v9 = vsel %vm2051_vm11, %v2057_v4, %v2058_v39  ;;  %v6758_v39 = vpop.permute.xlu1 %542 }
  0xc2   : > { %v6715_v57 = vsel %vm2051_vm11, %v2062_v55, %v2063_v22  ;;  %9594 = vst [vmem:[#allocation12_spill] sm:$0xff] %v6758_v39 }
  0xc4   : > { %1126 = vrot.lane.b32.xlu0 %v6491_v1, %s6249_s23 }
  0xc5   : > { %1130 = vrot.lane.b32.xlu1 %v6466_v53, %s6249_s23  ;;  %v6722_v53 = vsel %vm2051_vm11, %v2067_v32, %v2068_v19  ;;  %v6781_v32 = vrot.slane %v1486_v40, %v6369_v36 }
  0xc8   : > { %1134 = vrot.lane.b32.xlu0 %v6501_v6, %s6249_s23 }
  0xc9   : > { %1823 = vrot.lane.b32.xlu1 %v6478_v58, %s6249_s23 }
  0xcc   : > { %1827 = vrot.lane.b32.xlu0 %v6494_v2, %s6249_s23 }
  0xcd   : > { %1831 = vrot.lane.b32.xlu1 %v6481_v59, %s6249_s23 }
  0xd0   : > { %1835 = vrot.lane.b32.xlu0 %v6497_v3, %s6249_s23 }
  0xd1   : > { %2288 = vrot.lane.b32.xlu1 %v6670_v14, %s6248_s22 }
  0xd4   : > { %2292 = vrot.lane.b32.xlu0 %v6679_v8, %s6248_s22 }
  0xd5   : > { %2296 = vrot.lane.b32.xlu1 %v6683_v35, %s6248_s22 }
  0xd8   : > { %2300 = vrot.lane.b32.xlu0 %v6690_v41, %s6248_s22 }
  0xd9   : > { %1821 = vrot.lane.b32.xlu1 %v6516_v11, %s6249_s23 }
  0xdc   : > { %1825 = vrot.lane.b32.xlu0 %v6527_v18, %s6249_s23 }
  0xdd   : > { %1829 = vrot.lane.b32.xlu1 %v6511_v10, %s6249_s23 }
  0xe0   : > { %1833 = vrot.lane.b32.xlu0 %v6530_v23, %s6249_s23 }
  0xe1   : > { %2286 = vrot.lane.b32.xlu1 %v6702_v51, %s6248_s22 }
  0xe4   : > { %2290 = vrot.lane.b32.xlu0 %v6711_v9, %s6248_s22 }
  0xe5   : > { %2294 = vrot.lane.b32.xlu1 %v6715_v57, %s6248_s22 }
  0xe8   : > { %2298 = vrot.lane.b32.xlu0 %v6722_v53, %s6248_s22 }
  0xe9   : > { %1593 = vrot.lane.b32.xlu1 %v6478_v58, %s6248_s22  ;;  %v6760_v58 = vpop.permute.xlu0 %546 }
  0xea   : > { %9595 = vst [vmem:[#allocation13_spill] sm:$0xff] %v6760_v58 }
  0xec   : > { %1597 = vrot.lane.b32.xlu0 %v6494_v2, %s6248_s22 }
  0xed   : > { %1601 = vrot.lane.b32.xlu1 %v6481_v59, %s6248_s22  ;;  %v6762_v59 = vpop.permute.xlu1 %550  ;;  %v6764_v1 = vpop.permute.xlu0 %554 }
  0xee   : > { %9596 = vst [vmem:[#allocation14_spill] sm:$0xff] %v6762_v59  ;;  %9597 = vst [vmem:[#allocation15_spill] sm:$0xff] %v6764_v1 }
  0xf0   : > { %1605 = vrot.lane.b32.xlu0 %v6497_v3, %s6248_s22 }
  0xf1   : > { %1591 = vrot.lane.b32.xlu1 %v6516_v11, %s6248_s22 }
  0xf4   : > { %1595 = vrot.lane.b32.xlu0 %v6527_v18, %s6248_s22 }
  0xf5   : > { %1599 = vrot.lane.b32.xlu1 %v6511_v10, %s6248_s22 }
  0xf8   : > { %1603 = vrot.lane.b32.xlu0 %v6530_v23, %s6248_s22 }
  0xf9   : > { %2518 = vrot.lane.b32.xlu1 %v6670_v14, %s6249_s23 }
  0xfc   : > { %2522 = vrot.lane.b32.xlu0 %v6679_v8, %s6249_s23 }
  0xfd   : > { %2526 = vrot.lane.b32.xlu1 %v6683_v35, %s6249_s23 }
 0x100   : > { %2530 = vrot.lane.b32.xlu0 %v6690_v41, %s6249_s23 }
 0x101   : > { %2516 = vrot.lane.b32.xlu1 %v6702_v51, %s6249_s23 }
 0x104   : > { %2520 = vrot.lane.b32.xlu0 %v6711_v9, %s6249_s23 }
 0x105   : > { %2524 = vrot.lane.b32.xlu1 %v6715_v57, %s6249_s23 }
 0x108   : > { %2528 = vrot.lane.b32.xlu0 %v6722_v53, %s6249_s23 }
 0x11a   : > { %v895_v2 = vpop.permute.xlu1 %894  ;;  %v899_v3 = vpop.permute.xlu0 %898 }
 0x11f   : > { %v903_v6 = vpop.permute.xlu1 %902 }
 0x120   : > { %v984_v10 = vcombine.low %v895_v2, %v903_v6  ;;  %v985_v26 = vcombine.high %v895_v2, %v903_v6 }
 0x122   : > { %v907_v11 = vpop.permute.xlu0 %906  ;;  %v6767_v28 = vrot.slane %v984_v10, %v6357_v21  ;;  %v6809_v2 = vrot.slane %v985_v26, %v6357_v21 }
 0x123   : > { %v893_v18 = vpop.permute.xlu1 %892  ;;  %v1000_v23 = vcombine.low %v899_v3, %v907_v11 }
 0x125   : > { %v6770_v22 = vrot.slane %v1000_v23, %v6357_v21 }
 0x126   : > { %v897_v20 = vpop.permute.xlu0 %896 }
 0x127   : > { %v1017_v19 = vcombine.high %v6767_v28, %v6770_v22  ;;  %v901_v42 = vpop.permute.xlu1 %900 }
 0x128   : > { %v916_v55 = vcombine.low %v893_v18, %v901_v42  ;;  %v917_v1 = vcombine.high %v893_v18, %v901_v42 }
 0x129   : > { %v6775_v4 = vrot.slane %v1017_v19, %v6369_v36  ;;  %v1001_v19 = vcombine.high %v899_v3, %v907_v11 }
 0x12a   : > { %v905_v10 = vpop.permute.xlu0 %904  ;;  %v6786_v38 = vrot.slane %v916_v55, %v6357_v21  ;;  %v6801_v55 = vrot.slane %v1418_v46, %v6369_v36 }
 0x12b   : > { %v1125_v54 = vpop.permute.xlu1 %1124  ;;  %v932_v50 = vcombine.low %v897_v20, %v905_v10  ;;  %v5617_v23 = vpack.i.bf16 %v6781_v32, %v6775_v4 }
 0x12d   : > { %v6789_v47 = vrot.slane %v932_v50, %v6357_v21  ;;  %5618 = vrot.lane.b32.xlu1 %v5617_v23, %s6242_s16  ;;  %v6804_v50 = vrot.slane %v1001_v19, %v6357_v21  ;;  %v933_v19 = vcombine.high %v897_v20, %v905_v10 }
 0x12e   : > { %v1129_v0 = vpop.permute.xlu0 %1128 }
 0x12f   : > { %v949_v40 = vcombine.high %v6786_v38, %v6789_v47  ;;  %v1133_v60 = vpop.permute.xlu1 %1132  ;;  %v1032_v46 = vcombine.low %v6809_v2, %v6804_v50  ;;  %v947_v58 = vrot.slane %v933_v19, %v6357_v21 }
 0x130   : > { %v1214_v15 = vcombine.low %v1125_v54, %v1133_v60 }
 0x131   : > { %v6795_v37 = vrot.slane %v949_v40, %v6369_v36  ;;  %v6833_v10 = vrot.slane %v1032_v46, %v6369_v36 }
 0x132   : > { %v1137_v3 = vpop.permute.xlu0 %1136  ;;  %v6812_v6 = vrot.slane %v1214_v15, %v6357_v21  ;;  %v9598_v15 = vcombine.high %v6595_v5, %v6598_v7 }
 0x133   : > { %v1123_v11 = vpop.permute.xlu1 %1122  ;;  %v1230_v23 = vcombine.low %v1129_v0, %v1137_v3  ;;  %v5622_v27 = vpack.i.bf16 %v6801_v55, %v6795_v37  ;;  %v1231_v56 = vcombine.high %v1129_v0, %v1137_v3 }
 0x135   : > { %v6815_v40 = vrot.slane %v1230_v23, %v6357_v21  ;;  %5623 = vrot.lane.b32.xlu1 %v5622_v27, %s6242_s16  ;;  %v6826_v23 = vrot.slane %v9598_v15, %v6369_v36  ;;  %v1215_v15 = vcombine.high %v1125_v54, %v1133_v60 }
 0x136   : > { %v1127_v62 = vpop.permute.xlu0 %1126 }
 0x137   : > { %v1247_v16 = vcombine.high %v6812_v6, %v6815_v40  ;;  %v1131_v61 = vpop.permute.xlu1 %1130 }
 0x138   : > { %v1146_v26 = vcombine.low %v1123_v11, %v1131_v61  ;;  %v1147_v59 = vcombine.high %v1123_v11, %v1131_v61  ;;  %v931_v11 = vrot.slane %v917_v1, %v6357_v21 }
 0x139   : > { %v6829_v27 = vrot.slane %v1247_v16, %v6369_v36  ;;  %v9600_v16 = vcombine.low %v6569_v48, %v6558_v44 }
 0x13a   : > { %v1135_v20 = vpop.permute.xlu0 %1134  ;;  %v6847_v46 = vrot.slane %v1146_v26, %v6357_v21  ;;  %v1161_v0 = vrot.slane %v1147_v59, %v6357_v21  ;;  %v964_v1 = vcombine.low %v931_v11, %v947_v58  ;;  %v965_v54 = vcombine.high %v931_v11, %v947_v58 }
 0x13b   : > { %v6835_v39 = vpop.permute.xlu1 %1823  ;;  %v1162_v18 = vcombine.low %v1127_v62, %v1135_v20  ;;  %v1163_v61 = vcombine.high %v1127_v62, %v1135_v20  ;;  %v5627_v42 = vpack.i.bf16 %v6829_v27, %v6826_v23  ;;  %v6844_v19 = vrot.slane %v9600_v16, %v6369_v36 }
 0x13c   : > { %9599 = vst [vmem:[#allocation16_spill] sm:$0xff] %v6835_v39  ;;  %v1245_v20 = vrot.slane %v1231_v56, %v6357_v21  ;;  %v1229_v58 = vrot.slane %v1215_v15, %v6357_v21  ;;  %v6890_v15 = vrot.slane %v964_v1, %v6369_v36  ;;  %v1033_v1 = vcombine.high %v6809_v2, %v6804_v50 }
 0x13d   : > { %v6851_v3 = vrot.slane %v1162_v18, %v6357_v21  ;;  %v1177_v62 = vrot.slane %v1163_v61, %v6357_v21  ;;  %5628 = vrot.lane.b32.xlu0 %v5627_v42, %s6242_s16  ;;  %v5632_v59 = vpack.i.bf16 %v6844_v19, %v6833_v10  ;;  %v9603_v18 = vcombine.low %v6605_v12, %v6608_v13 }
 0x13e   : > { %v6855_v60 = vpop.permute.xlu0 %1827  ;;  %v9605_v42 = vcombine.high %v6617_v17, %v6620_v24 }
 0x13f   : > { %9601 = vst [vmem:[#allocation17_spill] sm:$0xff] %v6855_v60  ;;  %v1179_v16 = vcombine.high %v6847_v46, %v6851_v3  ;;  %v1194_v26 = vcombine.low %v1161_v0, %v1177_v62  ;;  %v6860_v63 = vpop.permute.xlu1 %1831  ;;  %v6868_v61 = vrot.slane %v9603_v18, %v6369_v36  ;;  %v6887_v18 = vrot.slane %v965_v54, %v6369_v36 }
 0x140   : > { %9602 = vst [vmem:[#allocation18_spill] sm:$0xff] %v6860_v63  ;;  %v6879_v11 = vrot.slane %v9605_v42, %v6369_v36  ;;  %v9607_v54 = vcombine.low %v6578_v52, %v6572_v49 }
 0x141   : > { %5633 = vrot.lane.b32.xlu0 %v5632_v59, %s6244_s18  ;;  %v6873_v56 = vrot.slane %v1194_v26, %v6369_v36  ;;  %v6882_v34 = vrot.slane %v1179_v16, %v6369_v36  ;;  %v1262_v59 = vcombine.low %v1229_v58, %v1245_v20  ;;  %v1263_v26 = vcombine.high %v1229_v58, %v1245_v20 }
 0x142   : > { %v6884_v33 = vpop.permute.xlu0 %1835  ;;  %v9606_v16 = vcombine.high %v6578_v52, %v6572_v49  ;;  %v6912_v20 = vrot.slane %v9607_v54, %v6369_v36  ;;  %v1016_v58 = vcombine.low %v6767_v28, %v6770_v22  ;;  %v9609_v28 = vcombine.low %v6637_v43, %v6640_v45 }
 0x143   : > { %9604 = vst [vmem:[#allocation19_spill] sm:$0xff] %v6873_v56  ;;  %v6892_v39 = vpop.permute.xlu1 %2288  ;;  %v5657_v63 = vpack.i.bf16 %v6873_v56, %v6868_v61  ;;  %v5637_v42 = vpack.i.bf16 %v6882_v34, %v6879_v11  ;;  %v6927_v49 = vrot.slane %v1263_v26, %v6369_v36  ;;  %v6930_v52 = vrot.slane %v1262_v59, %v6369_v36 }
 0x144   : > { %v6902_v60 = vrot.slane %v9606_v16, %v6369_v36  ;;  %v948_v16 = vcombine.low %v6786_v38, %v6789_v47  ;;  %v9608_v38 = vcombine.high %v6637_v43, %v6640_v45  ;;  %v6944_v22 = vrot.slane %v9609_v28, %v6369_v36 }
 0x145   : > { %5658 = vrot.lane.b32.xlu0 %v5657_v63, %s6244_s18  ;;  %5638 = vrot.lane.b32.xlu1 %v5637_v42, %s6242_s16  ;;  %v1195_v63 = vcombine.high %v1161_v0, %v1177_v62  ;;  %v5642_v42 = vpack.i.bf16 %v6912_v20, %v6890_v15  ;;  %v6947_v0 = vrot.slane %v1033_v1, %v6369_v36 }
 0x146   : > { %v6918_v56 = vpop.permute.xlu0 %2292  ;;  %v5662_v50 = vpack.i.bf16 %v6902_v60, %v6887_v18  ;;  %v6938_v47 = vrot.slane %v9608_v38, %v6369_v36  ;;  %v1246_v62 = vcombine.low %v6812_v6, %v6815_v40  ;;  %v6954_v26 = vrot.slane %v948_v16, %v6369_v36 }
 0x147   : > { %v6922_v2 = vpop.permute.xlu1 %2296  ;;  %v6957_v54 = vrot.slane %v1016_v58, %v6369_v36  ;;  %v5647_v1 = vpack.i.bf16 %v6930_v52, %v6944_v22  ;;  %v6968_v6 = vrot.slane %v1195_v63, %v6369_v36  ;;  %v9571_v40 = vmov 0  }
 0x148   : > { %9610 = vst [vmem:[#allocation20_spill] sm:$0xff] %v6954_v26  ;;  %v5667_v45 = vpack.i.bf16 %v6927_v49, %v6938_v47  ;;  %5897 = vset.pattern.permute.xlu1 %v9571_v40  ;;  %v9612_v58 = vcombine.high %v6569_v48, %v6558_v44  ;;  %5898 = vset.pattern.permute.xlu0 %v9571_v40 }
 0x149   : > { %5663 = vrot.lane.b32.xlu0 %v5662_v50, %s6246_s20  ;;  %5643 = vrot.lane.b32.xlu1 %v5642_v42, %s6244_s18  ;;  %9611 = vst [vmem:[#allocation21_spill] sm:$0xff] %v6957_v54  ;;  %v1178_v50 = vcombine.low %v6847_v46, %v6851_v3  ;;  %v9613_v46 = vcombine.high %v6605_v12, %v6608_v13  ;;  %v9618_v12 = vmov 0.0  }
 0x14a   : > { %v6951_v59 = vpop.permute.xlu0 %2300  ;;  %v6975_v16 = vrot.slane %v9612_v58, %v6369_v36  ;;  %v9614_v63 = vcombine.low %v6552_v31, %v6547_v30  ;;  %v9616_v44 = vcombine.low %v6544_v29, %v6535_v25  ;;  %v1048_v13 = vcombine.high %v6957_v54, %v9618_v12 }
 0x14b   : > { %v6961_v43 = vpop.permute.xlu1 %1821  ;;  %v6984_v3 = vrot.slane %v9613_v46, %v6369_v36  ;;  %v980_v31 = vcombine.high %v6954_v26, %v9618_v12  ;;  %v7011_v25 = vrot.slane %v1246_v62, %v6369_v36  ;;  %v7014_v29 = vrot.slane %v1178_v50, %v6369_v36 }
 0x14c   : > { %v6990_v42 = vrot.slane %v9614_v63, %v6369_v36  ;;  %v6996_v48 = vrot.slane %v9616_v44, %v6369_v36  ;;  %v5652_v28 = vpack.i.bf16 %v6975_v16, %v6947_v0  ;;  %v9623_v50 = vcombine.low %v6617_v17, %v6620_v24 }
 0x14d   : > { %5668 = vrot.lane.b32.xlu0 %v5667_v45, %s6246_s20  ;;  %5648 = vrot.lane.b32.xlu1 %v5647_v1, %s6244_s18  ;;  %v5672_v30 = vpack.i.bf16 %v6968_v6, %v6984_v3  ;;  %9619 = vst [vmem:[#allocation24_spill] sm:$0xff] %v7011_v25  ;;  %9620 = vst [vmem:[#allocation25_spill] sm:$0xff] %v7014_v29  ;;  %v9621_v1 = vcombine.low %v6595_v5, %v6598_v7 }
 0x14e   : > { %9615 = vst [vmem:[#allocation22_spill] sm:$0xff] %v6990_v42  ;;  %9617 = vst [vmem:[#allocation23_spill] sm:$0xff] %v6996_v48  ;;  %v6998_v38 = vpop.permute.xlu0 %1825  ;;  %v1449_v46 = vcombine.high %v6990_v42, %v9618_v12  ;;  %v1517_v62 = vcombine.high %v6996_v48, %v9618_v12  ;;  %v7032_v63 = vrot.slane %v9623_v50, %v6369_v36 }
 0x14f   : > { %v7004_v45 = vpop.permute.xlu1 %1829  ;;  %v7020_v58 = vrot.slane %v9621_v1, %v6369_v36  ;;  %v1210_v1 = vcombine.high %v7014_v29, %v9618_v12  ;;  %v2149_v40 = vcombine.high %v6670_v14, %v6683_v35  ;;  %v1211_v29 = vcombine.high %v6882_v34, %v9618_v12 }
 0x150   : > { %9624 = vst [vmem:[#allocation27_spill] sm:$0xff] %v7032_v63  ;;  %v5682_v7 = vpack.i.bf16 %v1449_v46, %v980_v31  ;;  %v746_v24 = vcombine.high %v7032_v63, %v9618_v12  ;;  %v2096_v63 = vcombine.low %v6711_v9, %v6722_v53  ;;  %v7171_v34 = vcombine.high %v6938_v47, %v9618_v12 }
 0x151   : > { %9622 = vst [vmem:[#allocation26_spill] sm:$0xff] %v7020_v58  ;;  %5673 = vrot.lane.b32.xlu0 %v5672_v30, %s6246_s20  ;;  %5653 = vrot.lane.b32.xlu1 %v5652_v28, %s6246_s20  ;;  %v5677_v30 = vpack.i.bf16 %v1517_v62, %v1048_v13  ;;  %v1278_v28 = vcombine.high %v7011_v25, %v9618_v12 }
 0x152   : > { %v7034_v44 = vpop.permute.xlu0 %1833  ;;  %v814_v17 = vcombine.high %v7020_v58, %v9618_v12  ;;  %v5697_v46 = vpack.i.bf16 %v1210_v1, %v746_v24  ;;  %v1049_v62 = vcombine.high %v6775_v4, %v9618_v12  ;;  %v1450_v4 = vcombine.high %v6801_v55, %v9618_v12 }
 0x153   : > { %v7036_v5 = vpop.permute.xlu1 %2286  ;;  %v2165_v1 = vcombine.high %v6679_v8, %v6690_v41  ;;  %v1280_v55 = vcombine.high %v6930_v52, %v9618_v12  ;;  %v7152_v58 = vcombine.high %v6927_v49, %v9618_v12  ;;  %v7162_v25 = vcombine.high %v6984_v3, %v9618_v12 }
 0x154   : > { %v5687_v13 = vpack.i.bf16 %v1278_v28, %v814_v17  ;;  %v1518_v28 = vcombine.high %v6781_v32, %v9618_v12  ;;  %v1279_v32 = vcombine.high %v6829_v27, %v9618_v12  ;;  %v816_v27 = vcombine.high %v6944_v22, %v9618_v12 }
 0x155   : > { %5683 = vrot.lane.b32.xlu0 %v5682_v7, %s6241_s24  ;;  %5678 = vrot.lane.b32.xlu1 %v5677_v30, %s6241_s24  ;;  %v981_v7 = vcombine.high %v6795_v37, %v9618_v12  ;;  %v2148_v30 = vcombine.low %v6670_v14, %v6683_v35  ;;  %v2164_v37 = vcombine.low %v6679_v8, %v6690_v41 }
 0x156   : > { %v7048_v50 = vpop.permute.xlu0 %2290  ;;  %v2080_v14 = vcombine.low %v6702_v51, %v6715_v57  ;;  %v5692_v24 = vpack.i.bf16 %v1518_v28, %v1049_v62  ;;  %v7086_v8 = vrot.slane %v2149_v40, %v6357_v21  ;;  %v7089_v41 = vrot.slane %v2096_v63, %v6357_v21 }
 0x157   : > { %v7050_v31 = vpop.permute.xlu1 %2294  ;;  %v815_v62 = vcombine.high %v6826_v23, %v9618_v12  ;;  %v7098_v52 = vrot.slane %v2164_v37, %v6357_v21  ;;  %v1051_v37 = vcombine.high %v6947_v0, %v9618_v12  ;;  %v7130_v0 = vcombine.high %v6912_v20, %v9618_v12 }
 0x158   : > { %v7110_v28 = vrot.slane %v2080_v14, %v6357_v21  ;;  %v9625_v14 = vld [vmem:[#allocation17_spill] sm:$0xff] }
 0x159   : > { %5688 = vrot.lane.b32.xlu0 %v5687_v13, %s6241_s24  ;;  %5698 = vrot.lane.b32.xlu1 %v5697_v46, %s6241_s24  ;;  %v5702_v13 = vpack.i.bf16 %v1450_v4, %v981_v7  ;;  %v7083_v46 = vrot.slane %v2148_v30, %v6357_v21  ;;  %v7101_v7 = vrot.slane %v2165_v1, %v6357_v21 }
 0x15a   : > { %v7074_v35 = vpop.permute.xlu0 %2298  ;;  %v1050_v30 = vcombine.high %v6833_v10, %v9618_v12  ;;  %v5707_v22 = vpack.i.bf16 %v1279_v32, %v815_v62  ;;  %v5727_v4 = vpack.i.bf16 %v1280_v55, %v816_v27  ;;  %v1519_v1 = vcombine.high %v6844_v19, %v9618_v12  ;;  %v9626_v62 = vld [vmem:[#allocation18_spill] sm:$0xff]  ;;  %v9627_v27 = vld [vmem:[#allocation16_spill] sm:$0xff] }
 0x15b   : > { %v7076_v17 = vpop.permute.xlu1 %1593  ;;  %v748_v10 = vcombine.high %v6868_v61, %v9618_v12  ;;  %v1929_v40 = vcombine.low %v9625_v14, %v6884_v33  ;;  %v2113_v19 = vcombine.high %v7110_v28, %v7089_v41  ;;  %v982_v32 = vcombine.high %v6890_v15, %v9618_v12 }
 0x15c   : > { %v5712_v61 = vpack.i.bf16 %v1519_v1, %v1050_v30  ;;  %v7142_v55 = vcombine.high %v6887_v18, %v9618_v12  ;;  %v1913_v20 = vcombine.low %v9627_v27, %v9626_v62  ;;  %v2378_v15 = vcombine.low %v6892_v39, %v6922_v2  ;;  %v9628_v30 = vld [vmem:[#allocation19_spill] sm:$0xff] }
 0x15d   : > { %5693 = vrot.lane.b32.xlu0 %v5692_v24, %s6243_s17  ;;  %5703 = vrot.lane.b32.xlu1 %v5702_v13, %s6243_s17  ;;  %v1520_v24 = vcombine.high %v6975_v16, %v9618_v12  ;;  %v747_v13 = vcombine.high %v6879_v11, %v9618_v12  ;;  %v2394_v11 = vcombine.low %v6918_v56, %v6951_v59 }
 0x15e   : > { %v7105_v63 = vpop.permute.xlu0 %1597  ;;  %v1212_v18 = vcombine.high %v9628_v30, %v9618_v12  ;;  %v1452_v1 = vcombine.high %v6902_v60, %v9618_v12  ;;  %v7174_v49 = vrot.slane %v2113_v19, %v6369_v36  ;;  %v5722_v3 = vpack.i.bf16 %v7130_v0, %v982_v32 }
 0x15f   : > { %v7112_v23 = vpop.permute.xlu1 %1601  ;;  %v7177_v60 = vrot.slane %v2394_v11, %v6357_v21  ;;  %v7186_v47 = vrot.slane %v1913_v20, %v6357_v21  ;;  %v2327_v19 = vcombine.high %v7048_v50, %v7074_v35  ;;  %v5717_v11 = vpack.i.bf16 %v1211_v29, %v747_v13 }
 0x160   : > { %v5747_v30 = vpack.i.bf16 %v7152_v58, %v7171_v34  ;;  %v7195_v0 = vrot.slane %v2378_v15, %v6357_v21  ;;  %v1862_v32 = vcombine.high %v6998_v38, %v7034_v44  ;;  %v2311_v29 = vcombine.high %v7036_v5, %v7050_v31 }
 0x161   : > { %5708 = vrot.lane.b32.xlu0 %v5707_v22, %s6243_s17  ;;  %5728 = vrot.lane.b32.xlu1 %v5727_v4, %s6245_s19  ;;  %v5732_v4 = vpack.i.bf16 %v1520_v24, %v1051_v37  ;;  %v7165_v37 = vrot.slane %v1929_v40, %v6357_v21  ;;  %v5742_v40 = vpack.i.bf16 %v1452_v1, %v7142_v55 }
 0x162   : > { %v7136_v16 = vpop.permute.xlu0 %1605  ;;  %v5737_v55 = vpack.i.bf16 %v1212_v18, %v748_v10  ;;  %v2310_v13 = vcombine.low %v7036_v5, %v7050_v31  ;;  %v1846_v18 = vcombine.high %v6961_v43, %v7004_v45  ;;  %v7225_v34 = vrot.slane %v2327_v19, %v6357_v21 }
 0x163   : > { %v7146_v22 = vpop.permute.xlu1 %1591  ;;  %v1946_v1 = vcombine.high %v7186_v47, %v7165_v37  ;;  %v7235_v5 = vrot.slane %v1862_v32, %v6357_v21  ;;  %v1699_v31 = vcombine.low %v7105_v63, %v7136_v16  ;;  %v7245_v19 = vrot.slane %v2311_v29, %v6357_v21 }
 0x164   : > { %v7262_v32 = vrot.slane %v2310_v13, %v6357_v21  ;;  %v2379_v13 = vcombine.high %v6892_v39, %v6922_v2 }
 0x165   : > { %5713 = vrot.lane.b32.xlu0 %v5712_v61, %s6245_s19  ;;  %5733 = vrot.lane.b32.xlu1 %v5732_v4, %s6247_s21  ;;  %v1213_v61 = vcombine.high %v6968_v6, %v9618_v12  ;;  %v2326_v6 = vcombine.low %v7048_v50, %v7074_v35  ;;  %v2411_v50 = vcombine.high %v7195_v0, %v7177_v60 }
 0x166   : > { %v7179_v24 = vpop.permute.xlu0 %1595  ;;  %v1861_v35 = vcombine.low %v6998_v38, %v7034_v44  ;;  %v1845_v44 = vcombine.low %v6961_v43, %v7004_v45  ;;  %v2393_v26 = vrot.slane %v2379_v13, %v6357_v21  ;;  %v2181_v13 = vcombine.high %v7083_v46, %v7098_v52 }
 0x167   : > { %v7190_v4 = vpop.permute.xlu1 %1599  ;;  %v5752_v15 = vpack.i.bf16 %v1213_v61, %v7162_v25  ;;  %v7238_v25 = vrot.slane %v2326_v6, %v6357_v21  ;;  %v1683_v6 = vcombine.low %v7076_v17, %v7112_v23 }
 0x168   : > { %v1615_v58 = vcombine.low %v7146_v22, %v7190_v4 }
 0x169   : > { %5718 = vrot.lane.b32.xlu0 %v5717_v11, %s6243_s17  ;;  %5738 = vrot.lane.b32.xlu1 %v5737_v55, %s6245_s19  ;;  %v1700_v11 = vcombine.high %v7105_v63, %v7136_v16  ;;  %v1684_v55 = vcombine.high %v7076_v17, %v7112_v23  ;;  %v2395_v63 = vcombine.high %v6918_v56, %v6951_v59 }
 0x16a   : > { %v7219_v10 = vpop.permute.xlu0 %1603  ;;  %v7250_v43 = vrot.slane %v1615_v58, %v6357_v21  ;;  %v7259_v16 = vrot.slane %v1861_v35, %v6357_v21  ;;  %v2358_v56 = vcombine.low %v7245_v19, %v7225_v34  ;;  %v7280_v17 = vrot.slane %v1845_v44, %v6357_v21 }
 0x16b   : > { %v1631_v38 = vcombine.low %v7179_v24, %v7219_v10  ;;  %v7242_v61 = vpop.permute.xlu1 %2518  ;;  %v7275_v59 = vrot.slane %v1700_v11, %v6357_v21  ;;  %v2343_v23 = vcombine.high %v7262_v32, %v7238_v25  ;;  %v7288_v35 = vrot.slane %v2411_v50, %v6369_v36 }
 0x16c   : > { %v1698_v11 = vrot.slane %v1684_v55, %v6357_v21  ;;  %v1914_v50 = vcombine.high %v9627_v27, %v9626_v62  ;;  %v1878_v44 = vcombine.high %v7280_v17, %v7259_v16  ;;  %v2409_v55 = vrot.slane %v2395_v63, %v6357_v21 }
 0x16d   : > { %v7253_v45 = vrot.slane %v1631_v38, %v6357_v21  ;;  %5723 = vrot.lane.b32.xlu0 %v5722_v3, %s6245_s19  ;;  %5743 = vrot.lane.b32.xlu1 %v5742_v40, %s6247_s21  ;;  %v7270_v3 = vrot.slane %v1846_v18, %v6357_v21  ;;  %v7285_v40 = vrot.slane %v1699_v31, %v6357_v21 }
 0x16e   : > { %v7267_v29 = vpop.permute.xlu0 %2522  ;;  %v7309_v31 = vrot.slane %v1683_v6, %v6357_v21  ;;  %v1731_v62 = vcombine.low %v1698_v11, %v7275_v59  ;;  %v7333_v20 = vrot.slane %v2343_v23, %v6369_v36  ;;  %v9629_v63 = vcombine.high %v9625_v14, %v6884_v33 }
 0x16f   : > { %v1648_v58 = vcombine.high %v7250_v43, %v7253_v45  ;;  %v1893_v18 = vcombine.low %v7270_v3, %v7235_v5  ;;  %v7311_v39 = vpop.permute.xlu1 %2526  ;;  %v1616_v23 = vcombine.high %v7146_v22, %v7190_v4  ;;  %v7354_v14 = vrot.slane %v1878_v44, %v6369_v36 }
 0x170   : > { %v1716_v6 = vcombine.high %v7309_v31, %v7285_v40 }
 0x171   : > { %5753 = vrot.lane.b32.xlu0 %v5752_v15, %s6247_s21  ;;  %v7302_v38 = vrot.slane %v1648_v58, %v6369_v36  ;;  %5748 = vrot.lane.b32.xlu1 %v5747_v30, %s6247_s21  ;;  %v7317_v15 = vrot.slane %v1946_v1, %v6369_v36  ;;  %v7321_v58 = vrot.slane %v2358_v56, %v6369_v36 }
 0x172   : > { %v7314_v2 = vpop.permute.xlu0 %2530  ;;  %v1632_v30 = vcombine.high %v7179_v24, %v7219_v10  ;;  %v1944_v56 = vrot.slane %v9629_v63, %v6357_v21  ;;  %v7341_v42 = vrot.slane %v1893_v18, %v6369_v36  ;;  %v2196_v24 = vcombine.low %v7086_v8, %v7101_v7 }
 0x173   : > { %v5777_v27 = vpack.i.bf16 %v7174_v49, %v7302_v38  ;;  %v5757_v1 = vpack.i.bf16 %v7288_v35, %v7317_v15  ;;  %v2097_v10 = vcombine.high %v6711_v9, %v6722_v53  ;;  %v1928_v18 = vrot.slane %v1914_v50, %v6357_v21  ;;  %v7368_v44 = vpop.permute.xlu1 %2516 }
 0x174   : > { %v7360_v63 = vrot.slane %v1731_v62, %v6369_v36  ;;  %v5782_v9 = vpack.i.bf16 %v7321_v58, %v7341_v42  ;;  %v2426_v53 = vcombine.low %v2393_v26, %v2409_v55  ;;  %v7365_v22 = vrot.slane %v1716_v6, %v6369_v36 }
 0x175   : > { %5778 = vrot.lane.b32.xlu0 %v5777_v27, %s6242_s16  ;;  %5758 = vrot.lane.b32.xlu1 %v5757_v1, %s6242_s16  ;;  %v2427_v27 = vcombine.high %v2393_v26, %v2409_v55  ;;  %v1646_v4 = vrot.slane %v1632_v30, %v6357_v21  ;;  %v5762_v1 = vpack.i.bf16 %v7333_v20, %v7354_v14 }
 0x176   : > { %v7351_v33 = vpop.permute.xlu0 %2520  ;;  %v1962_v54 = vcombine.high %v1928_v18, %v1944_v56  ;;  %v7374_v50 = vrot.slane %v2196_v24, %v6369_v36  ;;  %v2111_v62 = vrot.slane %v2097_v10, %v6357_v21  ;;  %v1961_v48 = vcombine.low %v1928_v18, %v1944_v56 }
 0x177   : > { %v1630_v26 = vrot.slane %v1616_v23, %v6357_v21  ;;  %v7380_v55 = vrot.slane %v2181_v13, %v6369_v36  ;;  %v1732_v6 = vcombine.high %v1698_v11, %v7275_v59  ;;  %v9630_v24 = vcombine.high %v6702_v51, %v6715_v57 }
 0x178   : > { %v5787_v30 = vpack.i.bf16 %v7374_v50, %v7360_v63  ;;  %v7397_v18 = vrot.slane %v2426_v53, %v6369_v36  ;;  %v7401_v59 = vrot.slane %v1962_v54, %v6369_v36  ;;  %v2197_v11 = vcombine.high %v7086_v8, %v7101_v7 }
 0x179   : > { %5783 = vrot.lane.b32.xlu0 %v5782_v9, %s6244_s18  ;;  %5763 = vrot.lane.b32.xlu1 %v5762_v1, %s6242_s16  ;;  %v7386_v9 = vrot.slane %v2427_v27, %v6369_v36  ;;  %v2095_v56 = vrot.slane %v9630_v24, %v6357_v21  ;;  %v1663_v10 = vcombine.low %v1630_v26, %v1646_v4  ;;  %v7405_v27 = vpop.permute.xlu1 %2524 }
 0x17a   : > { %v7392_v23 = vpop.permute.xlu0 %2528  ;;  %v5767_v13 = vpack.i.bf16 %v7380_v55, %v7365_v22  ;;  %v7409_v51 = vrot.slane %v1961_v48, %v6369_v36  ;;  %v7412_v1 = vrot.slane %v1732_v6, %v6369_v36  ;;  %v1664_v53 = vcombine.high %v1630_v26, %v1646_v4 }
 0x17b   : > { %v2128_v57 = vcombine.low %v2095_v56, %v2111_v62  ;;  %v5792_v54 = vpack.i.bf16 %v7386_v9, %v7401_v59  ;;  %v2359_v8 = vcombine.high %v7245_v19, %v7225_v34  ;;  %v7421_v7 = vrot.slane %v1663_v10, %v6369_v36 }
 0x17c   : > { %v2624_v48 = vcombine.low %v7267_v29, %v7314_v2  ;;  %v5772_v6 = vpack.i.bf16 %v7397_v18, %v7409_v51  ;;  %v2540_v4 = vcombine.low %v7368_v44, %v7405_v27  ;;  %v7431_v26 = vrot.slane %v2197_v11, %v6369_v36 }
 0x17d   : > { %5788 = vrot.lane.b32.xlu0 %v5787_v30, %s6244_s18  ;;  %5768 = vrot.lane.b32.xlu1 %v5767_v13, %s6242_s16  ;;  %v2556_v30 = vcombine.low %v7351_v33, %v7392_v23  ;;  %v2129_v24 = vcombine.high %v2095_v56, %v2111_v62  ;;  %v1894_v34 = vcombine.high %v7270_v3, %v7235_v5 }
 0x17e   : > { %v2608_v19 = vcombine.low %v7242_v61, %v7311_v39  ;;  %v7439_v10 = vrot.slane %v2128_v57, %v6369_v36  ;;  %v2342_v13 = vcombine.low %v7262_v32, %v7238_v25  ;;  %v5807_v5 = vpack.i.bf16 %v7431_v26, %v7412_v1 }
 0x17f   : > { %v7447_v11 = vrot.slane %v2556_v30, %v6357_v21  ;;  %v2410_v3 = vcombine.low %v7195_v0, %v7177_v60  ;;  %v7454_v62 = vrot.slane %v2359_v8, %v6369_v36  ;;  %v7457_v56 = vrot.slane %v2624_v48, %v6357_v21 }
 0x180   : > { %v5797_v25 = vpack.i.bf16 %v7439_v10, %v7421_v7  ;;  %v1877_v32 = vcombine.low %v7280_v17, %v7259_v16  ;;  %v7464_v57 = vrot.slane %v2540_v4, %v6357_v21  ;;  %v1945_v60 = vcombine.low %v7186_v47, %v7165_v37 }
 0x181   : > { %5793 = vrot.lane.b32.xlu0 %v5792_v54, %s6246_s20  ;;  %5773 = vrot.lane.b32.xlu1 %v5772_v6, %s6244_s18  ;;  %v7444_v54 = vrot.slane %v1664_v53, %v6369_v36  ;;  %v7468_v53 = vrot.slane %v2129_v24, %v6369_v36  ;;  %v7473_v0 = vrot.slane %v1894_v34, %v6369_v36 }
 0x182   : > { %v7476_v30 = vrot.slane %v2608_v19, %v6357_v21  ;;  %v7480_v16 = vrot.slane %v2342_v13, %v6369_v36  ;;  %v1715_v17 = vcombine.low %v7309_v31, %v7285_v40  ;;  %v2573_v8 = vcombine.high %v7464_v57, %v7447_v11 }
 0x183   : > { %v5812_v37 = vpack.i.bf16 %v7468_v53, %v7444_v54  ;;  %v7489_v47 = vrot.slane %v2410_v3, %v6369_v36  ;;  %v5802_v6 = vpack.i.bf16 %v7454_v62, %v7473_v0  ;;  %v2180_v4 = vcombine.low %v7083_v46, %v7098_v52 }
 0x184   : > { %v2641_v48 = vcombine.high %v7476_v30, %v7457_v56  ;;  %v7498_v40 = vrot.slane %v1877_v32, %v6369_v36  ;;  %v7502_v31 = vrot.slane %v1945_v60, %v6369_v36  ;;  %v7506_v24 = vrot.slane %v1715_v17, %v6369_v36 }
 0x185   : > { %5808 = vrot.lane.b32.xlu0 %v5807_v5, %s6246_s20  ;;  %5798 = vrot.lane.b32.xlu1 %v5797_v25, %s6244_s18  ;;  %v7509_v34 = vrot.slane %v2573_v8, %v6369_v36  ;;  %v2374_v19 = vcombine.high %v7480_v16, %v9618_v12  ;;  %v2442_v52 = vcombine.high %v7489_v47, %v9618_v12 }
 0x186   : > { %v7514_v46 = vrot.slane %v2641_v48, %v6369_v36  ;;  %v1909_v13 = vcombine.high %v7498_v40, %v9618_v12  ;;  %v7523_v5 = vrot.slane %v2180_v4, %v6369_v36  ;;  %v1977_v3 = vcombine.high %v7502_v31, %v9618_v12 }
 0x187   : > { %v1647_v25 = vcombine.low %v7250_v43, %v7253_v45  ;;  %v1747_v60 = vcombine.high %v7506_v24, %v9618_v12  ;;  %v1748_v8 = vcombine.high %v7365_v22, %v9618_v12  ;;  %v2213_v43 = vcombine.high %v7380_v55, %v9618_v12 }
 0x188   : > { %v5822_v32 = vpack.i.bf16 %v2374_v19, %v1909_v13  ;;  %v5817_v17 = vpack.i.bf16 %v2442_v52, %v1977_v3  ;;  %v2212_v48 = vcombine.high %v7523_v5, %v9618_v12  ;;  %v1979_v55 = vcombine.high %v7409_v51, %v9618_v12 }
 0x189   : > { %5813 = vrot.lane.b32.xlu0 %v5812_v37, %s6246_s20  ;;  %5803 = vrot.lane.b32.xlu1 %v5802_v6, %s6246_s20  ;;  %v2112_v37 = vcombine.low %v7110_v28, %v7089_v41  ;;  %v7544_v45 = vrot.slane %v1647_v25, %v6369_v36  ;;  %v2443_v6 = vcombine.high %v7288_v35, %v9618_v12 }
 0x18a   : > { %v5827_v22 = vpack.i.bf16 %v2212_v48, %v1747_v60  ;;  %v5847_v4 = vpack.i.bf16 %v2213_v43, %v1748_v8  ;;  %v2444_v41 = vcombine.high %v7397_v18, %v9618_v12  ;;  %v1978_v28 = vcombine.high %v7317_v15, %v9618_v12 }
 0x18b   : > { %v7554_v19 = vrot.slane %v2112_v37, %v6369_v36  ;;  %v1679_v35 = vcombine.high %v7544_v45, %v9618_v12  ;;  %v1680_v18 = vcombine.high %v7302_v38, %v9618_v12  ;;  %v2145_v3 = vcombine.high %v7174_v49, %v9618_v12 }
 0x18c   : > { %v5832_v52 = vpack.i.bf16 %v2443_v6, %v1978_v28  ;;  %v5852_v13 = vpack.i.bf16 %v2444_v41, %v1979_v55  ;;  %v2375_v51 = vcombine.high %v7333_v20, %v9618_v12  ;;  %v2376_v60 = vcombine.high %v7321_v58, %v9618_v12 }
 0x18d   : > { %2681 = vrot.lane.b32.xlu0 %v7509_v34, %s6242_s16  ;;  %2709 = vrot.lane.b32.xlu1 %v7514_v46, %s6242_s16  ;;  %v2144_v15 = vcombine.high %v7554_v19, %v9618_v12  ;;  %v1910_v38 = vcombine.high %v7354_v14, %v9618_v12  ;;  %v1911_v49 = vcombine.high %v7341_v42, %v9618_v12 }
 0x18e   : > { %v1749_v8 = vcombine.high %v7360_v63, %v9618_v12  ;;  %v1681_v37 = vcombine.high %v7421_v7, %v9618_v12  ;;  %v2214_v58 = vcombine.high %v7374_v50, %v9618_v12  ;;  %v2146_v14 = vcombine.high %v7439_v10, %v9618_v12 }
 0x18f   : > { %v5837_v25 = vpack.i.bf16 %v2144_v15, %v1679_v35  ;;  %v5862_v20 = vpack.i.bf16 %v2376_v60, %v1911_v49  ;;  %v2445_v42 = vcombine.high %v7386_v9, %v9618_v12  ;;  %v2377_v63 = vcombine.high %v7454_v62, %v9618_v12 }
 0x190   : > { %v5867_v48 = vpack.i.bf16 %v2214_v58, %v1749_v8  ;;  %v5877_v43 = vpack.i.bf16 %v2146_v14, %v1681_v37  ;;  %v1980_v7 = vcombine.high %v7401_v59, %v9618_v12  ;;  %v1912_v50 = vcombine.high %v7473_v0, %v9618_v12 }
 0x191   : > { %5823 = vrot.lane.b32.xlu0 %v5822_v32, %s6241_s24  ;;  %5818 = vrot.lane.b32.xlu1 %v5817_v17, %s6241_s24  ;;  %v5857_v32 = vpack.i.bf16 %v2145_v3, %v1680_v18  ;;  %v5842_v17 = vpack.i.bf16 %v2375_v51, %v1910_v38  ;;  %v2572_v10 = vcombine.low %v7464_v57, %v7447_v11 }
 0x192   : > { %v5872_v6 = vpack.i.bf16 %v2445_v42, %v1980_v7  ;;  %v1682_v9 = vcombine.high %v7444_v54, %v9618_v12  ;;  %v2640_v62 = vcombine.low %v7476_v30, %v7457_v56  ;;  %v2147_v59 = vcombine.high %v7468_v53, %v9618_v12  ;;  %v9631_v42 = vld [vmem:[#allocation7_spill] sm:$0xff] }
 0x193   : > { %v2215_v11 = vcombine.high %v7431_v26, %v9618_v12  ;;  %v2557_v54 = vcombine.high %v7351_v33, %v7392_v23  ;;  %v7616_v57 = vrot.slane %v2572_v10, %v6369_v36  ;;  %v2541_v53 = vcombine.high %v7368_v44, %v7405_v27 }
 0x194   : > { %v5892_v56 = vpack.i.bf16 %v2147_v59, %v1682_v9  ;;  %v7621_v0 = vrot.slane %v2640_v62, %v6369_v36  ;;  %v2609_v26 = vcombine.high %v7242_v61, %v7311_v39  ;;  %v2673_v18 = vcombine.high %v7514_v46, %v9618_v12  ;;  %v2860_v9 = vld [vmem:[%s9554_s2] sm:$0xf] }
 0x195   : > { %5828 = vrot.lane.b32.xlu0 %v5827_v22, %s6241_s24  ;;  %5848 = vrot.lane.b32.xlu1 %v5847_v4, %s6243_s17  ;;  %v5882_v22 = vpack.i.bf16 %v2377_v63, %v1912_v50  ;;  %v1750_v4 = vcombine.high %v7412_v1, %v9618_v12  ;;  %v2625_v1 = vcombine.high %v7267_v29, %v7314_v2  ;;  %v2868_v50 = vld [vmem:[%s9555_s3] sm:$0xf] }
 0x196   : > { %v2571_v33 = vrot.slane %v2557_v54, %v6357_v21  ;;  %v2604_v29 = vcombine.high %v7616_v57, %v9618_v12  ;;  %v2672_v44 = vcombine.high %v7621_v0, %v9618_v12  ;;  %v2555_v27 = vrot.slane %v2541_v53, %v6357_v21 }
 0x197   : > { %v5887_v30 = vpack.i.bf16 %v2215_v11, %v1750_v4  ;;  %v2639_v2 = vrot.slane %v2625_v1, %v6357_v21  ;;  %v2623_v61 = vrot.slane %v2609_v26, %v6357_v21 }
 0x198   : > { %v2588_v39 = vcombine.low %v2555_v27, %v2571_v33 }
 0x199   : > { %5833 = vrot.lane.b32.xlu0 %v5832_v52, %s6243_s17  ;;  %5853 = vrot.lane.b32.xlu1 %v5852_v13, %s6245_s19  ;;  %v2605_v52 = vcombine.high %v7509_v34, %v9618_v12  ;;  %v2656_v35 = vcombine.low %v2623_v61, %v2639_v2  ;;  %v2589_v34 = vcombine.high %v2555_v27, %v2571_v33 }
 0x19a   : > { %v2596_v3 = vrot.slane %v2588_v39, %v6369_v36  ;;  %v2657_v60 = vcombine.high %v2623_v61, %v2639_v2 }
 0x19b   : > { %v2664_v51 = vrot.slane %v2656_v35, %v6369_v36  ;;  %v2603_v8 = vrot.slane %v2589_v34, %v6369_v36 }
 0x19d   : > { %5838 = vrot.lane.b32.xlu0 %v5837_v25, %s6241_s24  ;;  %5858 = vrot.lane.b32.xlu1 %v5857_v32, %s6243_s17  ;;  %v2606_v32 = vcombine.high %v2596_v3, %v9618_v12  ;;  %v2674_v38 = vcombine.high %v2664_v51, %v9618_v12  ;;  %v2607_v14 = vcombine.high %v2603_v8, %v9618_v12 }
 0x19f   : > { %v7630_v23 = vpop.permute.xlu1 %5618 }
 0x1a0   : > { %v5621_v59 = vunpack.i.h.bf16 %v7630_v23  ;;  %v5620_v11 = vunpack.i.l.bf16 %v7630_v23 }
 0x1a1   : > { %5843 = vrot.lane.b32.xlu0 %v5842_v17, %s6243_s17  ;;  %5863 = vrot.lane.b32.xlu1 %v5862_v20, %s6245_s19  ;;  %v2671_v20 = vrot.slane %v2657_v60, %v6369_v36 }
 0x1a5   : > { %5868 = vrot.lane.b32.xlu0 %v5867_v48, %s6245_s19  ;;  %5878 = vrot.lane.b32.xlu1 %v5877_v43, %s6245_s19  ;;  %v2675_v48 = vcombine.high %v2671_v20, %v9618_v12  ;;  %v9632_v43 = vld [vmem:[#allocation8_spill] sm:$0xff] }
 0x1a6   : > { %v9633_v63 = vcombine.high %v9631_v42, %v9632_v43  ;;  %v9640_v43 = vld [vmem:[#allocation26_spill] sm:$0xff] }
 0x1a7   : > { %v7643_v28 = vpop.permute.xlu1 %5623 }
 0x1a8   : > { %v508_v7 = vrot.slane %v9633_v63, %v6369_v36  ;;  %v5626_v54 = vunpack.i.h.bf16 %v7643_v28  ;;  %v9635_v63 = vld [vmem:[#allocation23_spill] sm:$0xff] }
 0x1a9   : > { %5873 = vrot.lane.b32.xlu0 %v5872_v6, %s6247_s21  ;;  %5883 = vrot.lane.b32.xlu1 %v5882_v22, %s6247_s21  ;;  %v9634_v22 = vld [vmem:[#allocation10_spill] sm:$0xff] }
 0x1aa   : > { %v512_v62 = vcombine.high %v508_v7, %v9618_v12  ;;  %v511_v4 = vcombine.high %v9634_v22, %v9618_v12 }
 0x1ad   : > { %5893 = vrot.lane.b32.xlu0 %v5892_v56, %s6247_s21  ;;  %5888 = vrot.lane.b32.xlu1 %v5887_v30, %s6247_s21  ;;  %v5625_v56 = vunpack.i.l.bf16 %v7643_v28 }
 0x1af   : > { %v7632_v41 = vpop.permute.xlu0 %5628 }
 0x1b0   : > { %v5631_v1 = vunpack.i.h.bf16 %v7632_v41  ;;  %v5630_v30 = vunpack.i.l.bf16 %v7632_v41 }
 0x1b1   : > { %2677 = vrot.lane.b32.xlu0 %v2604_v29, %s6241_s24  ;;  %2705 = vrot.lane.b32.xlu1 %v2672_v44, %s6241_s24 }
 0x1b3   : > { %v7645_v55 = vpop.permute.xlu0 %5633 }
 0x1b4   : > { %v5636_v33 = vunpack.i.h.bf16 %v7645_v55  ;;  %v5635_v29 = vunpack.i.l.bf16 %v7645_v55 }
 0x1b5   : > { %2685 = vrot.lane.b32.xlu0 %v2605_v52, %s6243_s17  ;;  %2713 = vrot.lane.b32.xlu1 %v2673_v18, %s6243_s17 }
 0x1b7   : > { %v7653_v13 = vpop.permute.xlu1 %5638  ;;  %v7655_v15 = vpop.permute.xlu0 %5658 }
 0x1b8   : > { %v5641_v12 = vunpack.i.h.bf16 %v7653_v13  ;;  %v5640_v2 = vunpack.i.l.bf16 %v7653_v13  ;;  %v5661_v23 = vunpack.i.h.bf16 %v7655_v15  ;;  %v5660_v44 = vunpack.i.l.bf16 %v7655_v15 }
 0x1b9   : > { %2689 = vrot.lane.b32.xlu0 %v2596_v3, %s6244_s18  ;;  %2717 = vrot.lane.b32.xlu1 %v2664_v51, %s6244_s18 }
 0x1bb   : > { %v7661_v25 = vpop.permute.xlu1 %5643  ;;  %v7663_v46 = vpop.permute.xlu0 %5663 }
 0x1bc   : > { %v5646_v27 = vunpack.i.h.bf16 %v7661_v25  ;;  %v5645_v61 = vunpack.i.l.bf16 %v7661_v25 }
 0x1bd   : > { %2693 = vrot.lane.b32.xlu0 %v2606_v32, %s6245_s19  ;;  %2721 = vrot.lane.b32.xlu1 %v2674_v38, %s6245_s19 }
 0x1bf   : > { %v7669_v49 = vpop.permute.xlu1 %5648  ;;  %v7671_v17 = vpop.permute.xlu0 %5668 }
 0x1c0   : > { %v5651_v60 = vunpack.i.h.bf16 %v7669_v49  ;;  %v5650_v38 = vunpack.i.l.bf16 %v7669_v49 }
 0x1c1   : > { %2697 = vrot.lane.b32.xlu0 %v2603_v8, %s6246_s20  ;;  %2725 = vrot.lane.b32.xlu1 %v2671_v20, %s6246_s20 }
 0x1c3   : > { %v7677_v37 = vpop.permute.xlu1 %5653  ;;  %v7679_v58 = vpop.permute.xlu0 %5673 }
 0x1c5   : > { %2701 = vrot.lane.b32.xlu0 %v2607_v14, %s6247_s21  ;;  %2729 = vrot.lane.b32.xlu1 %v2675_v48, %s6247_s21  ;;  %v5656_v14 = vunpack.i.h.bf16 %v7677_v37  ;;  %v5655_v48 = vunpack.i.l.bf16 %v7677_v37 }
 0x1c7   : > { %v5679_v10 = vpop.permute.xlu1 %5678  ;;  %v5684_v6 = vpop.permute.xlu0 %5683 }
 0x1c8   : > { %v5681_v28 = vunpack.i.h.bf16 %v5679_v10  ;;  %v5680_v52 = vunpack.i.l.bf16 %v5679_v10  ;;  %v5686_v35 = vunpack.i.h.bf16 %v5684_v6  ;;  %v5685_v18 = vunpack.i.l.bf16 %v5684_v6  ;;  %v9636_v10 = vld [vmem:[#allocation21_spill] sm:$0xff] }
 0x1c9   : > { %2871 = vperm.xlu0 %5898, %v2868_v50   ;;  %2863 = vperm.xlu1 %5897, %v2860_v9  }
 0x1ca   : > { %v1584_v50 = vsel %vm569_vm4, %v9635_v63, %v5681_v28  ;;  %v1115_v6 = vsel %vm569_vm4, %v9636_v10, %v5680_v52 }
 0x1cb   : > { %v5699_v53 = vpop.permute.xlu1 %5698  ;;  %v5689_v26 = vpop.permute.xlu0 %5688  ;;  %v1116_v20 = vsel %vm571_vm5, %v1115_v6, %v5620_v11  ;;  %v9641_v6 = vld [vmem:[#allocation25_spill] sm:$0xff] }
 0x1cc   : > { %v5691_v3 = vunpack.i.h.bf16 %v5689_v26  ;;  %v5690_v51 = vunpack.i.l.bf16 %v5689_v26  ;;  %v9639_v26 = vld [vmem:[#allocation24_spill] sm:$0xff]  ;;  %v5701_v39 = vunpack.i.h.bf16 %v5699_v53  ;;  %v5700_v52 = vunpack.i.l.bf16 %v5699_v53 }
 0x1cd   : > { %566 = vrot.lane.b32.xlu0 %v512_v62, %s6247_s21  ;;  %558 = vrot.lane.b32.xlu1 %v511_v4, %s6245_s19  ;;  %v9637_v62 = vld [vmem:[#allocation22_spill] sm:$0xff]  ;;  %v9638_v4 = vld [vmem:[#allocation20_spill] sm:$0xff] }
 0x1ce   : > { %v1577_v22 = vsel %vm569_vm4, %v9637_v62, %v5686_v35  ;;  %v1108_v37 = vsel %vm569_vm4, %v9638_v4, %v5685_v18  ;;  %v1345_v42 = vsel %vm569_vm4, %v9639_v26, %v5691_v3  ;;  %v881_v41 = vsel %vm569_vm4, %v9640_v43, %v5690_v51 }
 0x1cf   : > { %v5704_v34 = vpop.permute.xlu1 %5703  ;;  %v5694_v32 = vpop.permute.xlu0 %5693  ;;  %v1585_v35 = vsel %vm571_vm5, %v1584_v50, %v5621_v59  ;;  %v882_v3 = vsel %vm571_vm5, %v881_v41, %v5630_v30  ;;  %v1346_v51 = vsel %vm571_vm5, %v1345_v42, %v5631_v1  ;;  %v1109_v43 = vsel %vm571_vm5, %v1108_v37, %v5625_v56  ;;  %v9642_v50 = vld [vmem:[#allocation27_spill] sm:$0xff] }
 0x1d0   : > { %v5696_v9 = vunpack.i.h.bf16 %v5694_v32  ;;  %v5695_v49 = vunpack.i.l.bf16 %v5694_v32  ;;  %v5706_v8 = vunpack.i.h.bf16 %v5704_v34  ;;  %v1578_v53 = vsel %vm571_vm5, %v1577_v22, %v5626_v54 }
 0x1d1   : > { %562 = vrot.lane.b32.xlu1 %v508_v7, %s6246_s20  ;;  %v5705_v7 = vunpack.i.l.bf16 %v5704_v34  ;;  %v1338_v59 = vsel %vm569_vm4, %v9641_v6, %v5701_v39 }
 0x1d2   : > { %v1586_v18 = vsel %vm573_vm6, %v1585_v35, %v5696_v9  ;;  %v1117_v62 = vsel %vm573_vm6, %v1116_v20, %v5695_v49  ;;  %v874_v20 = vsel %vm569_vm4, %v9642_v50, %v5700_v52  ;;  %v1579_v56 = vsel %vm573_vm6, %v1578_v53, %v5706_v8 }
 0x1d3   : > { %v5729_v28 = vpop.permute.xlu1 %5728  ;;  %v5709_v63 = vpop.permute.xlu0 %5708  ;;  %v1110_v1 = vsel %vm573_vm6, %v1109_v43, %v5705_v7  ;;  %v1118_v54 = vsel %vm575_vm7, %v1117_v62, %v5635_v29  ;;  %v1587_v41 = vsel %vm575_vm7, %v1586_v18, %v5636_v33  ;;  %v875_v8 = vsel %vm571_vm5, %v874_v20, %v5640_v2 }
 0x1d4   : > { %v5711_v10 = vunpack.i.h.bf16 %v5709_v63  ;;  %v5710_v32 = vunpack.i.l.bf16 %v5709_v63  ;;  %v5731_v37 = vunpack.i.h.bf16 %v5729_v28  ;;  %v5730_v63 = vunpack.i.l.bf16 %v5729_v28 }
 0x1d5   : > { %v1339_v55 = vsel %vm571_vm5, %v1338_v59, %v5641_v12  ;;  %v1580_v28 = vsel %vm575_vm7, %v1579_v56, %v5646_v27  ;;  %v9645_v20 = vunpack.i.l.bf16 %v7663_v46 }
 0x1d6   : > { %v883_v4 = vsel %vm573_vm6, %v882_v3, %v5710_v32  ;;  %v1347_v34 = vsel %vm573_vm6, %v1346_v51, %v5711_v10 }
 0x1d7   : > { %v5734_v26 = vpop.permute.xlu1 %5733  ;;  %v5714_v11 = vpop.permute.xlu0 %5713  ;;  %v884_v42 = vsel %vm575_vm7, %v883_v4, %v5650_v38  ;;  %v1348_v39 = vsel %vm575_vm7, %v1347_v34, %v5651_v60  ;;  %v1111_v60 = vsel %vm575_vm7, %v1110_v1, %v5645_v61  ;;  %v9643_v4 = vunpack.i.l.bf16 %v7671_v17 }
 0x1d8   : > { %v5716_v9 = vunpack.i.h.bf16 %v5714_v11  ;;  %v5715_v30 = vunpack.i.l.bf16 %v5714_v11  ;;  %v885_v10 = vsel %vm577_vm8, %v884_v42, %v5730_v63  ;;  %v1349_v13 = vsel %vm577_vm8, %v1348_v39, %v5731_v37 }
 0x1d9   : > { %v5736_v61 = vunpack.i.h.bf16 %v5734_v26  ;;  %v5735_v62 = vunpack.i.l.bf16 %v5734_v26  ;;  %v886_v34 = vsel %vm579_vm9, %v885_v10, %v9643_v4 }
 0x1da   : > { %v1119_v49 = vsel %vm577_vm8, %v1118_v54, %v5715_v30  ;;  %v1588_v22 = vsel %vm577_vm8, %v1587_v41, %v5716_v9  ;;  %v9646_v30 = vunpack.i.h.bf16 %v7663_v46  ;;  %v9648_v41 = vunpack.i.h.bf16 %v7679_v58 }
 0x1db   : > { %v5719_v29 = vpop.permute.xlu0 %5718  ;;  %v5739_v33 = vpop.permute.xlu1 %5738  ;;  %v1120_v2 = vsel %vm579_vm9, %v1119_v49, %v5655_v48  ;;  %v1589_v12 = vsel %vm579_vm9, %v1588_v22, %v5656_v14 }
 0x1dc   : > { %v5721_v52 = vunpack.i.h.bf16 %v5719_v29  ;;  %v5720_v38 = vunpack.i.l.bf16 %v5719_v29  ;;  %v5741_v32 = vunpack.i.h.bf16 %v5739_v33  ;;  %v5740_v7 = vunpack.i.l.bf16 %v5739_v33 }
 0x1dd   : > { %v1121_v26 = vsel %vm581_vm10, %v1120_v2, %v5735_v62 }
 0x1de   : > { %v1340_v35 = vsel %vm573_vm6, %v1339_v55, %v5721_v52  ;;  %v876_v18 = vsel %vm573_vm6, %v875_v8, %v5720_v38  ;;  %v2749_v33 = vrot.slane %v1121_v26, 4 }
 0x1df   : > { %v877_v25 = vsel %vm575_vm7, %v876_v18, %v5660_v44  ;;  %v1341_v27 = vsel %vm575_vm7, %v1340_v35, %v5661_v23  ;;  %v5724_v48 = vpop.permute.xlu0 %5723  ;;  %v5744_v3 = vpop.permute.xlu1 %5743  ;;  %v9644_v44 = vunpack.i.h.bf16 %v7671_v17  ;;  %v1590_v23 = vsel %vm581_vm10, %v1589_v12, %v5736_v61 }
 0x1e0   : > { %v5726_v51 = vunpack.i.h.bf16 %v5724_v48  ;;  %v5725_v14 = vunpack.i.l.bf16 %v5724_v48  ;;  %v878_v43 = vsel %vm577_vm8, %v877_v25, %v5740_v7  ;;  %v1342_v53 = vsel %vm577_vm8, %v1341_v27, %v5741_v32 }
 0x1e1   : > { %v1350_v15 = vsel %vm579_vm9, %v1349_v13, %v9644_v44  ;;  %v5746_v11 = vunpack.i.h.bf16 %v5744_v3  ;;  %v5745_v6 = vunpack.i.l.bf16 %v5744_v3  ;;  %v9647_v17 = vunpack.i.l.bf16 %v7679_v58 }
 0x1e2   : > { %v1112_v59 = vsel %vm577_vm8, %v1111_v60, %v5725_v14  ;;  %v1581_v50 = vsel %vm577_vm8, %v1580_v28, %v5726_v51  ;;  %v1343_v42 = vsel %vm579_vm9, %v1342_v53, %v9648_v41  ;;  %v2755_v52 = vrot.slane %v1590_v23, 4 }
 0x1e3   : > { %v1113_v9 = vsel %vm579_vm9, %v1112_v59, %v9645_v20  ;;  %v1582_v1 = vsel %vm579_vm9, %v1581_v50, %v9646_v30  ;;  %v5754_v56 = vpop.permute.xlu0 %5753  ;;  %v879_v54 = vsel %vm579_vm9, %v878_v43, %v9647_v17  ;;  %v5749_v39 = vpop.permute.xlu1 %5748 }
 0x1e4   : > { %v5756_v49 = vunpack.i.h.bf16 %v5754_v56  ;;  %v5755_v22 = vunpack.i.l.bf16 %v5754_v56  ;;  %v1114_v37 = vsel %vm581_vm10, %v1113_v9, %v5745_v6  ;;  %v1583_v63 = vsel %vm581_vm10, %v1582_v1, %v5746_v11 }
 0x1e5   : > { %v5751_v8 = vunpack.i.h.bf16 %v5749_v39  ;;  %v5750_v46 = vunpack.i.l.bf16 %v5749_v39  ;;  %v2748_v55 = vrot.slane %v1114_v37, 4  ;;  %v2754_v29 = vrot.slane %v1583_v63, 4 }
 0x1e6   : > { %v880_v38 = vsel %vm581_vm10, %v879_v54, %v5755_v22  ;;  %v1344_v60 = vsel %vm581_vm10, %v1343_v42, %v5756_v49 }
 0x1e7   : > { %v7815_v58 = vpop.permute.xlu0 %5778  ;;  %v887_v28 = vsel %vm581_vm10, %v886_v34, %v5750_v46  ;;  %v1351_v10 = vsel %vm581_vm10, %v1350_v15, %v5751_v8  ;;  %v2771_v2 = vsel %vm2770_vm12, %v880_v38, %v2748_v55  ;;  %v2773_v13 = vsel %vm2770_vm12, %v1344_v60, %v2754_v29  ;;  %v7821_v12 = vpop.permute.xlu1 %5758 }
 0x1e8   : > { %v2772_v32 = vsel %vm2770_vm12, %v887_v28, %v2749_v33  ;;  %v2774_v7 = vsel %vm2770_vm12, %v1351_v10, %v2755_v52  ;;  %v5531_v18 = vpack.c.bf16 %v2773_v13, %v2771_v2  ;;  %v5781_v15 = vunpack.i.h.bf16 %v7815_v58 }
 0x1e9   : > { %v5529_v35 = vpack.c.bf16 %v2774_v7, %v2772_v32  ;;  %v5780_v23 = vunpack.i.l.bf16 %v7815_v58  ;;  %v5761_v11 = vunpack.i.h.bf16 %v7821_v12  ;;  %v5760_v6 = vunpack.i.l.bf16 %v7821_v12 }
 0x1eb   : > { %5530 = vmatprep.subr.bf16.mxu0 %v5529_v35  ;;  %v7825_v61 = vpop.permute.xlu0 %5783  ;;  %v7827_v62 = vpop.permute.xlu1 %5763 }
 0x1ec   : > { %5532 = vmatpush1.bf16.msra.mxu0 %v5531_v18  ;;  %v5786_v59 = vunpack.i.h.bf16 %v7825_v61  ;;  %v5785_v50 = vunpack.i.l.bf16 %v7825_v61  ;;  %v5766_v9 = vunpack.i.h.bf16 %v7827_v62  ;;  %v5765_v30 = vunpack.i.l.bf16 %v7827_v62 }
 0x1ef   : > { %v7829_v25 = vpop.permute.xlu0 %5788  ;;  %v7831_v27 = vpop.permute.xlu1 %5768 }
 0x1f0   : > { %v5771_v54 = vunpack.i.h.bf16 %v7831_v27  ;;  %v5770_v41 = vunpack.i.l.bf16 %v7831_v27  ;;  %v5791_v42 = vunpack.i.h.bf16 %v7829_v25  ;;  %v5790_v39 = vunpack.i.l.bf16 %v7829_v25 }
 0x1f3   : > { %v7833_v48 = vpop.permute.xlu0 %5793  ;;  %v7835_v3 = vpop.permute.xlu1 %5773 }
 0x1f4   : > { %v5796_v49 = vunpack.i.h.bf16 %v7833_v48  ;;  %v5795_v22 = vunpack.i.l.bf16 %v7833_v48  ;;  %v5776_v8 = vunpack.i.h.bf16 %v7835_v3  ;;  %v5775_v46 = vunpack.i.l.bf16 %v7835_v3 }
 0x1f7   : > { %v7837_v51 = vpop.permute.xlu0 %5808  ;;  %v7839_v14 = vpop.permute.xlu1 %5798 }
 0x1f8   : > { %v5801_v2 = vunpack.i.h.bf16 %v7839_v14  ;;  %v5800_v13 = vunpack.i.l.bf16 %v7839_v14  ;;  %v5811_v12 = vunpack.i.h.bf16 %v7837_v51  ;;  %v5810_v32 = vunpack.i.l.bf16 %v7837_v51 }
 0x1fb   : > { %v7841_v43 = vpop.permute.xlu0 %5813  ;;  %v7843_v53 = vpop.permute.xlu1 %5803 }
 0x1fc   : > { %v5816_v7 = vunpack.i.h.bf16 %v7841_v43  ;;  %v5815_v35 = vunpack.i.l.bf16 %v7841_v43 }
 0x1ff   : > { %v7845_v4 = vpop.permute.xlu0 %2681  ;;  %v7847_v34 = vpop.permute.xlu1 %2709 }
 0x203   : > { %v5824_v26 = vpop.permute.xlu0 %5823  ;;  %v5819_v44 = vpop.permute.xlu1 %5818 }
 0x204   : > { %v5821_v1 = vunpack.i.h.bf16 %v5819_v44  ;;  %v5820_v56 = vunpack.i.l.bf16 %v5819_v44  ;;  %v5826_v37 = vunpack.i.h.bf16 %v5824_v26  ;;  %v5825_v63 = vunpack.i.l.bf16 %v5824_v26 }
 0x206   : > { %v2509_v52 = vsel %vm569_vm4, %v7489_v47, %v5821_v1  ;;  %v2044_v38 = vsel %vm569_vm4, %v7502_v31, %v5820_v56  ;;  %v2502_v47 = vsel %vm569_vm4, %v7480_v16, %v5826_v37  ;;  %v2037_v31 = vsel %vm569_vm4, %v7498_v40, %v5825_v63 }
 0x207   : > { %v5829_v20 = vpop.permute.xlu0 %5828  ;;  %v7857_v17 = vpop.permute.xlu1 %5848  ;;  %v2045_v27 = vsel %vm571_vm5, %v2044_v38, %v5760_v6  ;;  %v2510_v3 = vsel %vm571_vm5, %v2509_v52, %v5761_v11  ;;  %v5806_v40 = vunpack.i.h.bf16 %v7843_v53  ;;  %v5805_v37 = vunpack.i.l.bf16 %v7843_v53 }
 0x208   : > { %v5831_v55 = vunpack.i.h.bf16 %v5829_v20  ;;  %v5830_v29 = vunpack.i.l.bf16 %v5829_v20  ;;  %v5851_v6 = vunpack.i.h.bf16 %v7857_v17  ;;  %v5850_v11 = vunpack.i.l.bf16 %v7857_v17 }
 0x20a   : > { %v2279_v18 = vsel %vm569_vm4, %v7523_v5, %v5831_v55  ;;  %v1814_v62 = vsel %vm569_vm4, %v7506_v24, %v5830_v29  ;;  %v2038_v5 = vsel %vm571_vm5, %v2037_v31, %v5765_v30  ;;  %v2503_v24 = vsel %vm571_vm5, %v2502_v47, %v5766_v9 }
 0x20b   : > { %v5834_v33 = vpop.permute.xlu0 %5833  ;;  %v5854_v60 = vpop.permute.xlu1 %5853  ;;  %v2280_v29 = vsel %vm571_vm5, %v2279_v18, %v5771_v54 }
 0x20c   : > { %v5836_v28 = vunpack.i.h.bf16 %v5834_v33  ;;  %v5835_v10 = vunpack.i.l.bf16 %v5834_v33  ;;  %v1815_v33 = vsel %vm571_vm5, %v1814_v62, %v5770_v41  ;;  %v2281_v31 = vsel %vm573_vm6, %v2280_v29, %v5851_v6 }
 0x20e   : > { %v2511_v44 = vsel %vm573_vm6, %v2510_v3, %v5836_v28  ;;  %v2046_v20 = vsel %vm573_vm6, %v2045_v27, %v5835_v10  ;;  %v5856_v10 = vunpack.i.h.bf16 %v5854_v60 }
 0x20f   : > { %v5839_v26 = vpop.permute.xlu0 %5838  ;;  %v5859_v1 = vpop.permute.xlu1 %5858  ;;  %v2512_v53 = vsel %vm575_vm7, %v2511_v44, %v5776_v8  ;;  %v2047_v30 = vsel %vm575_vm7, %v2046_v20, %v5775_v46  ;;  %v1816_v46 = vsel %vm573_vm6, %v1815_v33, %v5850_v11 }
 0x210   : > { %v5841_v16 = vunpack.i.h.bf16 %v5839_v26  ;;  %v5840_v56 = vunpack.i.l.bf16 %v5839_v26  ;;  %v5861_v47 = vunpack.i.h.bf16 %v5859_v1  ;;  %v5860_v54 = vunpack.i.l.bf16 %v5859_v1 }
 0x211   : > { %v2513_v62 = vsel %vm577_vm8, %v2512_v53, %v5856_v10 }
 0x212   : > { %v2272_v63 = vsel %vm569_vm4, %v7554_v19, %v5841_v16  ;;  %v1807_v55 = vsel %vm569_vm4, %v7544_v45, %v5840_v56  ;;  %v5855_v45 = vunpack.i.l.bf16 %v5854_v60 }
 0x213   : > { %v5844_v52 = vpop.permute.xlu0 %5843  ;;  %v1808_v9 = vsel %vm571_vm5, %v1807_v55, %v5780_v23  ;;  %v2273_v17 = vsel %vm571_vm5, %v2272_v63, %v5781_v15  ;;  %v5864_v38 = vpop.permute.xlu1 %5863 }
 0x214   : > { %v5846_v19 = vunpack.i.h.bf16 %v5844_v52  ;;  %v5845_v28 = vunpack.i.l.bf16 %v5844_v52  ;;  %v1809_v23 = vsel %vm573_vm6, %v1808_v9, %v5860_v54  ;;  %v2274_v58 = vsel %vm573_vm6, %v2273_v17, %v5861_v47 }
 0x215   : > { %v2048_v18 = vsel %vm577_vm8, %v2047_v30, %v5855_v45  ;;  %v5866_v20 = vunpack.i.h.bf16 %v5864_v38  ;;  %v5865_v1 = vunpack.i.l.bf16 %v5864_v38  ;;  %v1810_v25 = vsel %vm575_vm7, %v1809_v23, %v5800_v13 }
 0x216   : > { %v2039_v41 = vsel %vm573_vm6, %v2038_v5, %v5845_v28  ;;  %v2504_v8 = vsel %vm573_vm6, %v2503_v24, %v5846_v19  ;;  %v1817_v5 = vsel %vm575_vm7, %v1816_v46, %v5790_v39  ;;  %v2282_v24 = vsel %vm575_vm7, %v2281_v31, %v5791_v42 }
 0x217   : > { %v5869_v15 = vpop.permute.xlu0 %5868  ;;  %v2040_v60 = vsel %vm575_vm7, %v2039_v41, %v5785_v50  ;;  %v2505_v27 = vsel %vm575_vm7, %v2504_v8, %v5786_v59  ;;  %v5879_v3 = vpop.permute.xlu1 %5878  ;;  %v2049_v61 = vsel %vm579_vm9, %v2048_v18, %v5795_v22  ;;  %v2514_v59 = vsel %vm579_vm9, %v2513_v62, %v5796_v49 }
 0x218   : > { %v5871_v26 = vunpack.i.h.bf16 %v5869_v15  ;;  %v5870_v44 = vunpack.i.l.bf16 %v5869_v15  ;;  %v5881_v16 = vunpack.i.h.bf16 %v5879_v3  ;;  %v5880_v56 = vunpack.i.l.bf16 %v5879_v3 }
 0x219   : > { %v2041_v11 = vsel %vm577_vm8, %v2040_v60, %v5865_v1  ;;  %v2506_v39 = vsel %vm577_vm8, %v2505_v27, %v5866_v20  ;;  %v2275_v42 = vsel %vm575_vm7, %v2274_v58, %v5801_v2 }
 0x21a   : > { %v1818_v50 = vsel %vm577_vm8, %v1817_v5, %v5870_v44  ;;  %v2283_v6 = vsel %vm577_vm8, %v2282_v24, %v5871_v26  ;;  %v1811_v55 = vsel %vm577_vm8, %v1810_v25, %v5880_v56  ;;  %v2276_v29 = vsel %vm577_vm8, %v2275_v42, %v5881_v16 }
 0x21b   : > { %v5874_v63 = vpop.permute.xlu0 %5873  ;;  %v5884_v48 = vpop.permute.xlu1 %5883  ;;  %v2042_v30 = vsel %vm579_vm9, %v2041_v11, %v5805_v37  ;;  %v2507_v52 = vsel %vm579_vm9, %v2506_v39, %v5806_v40  ;;  %v1819_v13 = vsel %vm579_vm9, %v1818_v50, %v5810_v32  ;;  %v2284_v14 = vsel %vm579_vm9, %v2283_v6, %v5811_v12 }
 0x21c   : > { %v5876_v22 = vunpack.i.h.bf16 %v5874_v63  ;;  %v5875_v49 = vunpack.i.l.bf16 %v5874_v63  ;;  %v5886_v33 = vunpack.i.h.bf16 %v5884_v48  ;;  %v5885_v53 = vunpack.i.l.bf16 %v5884_v48 }
 0x21d   : > { %v1812_v32 = vsel %vm579_vm9, %v1811_v55, %v5815_v35  ;;  %v2277_v51 = vsel %vm579_vm9, %v2276_v29, %v5816_v7  ;;  %v9650_v55 = vld [vmem:[#allocation9_spill] sm:$0xff] }
 0x21e   : > { %v2043_v2 = vsel %vm581_vm10, %v2042_v30, %v5885_v53  ;;  %v2508_v9 = vsel %vm581_vm10, %v2507_v52, %v5886_v33  ;;  %v2050_v17 = vsel %vm581_vm10, %v2049_v61, %v5875_v49  ;;  %v2515_v38 = vsel %vm581_vm10, %v2514_v59, %v5876_v22  ;;  %v590_v22 = vld [vmem:[%s9553_s1] sm:$0xf]  ;;  %v9649_v49 = vld [vmem:[#allocation12_spill] sm:$0xff]  ;;  %v9651_v53 = vld [vmem:[#allocation13_spill] sm:$0xff] }
 0x21f   : > { %v5894_v19 = vpop.permute.xlu0 %5893  ;;  %v5889_v37 = vpop.permute.xlu1 %5888  ;;  %v2760_v12 = vrot.slane %v2043_v2, 4  ;;  %v2766_v10 = vrot.slane %v2508_v9, 4  ;;  %v2761_v54 = vrot.slane %v2050_v17, 4  ;;  %v2767_v41 = vrot.slane %v2515_v38, 4  ;;  %v9653_v9 = vld [vmem:[#allocation15_spill] sm:$0xff] }
 0x220   : > { %v5896_v28 = vunpack.i.h.bf16 %v5894_v19  ;;  %v5895_v40 = vunpack.i.l.bf16 %v5894_v19  ;;  %v5891_v45 = vunpack.i.h.bf16 %v5889_v37  ;;  %v5890_v47 = vunpack.i.l.bf16 %v5889_v37 }
 0x221   : > { %v583_v29 = vsel %vm569_vm4, %v9650_v55, %v9649_v49 }
 0x222   : > { %v1813_v8 = vsel %vm581_vm10, %v1812_v32, %v5895_v40  ;;  %v2278_v46 = vsel %vm581_vm10, %v2277_v51, %v5896_v28  ;;  %v1820_v31 = vsel %vm581_vm10, %v1819_v13, %v5890_v47  ;;  %v2285_v23 = vsel %vm581_vm10, %v2284_v14, %v5891_v45  ;;  %v9652_v13 = vld [vmem:[#allocation14_spill] sm:$0xff] }
 0x223   : > { %v2678_v58 = vpop.permute.xlu0 %2677  ;;  %v2775_v35 = vsel %vm2770_vm12, %v1813_v8, %v2760_v12  ;;  %v2777_v43 = vsel %vm2770_vm12, %v2278_v46, %v2766_v10  ;;  %v2706_v7 = vpop.permute.xlu1 %2705  ;;  %v2776_v15 = vsel %vm2770_vm12, %v1820_v31, %v2761_v54  ;;  %v2778_v18 = vsel %vm2770_vm12, %v2285_v23, %v2767_v41 }
 0x224   : > { %v5535_v62 = vpack.c.bf16 %v2777_v43, %v2775_v35  ;;  %v5533_v60 = vpack.c.bf16 %v2778_v18, %v2776_v15  ;;  %v2732_v1 = vsel %vm569_vm4, %v7616_v57, %v2678_v58  ;;  %v2739_v56 = vsel %vm569_vm4, %v7621_v0, %v2706_v7 }
 0x225   : > { %v2733_v5 = vsel %vm571_vm5, %v2732_v1, %v7845_v4  ;;  %v2740_v61 = vsel %vm571_vm5, %v2739_v56, %v7847_v34  ;;  %v584_v30 = vsel %vm571_vm5, %v583_v29, %v9651_v53 }
 0x226   : > { %5534 = vmatprep.subr.bf16.mxu0 %v5533_v60  ;;  %v585_v14 = vsel %vm573_vm6, %v584_v30, %v9652_v13 }
 0x227   : > { %v2686_v27 = vpop.permute.xlu0 %2685  ;;  %v2714_v3 = vpop.permute.xlu1 %2713  ;;  %5536 = vmatpush1.bf16.msra.mxu0 %v5535_v62  ;;  %v586_v17 = vsel %vm575_vm7, %v585_v14, %v9653_v9 }
 0x228   : > { %v2734_v59 = vsel %vm573_vm6, %v2733_v5, %v2686_v27  ;;  %v2741_v6 = vsel %vm573_vm6, %v2740_v61, %v2714_v3 }
 0x22b   : > { %v2690_v26 = vpop.permute.xlu0 %2689  ;;  %v2718_v44 = vpop.permute.xlu1 %2717 }
 0x22c   : > { %v2735_v11 = vsel %vm575_vm7, %v2734_v59, %v2690_v26  ;;  %v2742_v57 = vsel %vm575_vm7, %v2741_v6, %v2718_v44 }
 0x22f   : > { %v2694_v20 = vpop.permute.xlu0 %2693  ;;  %v2722_v16 = vpop.permute.xlu1 %2721 }
 0x230   : > { %v2736_v39 = vsel %vm577_vm8, %v2735_v11, %v2694_v20  ;;  %v2743_v0 = vsel %vm577_vm8, %v2742_v57, %v2722_v16 }
 0x233   : > { %v2698_v24 = vpop.permute.xlu0 %2697  ;;  %v2726_v50 = vpop.permute.xlu1 %2725 }
 0x234   : > { %v2737_v63 = vsel %vm579_vm9, %v2736_v39, %v2698_v24  ;;  %v2744_v25 = vsel %vm579_vm9, %v2743_v0, %v2726_v50 }
 0x237   : > { %v2702_v4 = vpop.permute.xlu0 %2701  ;;  %v2730_v42 = vpop.permute.xlu1 %2729 }
 0x238   : > { %v2738_v34 = vsel %vm581_vm10, %v2737_v63, %v2702_v4  ;;  %v2745_v48 = vsel %vm581_vm10, %v2744_v25, %v2730_v42 }
 0x239   : > { %5513 = vmatprep.subr.msk.mxu0 %vm2770_vm12, %v2745_v48 }
 0x23a   : > { %5514 = vmatpush1.msk.msra.mxu0 %vm2770_vm12, %v2738_v34 }
 0x23b   : > { %5515 = vmatmul.mubr.msk.f32.vlgmr.msra.gmra.mrb[0].mxu0 %vm2779_vm13, %v590_v22 }
 0x248   : > { %v2864_v33 = vpop.permute.xlu1 %2863  ;;  %v2872_v52 = vpop.permute.xlu0 %2871 }
 0x24c   : > { %v559_v2 = vpop.permute.xlu1 %558  ;;  %v567_v38 = vpop.permute.xlu0 %566 }
 0x24d   : > { %v587_v19 = vsel %vm577_vm8, %v586_v17, %v559_v2 }
 0x250   : > { %v563_v37 = vpop.permute.xlu1 %562 }
 0x251   : > { %v588_v28 = vsel %vm579_vm9, %v587_v19, %v563_v37 }
 0x252   : > { %v8007_v40 = vsel %vm581_vm10, %v588_v28, %v567_v38 }
 0x253   : > { %9654 = vst [vmem:[#allocation17_spill] sm:$0xff] %v8007_v40 }
 0x30c   : > { %2879 = sbr.rel (%p5516_p12) target bundleno = 791 (0x317), region = 90 }
 0x30e   : > { %v2855_v32 = vpop.f32.mrb[0].mxu0 }
 0x30f   : > { %v2866_v51 = vmul.f32 %v2864_v33, %v2855_v32  ;;  %v2857_v12 = vpop.f32.mrb[1].mxu0 }
 0x310   : > { %v2867_v10 = vmul.f32 %v2864_v33, %v2857_v12 }
 0x311   : > { %v2874_v45 = vadd.f32 %v2872_v52, %v2866_v51 }
 0x312   : > { %v2875_v47 = vadd.f32 %v2872_v52, %v2867_v10 }
 0x314   : > { %v2882_v54 = vcombine.low %v2874_v45, %v2875_v47 }
 0x316   : > { %2884 = vst [vmem:[#allocation2] sm:$0xff] %v2882_v54 }
 0x317 PF: > { %p5517_p13 = scmp.le.s32.totalorder %s6219_s26, 0 }
 0x318   : > { %v2890_v8 = vld [vmem:[#allocation3] sm:$0xff] (!%p5517_p13)  ;;  %v2895_v31 = vcombine.low (!%p5517_p13), %v2874_v45, %v2875_v47 }
 0x319   : > { %2888 = sbr.rel (%p5517_p13) target bundleno = 805 (0x325), region = 94 }
 0x31d   : > { %v2889_v41 = vld [vmem:[#allocation2] sm:$0xff] (!%p5517_p13) }
 0x31e   : > { %v2891_v46 = vsub.f32 (!%p5517_p13), %v2889_v41, %v2890_v8 }
 0x320   : > { %v2892_v23 = vmul.f32 0.25, %v2891_v46 }
 0x322   : > { %v2897_v58 = vadd.f32 %v2895_v31, %v2892_v23 }
 0x324   : > { %2898 = vst [vmem:[#allocation2] sm:$0xff] %v2897_v58 }
 0x325 PF: > { %v9655_v43 = vmov 0.0   ;;  %v9656_v7 = vmov 0  }
 0x326   : > { %5353 = vmatprep.mubr.f32.mxu1 %v9655_v43  ;;  %6179 = vset.pattern.permute.xlu1 %v9656_v7 }
 0x327   : > { %6180 = vset.pattern.permute.xlu0 %v9656_v7 }
 0x32b   : > { %v2899_v35 = vld [vmem:[#allocation2] sm:$0xff] }
 0x32c   : > { %v2900_v15 = vmul.f32 100.0, %v2899_v35 }
 0x32e   : > { %v2901_v18 = vmax.f32 %v2900_v15, 0.0 }
 0x330   : > { %v2902_v62 = vmin.f32 %v2901_v18, 511.0 }
 0x332   : > { %v5545_v60 = vround.rtne.f32 %v2902_v62 }
 0x334   : > { %v2905_v27 = vmul.f32 0.01, %v5545_v60 }
 0x336   : > { %2919 = vrot.lane.b32.xlu1 %v2905_v27, %s6245_s19  ;;  %2906 = vst [vmem:[#allocation3] sm:$0xff] %v2905_v27  ;;  %2911 = vrot.lane.b32.xlu0 %v2905_v27, %s6247_s21  ;;  %v2909_v1 = vrot.slane %v2905_v27, 4 }
 0x33a   : > { %2923 = vrot.lane.b32.xlu1 %v2905_v27, %s6244_s18  ;;  %2915 = vrot.lane.b32.xlu0 %v2905_v27, %s6246_s20 }
 0x33e   : > { %2931 = vrot.lane.b32.xlu1 %v2905_v27, %s6242_s16  ;;  %2927 = vrot.lane.b32.xlu0 %v2905_v27, %s6243_s17 }
 0x342   : > { %2935 = vrot.lane.b32.xlu0 %v2905_v27, %s6241_s24 }
 0x3a8   : > { %v2920_v3 = vpop.permute.xlu1 %2919  ;;  %v2912_v26 = vpop.permute.xlu0 %2911 }
 0x3a9   : > { %v2921_v56 = vrot.slane %v2920_v3, 4  ;;  %v2913_v5 = vrot.slane %v2912_v26, 4  ;;  %v2954_v61 = vcombine.low %v2912_v26, %v2920_v3 }
 0x3ab   : > { %v3022_v39 = vcombine.low %v2913_v5, %v2921_v56  ;;  %v2961_v4 = vrot.slane %v2954_v61, %v6357_v21 }
 0x3ac   : > { %v2924_v44 = vpop.permute.xlu1 %2923  ;;  %v2916_v20 = vpop.permute.xlu0 %2915 }
 0x3ad   : > { %v2917_v16 = vrot.slane %v2916_v20, 4  ;;  %v2946_v24 = vcombine.low %v2905_v27, %v2916_v20  ;;  %v2925_v6 = vrot.slane %v2924_v44, 4  ;;  %v3029_v55 = vrot.slane %v3022_v39, %v6357_v21 }
 0x3af   : > { %v3014_v11 = vcombine.low %v2909_v1, %v2917_v16  ;;  %v2953_v0 = vrot.slane %v2946_v24, %v6357_v21 }
 0x3b0   : > { %v2932_v59 = vpop.permute.xlu1 %2931  ;;  %v2928_v50 = vpop.permute.xlu0 %2927 }
 0x3b1   : > { %v2933_v57 = vrot.slane %v2932_v59, 4  ;;  %v2980_v63 = vcombine.low %v2924_v44, %v2932_v59  ;;  %v2929_v25 = vrot.slane %v2928_v50, 4  ;;  %v3021_v49 = vrot.slane %v3014_v11, %v6357_v21 }
 0x3b2   : > { %v2962_v30 = vcombine.low %v2953_v0, %v2961_v4  ;;  %v2963_v12 = vcombine.high %v2953_v0, %v2961_v4 }
 0x3b3   : > { %v3048_v34 = vcombine.low %v2925_v6, %v2933_v57  ;;  %v2987_v29 = vrot.slane %v2980_v63, %v6357_v21  ;;  %v3030_v13 = vcombine.low %v3021_v49, %v3029_v55  ;;  %v3031_v54 = vcombine.high %v3021_v49, %v3029_v55 }
 0x3b4   : > { %v2936_v42 = vpop.permute.xlu0 %2935  ;;  %v2970_v9 = vrot.slane %v2962_v30, %v6369_v36  ;;  %v2977_v8 = vrot.slane %v2963_v12, %v6369_v36 }
 0x3b5   : > { %v2937_v48 = vrot.slane %v2936_v42, 4  ;;  %v2988_v22 = vcombine.low %v2928_v50, %v2936_v42  ;;  %v3055_v14 = vrot.slane %v3048_v34, %v6357_v21  ;;  %v3038_v37 = vrot.slane %v3030_v13, %v6369_v36 }
 0x3b6   : > { %v3045_v23 = vrot.slane %v3031_v54, %v6369_v36 }
 0x3b7   : > { %v2995_v33 = vrot.slane %v2988_v22, %v6357_v21  ;;  %v3056_v53 = vcombine.low %v2929_v25, %v2937_v48 }
 0x3b9   : > { %v2996_v52 = vcombine.low %v2987_v29, %v2995_v33  ;;  %v3063_v2 = vrot.slane %v3056_v53, %v6357_v21  ;;  %v2997_v32 = vcombine.high %v2987_v29, %v2995_v33 }
 0x3bb   : > { %v3004_v17 = vrot.slane %v2996_v52, %v6369_v36  ;;  %v3064_v38 = vcombine.low %v3055_v14, %v3063_v2  ;;  %v3065_v10 = vcombine.high %v3055_v14, %v3063_v2  ;;  %v3011_v47 = vrot.slane %v2997_v32, %v6369_v36 }
 0x3bd   : > { %v3098_v19 = vcombine.low %v2970_v9, %v3004_v17  ;;  %v3072_v28 = vrot.slane %v3064_v38, %v6369_v36  ;;  %v5518_v45 = vcombine.high %v2970_v9, %v3004_v17  ;;  %v3079_v46 = vrot.slane %v3065_v10, %v6369_v36 }
 0x3be   : > { %v3102_v31 = vcombine.low %v2977_v8, %v3011_v47  ;;  %v5520_v35 = vcombine.high %v2977_v8, %v3011_v47 }
 0x3bf   : > { %3106 = vrot.lane.b32.xlu1 %v3098_v19, %s6240_s15  ;;  %v3099_v51 = vcombine.low %v3038_v37, %v3072_v28  ;;  %v5519_v41 = vcombine.high %v3038_v37, %v3072_v28  ;;  %v3103_v58 = vcombine.low %v3045_v23, %v3079_v46  ;;  %v5521_v7 = vcombine.high %v3045_v23, %v3079_v46 }
 0x3c1   : > { %3108 = vrot.lane.b32.xlu0 %v3099_v51, %s6240_s15 }
 0x3c3   : > { %3110 = vrot.lane.b32.xlu1 %v5518_v45, %s6240_s15 }
 0x3c5   : > { %3112 = vrot.lane.b32.xlu0 %v5519_v41, %s6240_s15 }
 0x3c7   : > { %3114 = vrot.lane.b32.xlu1 %v3102_v31, %s6240_s15 }
 0x3c9   : > { %3116 = vrot.lane.b32.xlu0 %v3103_v58, %s6240_s15 }
 0x3cb   : > { %3118 = vrot.lane.b32.xlu1 %v5520_v35, %s6240_s15 }
 0x3cd   : > { %3120 = vrot.lane.b32.xlu0 %v5521_v7, %s6240_s15 }
 0x431   : > { %v3107_v15 = vpop.permute.xlu1 %3106 }
 0x432   : > { %v3130_v18 = vsel %vm623_vm0, 0.0, %v3107_v15 }
 0x433   : > { %v3138_v62 = vsel %vm632_vm1, %v3130_v18, 0.0  ;;  %v3109_v60 = vpop.permute.xlu0 %3108 }
 0x434   : > { %v3154_v27 = vrot.slane %v3138_v62, 7  ;;  %v3131_v3 = vsel %vm623_vm0, 0.0, %v3109_v60 }
 0x435   : > { %v3111_v26 = vpop.permute.xlu1 %3110  ;;  %v3139_v1 = vsel %vm632_vm1, %v3131_v3, 0.0 }
 0x436   : > { %v8053_v44 = vsel %vm649_vm2, 0.0, %v3154_v27  ;;  %v3132_v20 = vsel %vm623_vm0, 0.0, %v3111_v26  ;;  %v3155_v59 = vrot.slane %v3139_v1, 7 }
 0x437   : > { %v3140_v16 = vsel %vm632_vm1, %v3132_v20, 0.0  ;;  %3396 = vrot.lane.b32.xlu1 %v8053_v44, %s6248_s22  ;;  %v3113_v56 = vpop.permute.xlu0 %3112  ;;  %v3860_v32 = vrot.slane %v8053_v44, 1 }
 0x438   : > { %v3157_v5 = vrot.slane %v3140_v16, 7  ;;  %v3133_v24 = vsel %vm623_vm0, 0.0, %v3113_v56  ;;  %v8072_v34 = vsel %vm649_vm2, %v3154_v27, %v3155_v59  ;;  %v8082_v33 = vsel %vm649_vm2, %v3155_v59, 0.0 }
 0x439   : > { %v3115_v61 = vpop.permute.xlu1 %3114  ;;  %v3141_v6 = vsel %vm632_vm1, %v3133_v24, 0.0  ;;  %v3861_v2 = vrot.slane %v8072_v34, 1  ;;  %v3863_v28 = vrot.slane %v8082_v33, 1 }
 0x43a   : > { %v8062_v50 = vsel %vm649_vm2, 0.0, %v3157_v5  ;;  %v3134_v11 = vsel %vm623_vm0, 0.0, %v3115_v61  ;;  %v3158_v4 = vrot.slane %v3141_v6, 7 }
 0x43b   : > { %v3142_v57 = vsel %vm632_vm1, %v3134_v11, 0.0  ;;  %3400 = vrot.lane.b32.xlu0 %v8062_v50, %s6248_s22  ;;  %v3117_v39 = vpop.permute.xlu0 %3116  ;;  %v8125_v31 = vsel %vm1356_vm3, %v3860_v32, %v3861_v2  ;;  %v3865_v23 = vrot.slane %v8062_v50, 1  ;;  %v8138_v7 = vsel %vm1356_vm3, %v3861_v2, %v3863_v28 }
 0x43c   : > { %v3160_v0 = vrot.slane %v3142_v57, 7  ;;  %v3135_v63 = vsel %vm623_vm0, 0.0, %v3117_v39  ;;  %v8089_v13 = vsel %vm649_vm2, %v3157_v5, %v3158_v4  ;;  %v8121_v8 = vsel %vm649_vm2, %v3158_v4, 0.0 }
 0x43d   : > { %v3143_v25 = vsel %vm632_vm1, %v3135_v63, 0.0  ;;  %v3119_v42 = vpop.permute.xlu1 %3118  ;;  %v3866_v10 = vrot.slane %v8089_v13, 1  ;;  %v3868_v18 = vrot.slane %v8121_v8, 1 }
 0x43e   : > { %v8075_v48 = vsel %vm649_vm2, 0.0, %v3160_v0  ;;  %v3161_v22 = vrot.slane %v3143_v25, 7  ;;  %v3136_v49 = vsel %vm623_vm0, 0.0, %v3119_v42 }
 0x43f   : > { %v3144_v55 = vsel %vm632_vm1, %v3136_v49, 0.0  ;;  %3404 = vrot.lane.b32.xlu1 %v8075_v48, %s6248_s22  ;;  %v3121_v29 = vpop.permute.xlu0 %3120  ;;  %v3870_v37 = vrot.slane %v8075_v48, 1  ;;  %v8141_v15 = vsel %vm1356_vm3, %v3865_v23, %v3866_v10  ;;  %v3187_v27 = vcombine.high %v8053_v44, %v8075_v48 }
 0x440   : > { %v8085_v53 = vsel %vm649_vm2, %v3160_v0, %v3161_v22  ;;  %v3163_v30 = vrot.slane %v3144_v55, 7  ;;  %v3137_v52 = vsel %vm623_vm0, 0.0, %v3121_v29  ;;  %v8095_v17 = vsel %vm649_vm2, %v3161_v22, 0.0 }
 0x441   : > { %v3145_v14 = vsel %vm632_vm1, %v3137_v52, 0.0  ;;  %v3871_v9 = vrot.slane %v8085_v53, 1  ;;  %v3873_v47 = vrot.slane %v8095_v17, 1  ;;  %v3186_v20 = vcombine.low %v8053_v44, %v8075_v48 }
 0x442   : > { %v8098_v38 = vsel %vm649_vm2, 0.0, %v3163_v30  ;;  %v3164_v19 = vrot.slane %v3145_v14, 7  ;;  %v8173_v24 = vrot.slane %v3187_v27, %v6357_v21  ;;  %v8185_v11 = vsel %vm1356_vm3, %v3866_v10, %v3868_v18 }
 0x443   : > { %3626 = vrot.lane.b32.xlu1 %v8053_v44, %s6249_s23  ;;  %3408 = vrot.lane.b32.xlu0 %v8098_v38, %s6248_s22  ;;  %v8115_v45 = vsel %vm1356_vm3, %v3870_v37, %v3871_v9  ;;  %v3875_v41 = vrot.slane %v8098_v38, 1  ;;  %v8145_v62 = vsel %vm1356_vm3, %v3871_v9, %v3873_v47  ;;  %v3203_v26 = vcombine.high %v8062_v50, %v8098_v38 }
 0x444   : > { %v8108_v51 = vsel %vm649_vm2, %v3163_v30, %v3164_v19  ;;  %v8111_v12 = vsel %vm649_vm2, %v3164_v19, 0.0  ;;  %v3888_v35 = vcombine.low %v8125_v31, %v8115_v45  ;;  %v3202_v1 = vcombine.low %v8062_v50, %v8098_v38 }
 0x445   : > { %v3876_v54 = vrot.slane %v8108_v51, 1  ;;  %v3878_v46 = vrot.slane %v8111_v12, 1  ;;  %v3889_v5 = vcombine.high %v8125_v31, %v8115_v45  ;;  %v8176_v61 = vrot.slane %v3203_v26, %v6357_v21 }
 0x446   : > { %v8165_v16 = vrot.slane %v3888_v35, %v6357_v21  ;;  %v8179_v59 = vrot.slane %v3186_v20, %v6357_v21  ;;  %v8182_v6 = vrot.slane %v3202_v1, %v6357_v21  ;;  %v3956_v0 = vcombine.low %v8138_v7, %v8145_v62 }
 0x447   : > { %3634 = vrot.lane.b32.xlu1 %v8075_v48, %s6249_s23  ;;  %3630 = vrot.lane.b32.xlu0 %v8062_v50, %s6249_s23  ;;  %v8133_v58 = vsel %vm1356_vm3, %v3875_v41, %v3876_v54  ;;  %v8152_v3 = vsel %vm1356_vm3, %v3876_v54, %v3878_v46  ;;  %v3234_v63 = vcombine.low %v8173_v24, %v8176_v61  ;;  %v4557_v41 = vrot.slane %v8082_v33, 2 }
 0x448   : > { %v3904_v60 = vcombine.low %v8141_v15, %v8133_v58  ;;  %v3905_v39 = vcombine.high %v8141_v15, %v8133_v58  ;;  %v3219_v4 = vcombine.high %v8179_v59, %v8182_v6  ;;  %v3235_v25 = vcombine.high %v8173_v24, %v8176_v61 }
 0x449   : > { %v3972_v42 = vcombine.low %v8185_v11, %v8152_v3  ;;  %v8206_v22 = vrot.slane %v3889_v5, %v6357_v21  ;;  %v8212_v55 = vrot.slane %v3956_v0, %v6357_v21  ;;  %v3218_v2 = vcombine.low %v8179_v59, %v8182_v6 }
 0x44a   : > { %v8168_v56 = vrot.slane %v3904_v60, %v6357_v21  ;;  %v8209_v49 = vrot.slane %v3905_v39, %v6357_v21  ;;  %v3254_v19 = vcombine.low %v8072_v34, %v8085_v53  ;;  %v3270_v37 = vcombine.low %v8089_v13, %v8108_v51 }
 0x44b   : > { %3638 = vrot.lane.b32.xlu0 %v8098_v38, %s6249_s23  ;;  %3398 = vrot.lane.b32.xlu1 %v8072_v34, %s6248_s22  ;;  %v8215_v29 = vrot.slane %v3972_v42, %v6357_v21  ;;  %v3255_v10 = vcombine.high %v8072_v34, %v8085_v53  ;;  %v3271_v47 = vcombine.high %v8089_v13, %v8108_v51  ;;  %v4555_v46 = vrot.slane %v8072_v34, 2 }
 0x44c   : > { %v3921_v57 = vcombine.high %v8165_v16, %v8168_v56  ;;  %v3937_v30 = vcombine.high %v8206_v22, %v8209_v49  ;;  %v3936_v52 = vcombine.low %v8206_v22, %v8209_v49  ;;  %v3920_v14 = vcombine.low %v8165_v16, %v8168_v56 }
 0x44d   : > { %v3989_v9 = vcombine.high %v8212_v55, %v8215_v29  ;;  %v8236_v28 = vrot.slane %v3254_v19, %v6357_v21  ;;  %v8239_v32 = vrot.slane %v3270_v37, %v6357_v21  ;;  %v3957_v54 = vcombine.high %v8138_v7, %v8145_v62 }
 0x44e   : > { %v3973_v35 = vcombine.high %v8185_v11, %v8152_v3  ;;  %v4567_v18 = vrot.slane %v8095_v17, 2  ;;  %v4565_v60 = vrot.slane %v8085_v53, 2  ;;  %v8260_v33 = vrot.slane %v3255_v10, %v6357_v21 }
 0x44f   : > { %3402 = vrot.lane.b32.xlu0 %v8089_v13, %s6248_s22  ;;  %3406 = vrot.lane.b32.xlu1 %v8085_v53, %s6248_s22  ;;  %v3287_v23 = vcombine.high %v8236_v28, %v8239_v32  ;;  %v4572_v27 = vrot.slane %v8111_v12, 2  ;;  %v4570_v26 = vrot.slane %v8108_v51, 2  ;;  %v8268_v17 = vrot.slane %v3957_v54, %v6357_v21 }
 0x450   : > { %v8271_v20 = vrot.slane %v3973_v35, %v6357_v21  ;;  %v4562_v1 = vrot.slane %v8121_v8, 2  ;;  %v4560_v12 = vrot.slane %v8089_v13, 2  ;;  %v4568_v19 = vsel %vm2051_vm11, %v4565_v60, %v4567_v18 }
 0x451   : > { %v4573_v37 = vsel %vm2051_vm11, %v4570_v26, %v4572_v27  ;;  %v8499_v16 = vrot.slane %v3989_v9, %v6369_v36 }
 0x452   : > { %v4563_v10 = vsel %vm2051_vm11, %v4560_v12, %v4562_v1 }
 0x453   : > { %3628 = vrot.lane.b32.xlu1 %v8072_v34, %s6249_s23  ;;  %3410 = vrot.lane.b32.xlu0 %v8108_v51, %s6248_s22  ;;  %v8263_v34 = vrot.slane %v3271_v47, %v6357_v21  ;;  %v4666_v54 = vcombine.low %v4563_v10, %v4573_v37  ;;  %v4667_v8 = vcombine.high %v4563_v10, %v4573_v37 }
 0x455   : > { %v8303_v18 = vrot.slane %v4666_v54, %v6357_v21  ;;  %v8309_v27 = vrot.slane %v4667_v8, %v6357_v21  ;;  %v4554_v8 = vrot.slane %v8053_v44, 2  ;;  %v4559_v54 = vrot.slane %v8062_v50, 2 }
 0x456   : > { %v4569_v44 = vrot.slane %v8098_v38, 2 }
 0x457   : > { %3636 = vrot.lane.b32.xlu1 %v8085_v53, %s6249_s23  ;;  %3632 = vrot.lane.b32.xlu0 %v8089_v13, %s6249_s23  ;;  %v4558_v13 = vsel %vm2051_vm11, %v4555_v46, %v4557_v41  ;;  %v8333_v1 = vsel %vm2051_vm11, %v4554_v8, %v4555_v46  ;;  %v8345_v5 = vsel %vm2051_vm11, %v4559_v54, %v4560_v12 }
 0x458   : > { %v4650_v47 = vcombine.low %v4558_v13, %v4568_v19  ;;  %v4651_v35 = vcombine.high %v4558_v13, %v4568_v19  ;;  %v8353_v46 = vsel %vm2051_vm11, %v4569_v44, %v4570_v26 }
 0x45a   : > { %v8306_v41 = vrot.slane %v4651_v35, %v6357_v21  ;;  %v4564_v35 = vrot.slane %v8075_v48, 2 }
 0x45b   : > { %4326 = vrot.lane.b32.xlu1 %v8138_v7, %s6249_s23  ;;  %3640 = vrot.lane.b32.xlu0 %v8108_v51, %s6249_s23  ;;  %v8300_v51 = vrot.slane %v4650_v47, %v6357_v21 }
 0x45c   : > { %v8342_v47 = vsel %vm2051_vm11, %v4564_v35, %v4565_v60 }
 0x45f   : > { %4334 = vrot.lane.b32.xlu1 %v8145_v62, %s6249_s23  ;;  %4330 = vrot.lane.b32.xlu0 %v8185_v11, %s6249_s23 }
 0x463   : > { %4790 = vrot.lane.b32.xlu1 %v4558_v13, %s6248_s22  ;;  %4338 = vrot.lane.b32.xlu0 %v8152_v3, %s6249_s23 }
 0x467   : > { %4798 = vrot.lane.b32.xlu1 %v4568_v19, %s6248_s22  ;;  %4794 = vrot.lane.b32.xlu0 %v4563_v10, %s6248_s22 }
 0x46b   : > { %4324 = vrot.lane.b32.xlu1 %v8125_v31, %s6249_s23  ;;  %4802 = vrot.lane.b32.xlu0 %v4573_v37, %s6248_s22 }
 0x46f   : > { %4332 = vrot.lane.b32.xlu1 %v8115_v45, %s6249_s23  ;;  %4328 = vrot.lane.b32.xlu0 %v8141_v15, %s6249_s23 }
 0x473   : > { %4788 = vrot.lane.b32.xlu1 %v8333_v1, %s6248_s22  ;;  %4336 = vrot.lane.b32.xlu0 %v8133_v58, %s6249_s23 }
 0x477   : > { %4796 = vrot.lane.b32.xlu1 %v8342_v47, %s6248_s22  ;;  %4792 = vrot.lane.b32.xlu0 %v8345_v5, %s6248_s22 }
 0x47b   : > { %4096 = vrot.lane.b32.xlu1 %v8138_v7, %s6248_s22  ;;  %4800 = vrot.lane.b32.xlu0 %v8353_v46, %s6248_s22 }
 0x47f   : > { %4104 = vrot.lane.b32.xlu1 %v8145_v62, %s6248_s22  ;;  %4100 = vrot.lane.b32.xlu0 %v8185_v11, %s6248_s22 }
 0x483   : > { %4094 = vrot.lane.b32.xlu1 %v8125_v31, %s6248_s22  ;;  %4108 = vrot.lane.b32.xlu0 %v8152_v3, %s6248_s22 }
 0x487   : > { %4102 = vrot.lane.b32.xlu1 %v8115_v45, %s6248_s22  ;;  %4098 = vrot.lane.b32.xlu0 %v8141_v15, %s6248_s22 }
 0x48b   : > { %5020 = vrot.lane.b32.xlu1 %v4558_v13, %s6249_s23  ;;  %4106 = vrot.lane.b32.xlu0 %v8133_v58, %s6248_s22 }
 0x48f   : > { %5028 = vrot.lane.b32.xlu1 %v4568_v19, %s6249_s23  ;;  %5024 = vrot.lane.b32.xlu0 %v4563_v10, %s6249_s23  ;;  %v8394_v10 = vrot.slane %v3921_v57, %v6369_v36 }
 0x493   : > { %5018 = vrot.lane.b32.xlu1 %v8333_v1, %s6249_s23  ;;  %5032 = vrot.lane.b32.xlu0 %v4573_v37, %s6249_s23 }
 0x497   : > { %5026 = vrot.lane.b32.xlu1 %v8342_v47, %s6249_s23  ;;  %5022 = vrot.lane.b32.xlu0 %v8345_v5, %s6249_s23 }
 0x49b   : > { %5030 = vrot.lane.b32.xlu0 %v8353_v46, %s6249_s23 }
 0x4a9   : > { %v3397_v50 = vpop.permute.xlu1 %3396 }
 0x4ad   : > { %v3401_v48 = vpop.permute.xlu0 %3400 }
 0x4b1   : > { %v3405_v38 = vpop.permute.xlu1 %3404 }
 0x4b2   : > { %v3420_v45 = vcombine.low %v3397_v50, %v3405_v38  ;;  %v3421_v12 = vcombine.high %v3397_v50, %v3405_v38 }
 0x4b4   : > { %v3428_v15 = vrot.slane %v3420_v45, %v6357_v21  ;;  %v3435_v38 = vrot.slane %v3421_v12, %v6357_v21  ;;  %v8411_v12 = vrot.slane %v3234_v63, %v6369_v36 }
 0x4b5   : > { %v3627_v31 = vpop.permute.xlu1 %3626  ;;  %v3409_v58 = vpop.permute.xlu0 %3408 }
 0x4b6   : > { %v3436_v7 = vcombine.low %v3401_v48, %v3409_v58  ;;  %v3437_v3 = vcombine.high %v3401_v48, %v3409_v58 }
 0x4b8   : > { %v3444_v62 = vrot.slane %v3436_v7, %v6357_v21  ;;  %v3451_v54 = vrot.slane %v3437_v3, %v6357_v21 }
 0x4b9   : > { %v3635_v11 = vpop.permute.xlu1 %3634  ;;  %v3631_v60 = vpop.permute.xlu0 %3630 }
 0x4ba   : > { %v3453_v26 = vcombine.high %v3428_v15, %v3444_v62  ;;  %v3650_v19 = vcombine.low %v3627_v31, %v3635_v11  ;;  %v3651_v37 = vcombine.high %v3627_v31, %v3635_v11  ;;  %v3469_v11 = vcombine.high %v3435_v38, %v3451_v54 }
 0x4bb   : > { %v3452_v39 = vcombine.low %v3428_v15, %v3444_v62  ;;  %v8454_v62 = vrot.slane %v3936_v52, %v6369_v36 }
 0x4bc   : > { %v8388_v13 = vrot.slane %v3453_v26, %v6369_v36  ;;  %v3658_v45 = vrot.slane %v3650_v19, %v6357_v21  ;;  %v3665_v31 = vrot.slane %v3651_v37, %v6357_v21 }
 0x4bd   : > { %v8397_v35 = vpop.permute.xlu1 %3398  ;;  %v3639_v8 = vpop.permute.xlu0 %3638 }
 0x4be   : > { %v3666_v44 = vcombine.low %v3631_v60, %v3639_v8  ;;  %v3667_v48 = vcombine.high %v3631_v60, %v3639_v8  ;;  %v5899_v50 = vpack.i.bf16 %v8394_v10, %v8388_v13  ;;  %v3468_v8 = vcombine.low %v3435_v38, %v3451_v54 }
 0x4bf   : > { %v8427_v38 = vrot.slane %v3469_v11, %v6369_v36 }
 0x4c0   : > { %v3674_v58 = vrot.slane %v3666_v44, %v6357_v21  ;;  %v3681_v57 = vrot.slane %v3667_v48, %v6357_v21  ;;  %5900 = vrot.lane.b32.xlu1 %v5899_v50, %s6242_s16  ;;  %v8421_v44 = vrot.slane %v3219_v4, %v6369_v36  ;;  %v8434_v4 = vrot.slane %v3468_v8, %v6369_v36 }
 0x4c1   : > { %v3407_v7 = vpop.permute.xlu1 %3406  ;;  %v3403_v3 = vpop.permute.xlu0 %3402 }
 0x4c2   : > { %v3698_v26 = vcombine.low %v3665_v31, %v3681_v57  ;;  %v3683_v60 = vcombine.high %v3658_v45, %v3674_v58  ;;  %v3488_v19 = vcombine.low %v8397_v35, %v3407_v7  ;;  %v3699_v63 = vcombine.high %v3665_v31, %v3681_v57 }
 0x4c3   : > { %v3682_v42 = vcombine.low %v3658_v45, %v3674_v58  ;;  %v8466_v57 = vrot.slane %v3452_v39, %v6369_v36  ;;  %v5909_v52 = vpack.i.bf16 %v8454_v62, %v8434_v4  ;;  %v3489_v61 = vcombine.high %v8397_v35, %v3407_v7 }
 0x4c4   : > { %v8415_v37 = vrot.slane %v3698_v26, %v6369_v36  ;;  %v8424_v48 = vrot.slane %v3683_v60, %v6369_v36  ;;  %v8440_v60 = vrot.slane %v3937_v30, %v6369_v36  ;;  %v8443_v31 = vrot.slane %v3488_v19, %v6357_v21 }
 0x4c5   : > { %v3629_v54 = vpop.permute.xlu1 %3628  ;;  %v3411_v50 = vpop.permute.xlu0 %3410  ;;  %v8460_v30 = vrot.slane %v3235_v25, %v6369_v36  ;;  %9657 = vst [vmem:[#allocation18_spill] sm:$0xff] %v8466_v57  ;;  %v8482_v39 = vrot.slane %v3920_v14, %v6369_v36  ;;  %v3484_v6 = vcombine.high %v8466_v57, %v9655_v43  ;;  %v3503_v19 = vrot.slane %v3489_v61, %v6357_v21 }
 0x4c6   : > { %v3504_v0 = vcombine.low %v3403_v3, %v3411_v50  ;;  %v5914_v26 = vpack.i.bf16 %v8415_v37, %v8411_v12  ;;  %v5904_v53 = vpack.i.bf16 %v8424_v48, %v8421_v44  ;;  %v3505_v22 = vcombine.high %v3403_v3, %v3411_v50 }
 0x4c7   : > { %v5919_v49 = vpack.i.bf16 %v8440_v60, %v8427_v38  ;;  %9659 = vst [vmem:[#allocation19_spill] sm:$0xff] %v8482_v39  ;;  %v3952_v50 = vcombine.high %v8482_v39, %v9655_v43 }
 0x4c8   : > { %v8446_v15 = vrot.slane %v3504_v0, %v6357_v21  ;;  %5915 = vrot.lane.b32.xlu0 %v5914_v26, %s6244_s18  ;;  %5905 = vrot.lane.b32.xlu1 %v5904_v53, %s6242_s16  ;;  %v8463_v0 = vrot.slane %v3699_v63, %v6369_v36  ;;  %v8469_v53 = vrot.slane %v3682_v42, %v6369_v36 }
 0x4c9   : > { %v3637_v45 = vpop.permute.xlu1 %3636  ;;  %v3633_v58 = vpop.permute.xlu0 %3632  ;;  %v8488_v42 = vrot.slane %v3218_v2, %v6369_v36  ;;  %v3519_v7 = vrot.slane %v3505_v22, %v6357_v21 }
 0x4ca   : > { %9658 = vst [vmem:[#allocation16_spill] sm:$0xff] %v8469_v53  ;;  %v3521_v24 = vcombine.high %v8443_v31, %v8446_v15  ;;  %v3718_v25 = vcombine.low %v3629_v54, %v3637_v45  ;;  %v3719_v3 = vcombine.high %v3629_v54, %v3637_v45  ;;  %v5924_v59 = vpack.i.bf16 %v8463_v0, %v8460_v30 }
 0x4cb   : > { %9660 = vst [vmem:[#allocation7_spill] sm:$0xff] %v8488_v42  ;;  %v3714_v2 = vcombine.high %v8469_v53, %v9655_v43  ;;  %v3250_v63 = vcombine.high %v8488_v42, %v9655_v43 }
 0x4cc   : > { %5920 = vrot.lane.b32.xlu0 %v5919_v49, %s6246_s20  ;;  %5910 = vrot.lane.b32.xlu1 %v5909_v52, %s6244_s18  ;;  %v8493_v35 = vrot.slane %v3521_v24, %v6369_v36  ;;  %v8514_v54 = vrot.slane %v3718_v25, %v6357_v21  ;;  %v3733_v26 = vrot.slane %v3719_v3, %v6357_v21 }
 0x4cd   : > { %v8501_v56 = vpop.permute.xlu1 %4326  ;;  %v3641_v14 = vpop.permute.xlu0 %3640  ;;  %v5929_v52 = vpack.i.bf16 %v3952_v50, %v3484_v6  ;;  %v3485_v24 = vcombine.high %v8388_v13, %v9655_v43  ;;  %v5939_v61 = vpack.i.bf16 %v3714_v2, %v3250_v63  ;;  %v3537_v63 = vcombine.high %v3503_v19, %v3519_v7 }
 0x4ce   : > { %v3734_v11 = vcombine.low %v3633_v58, %v3641_v14  ;;  %v3735_v8 = vcombine.high %v3633_v58, %v3641_v14  ;;  %v5934_v9 = vpack.i.bf16 %v8499_v16, %v8493_v35  ;;  %v3536_v14 = vcombine.low %v3503_v19, %v3519_v7 }
 0x4d0   : > { %v8522_v45 = vrot.slane %v3734_v11, %v6357_v21  ;;  %v3749_v58 = vrot.slane %v3735_v8, %v6357_v21  ;;  %5925 = vrot.lane.b32.xlu0 %v5924_v59, %s6246_s20  ;;  %5935 = vrot.lane.b32.xlu1 %v5934_v9, %s6242_s16  ;;  %v3953_v11 = vcombine.high %v8394_v10, %v9655_v43 }
 0x4d1   : > { %v8527_v22 = vpop.permute.xlu1 %4334  ;;  %v8529_v49 = vpop.permute.xlu0 %4330  ;;  %v8543_v59 = vrot.slane %v3287_v23, %v6369_v36  ;;  %v8556_v50 = vrot.slane %v3536_v14, %v6369_v36  ;;  %v9661_v23 = vcombine.low %v8260_v33, %v8263_v34  ;;  %v3551_v14 = vrot.slane %v3537_v63, %v6369_v36 }
 0x4d2   : > { %v3751_v25 = vcombine.high %v8514_v54, %v8522_v45  ;;  %v3766_v3 = vcombine.low %v3733_v26, %v3749_v58  ;;  %v5949_v8 = vpack.i.bf16 %v3953_v11, %v3485_v24  ;;  %v9662_v24 = vcombine.low %v8268_v17, %v8271_v20 }
 0x4d3   : > { %v3715_v11 = vcombine.high %v8424_v48, %v9655_v43  ;;  %v3716_v48 = vcombine.high %v8415_v37, %v9655_v43  ;;  %v3954_v37 = vcombine.high %v8454_v62, %v9655_v43  ;;  %v9665_v62 = vcombine.low %v8212_v55, %v8215_v29 }
 0x4d4   : > { %5930 = vrot.lane.b32.xlu0 %v5929_v52, %s6241_s24  ;;  %5940 = vrot.lane.b32.xlu1 %v5939_v61, %s6241_s24  ;;  %v8546_v13 = vrot.slane %v3751_v25, %v6369_v36  ;;  %v3774_v9 = vrot.slane %v3766_v3, %v6369_v36  ;;  %v3310_v52 = vrot.slane %v9661_v23, %v6369_v36 }
 0x4d5   : > { %v8548_v6 = vpop.permute.xlu1 %4790  ;;  %v8550_v2 = vpop.permute.xlu0 %4338  ;;  %v8568_v61 = vrot.slane %v9662_v24, %v6369_v36  ;;  %v3251_v23 = vcombine.high %v8421_v44, %v9655_v43  ;;  %v3717_v55 = vcombine.high %v8463_v0, %v9655_v43  ;;  %v9669_v0 = vcombine.low %v8236_v28, %v8239_v32 }
 0x4d6   : > { %v5944_v10 = vpack.i.bf16 %v8546_v13, %v8543_v59  ;;  %v5964_v7 = vpack.i.bf16 %v3774_v9, %v3310_v52  ;;  %v3320_v28 = vcombine.high %v3310_v52, %v9655_v43 }
 0x4d7   : > { %v5954_v19 = vpack.i.bf16 %v8568_v61, %v8556_v50  ;;  %v5959_v42 = vpack.i.bf16 %v3715_v11, %v3251_v23 }
 0x4d8   : > { %5950 = vrot.lane.b32.xlu1 %v5949_v8, %s6243_s17  ;;  %5945 = vrot.lane.b32.xlu0 %v5944_v10, %s6242_s16  ;;  %v9663_v8 = vcombine.high %v8268_v17, %v8271_v20  ;;  %v3767_v17 = vcombine.high %v3733_v26, %v3749_v58  ;;  %v3252_v20 = vcombine.high %v8411_v12, %v9655_v43 }
 0x4d9   : > { %v8570_v25 = vpop.permute.xlu1 %4798  ;;  %v8572_v3 = vpop.permute.xlu0 %4794  ;;  %v3750_v12 = vcombine.low %v8514_v54, %v8522_v45  ;;  %v3955_v26 = vcombine.high %v8440_v60, %v9655_v43  ;;  %v8622_v58 = vrot.slane %v9665_v62, %v6369_v36  ;;  %v9667_v54 = vcombine.high %v8260_v33, %v8263_v34 }
 0x4da   : > { %v4019_v10 = vrot.slane %v9663_v8, %v6369_v36  ;;  %v5979_v8 = vpack.i.bf16 %v3716_v48, %v3252_v20 }
 0x4db   : > { %9666 = vst [vmem:[#allocation10_spill] sm:$0xff] %v8622_v58  ;;  %v3317_v45 = vrot.slane %v9667_v54, %v6369_v36  ;;  %v8638_v29 = vrot.slane %v3750_v12, %v6369_v36  ;;  %v4432_v12 = vcombine.low %v8529_v49, %v8550_v2  ;;  %v3555_v54 = vcombine.high %v3551_v14, %v9655_v43 }
 0x4dc   : > { %5965 = vrot.lane.b32.xlu1 %v5964_v7, %s6244_s18  ;;  %5955 = vrot.lane.b32.xlu0 %v5954_v19, %s6244_s18  ;;  %v5974_v63 = vpack.i.bf16 %v4019_v10, %v3551_v14  ;;  %v3520_v7 = vcombine.low %v8443_v31, %v8446_v15  ;;  %v3486_v19 = vcombine.high %v8434_v4, %v9655_v43 }
 0x4dd   : > { %v8587_v24 = vpop.permute.xlu1 %4324  ;;  %v8589_v40 = vpop.permute.xlu0 %4802  ;;  %v3487_v31 = vcombine.high %v8427_v38, %v9655_v43  ;;  %9668 = vst [vmem:[#allocation23_spill] sm:$0xff] %v8638_v29  ;;  %v8690_v14 = vrot.slane %v4432_v12, %v6357_v21 }
 0x4de   : > { %v8610_v4 = vrot.slane %v3520_v7, %v6369_v36  ;;  %v5969_v15 = vpack.i.bf16 %v3954_v37, %v3486_v19  ;;  %v4020_v7 = vcombine.high %v8622_v58, %v9655_v43  ;;  %v3253_v19 = vcombine.high %v8460_v30, %v9655_v43 }
 0x4df   : > { %v4896_v20 = vcombine.low %v8572_v3, %v8589_v40  ;;  %v4880_v30 = vcombine.low %v8548_v6, %v8570_v25 }
 0x4e0   : > { %5975 = vrot.lane.b32.xlu1 %v5974_v63, %s6246_s20  ;;  %5960 = vrot.lane.b32.xlu0 %v5959_v42, %s6243_s17  ;;  %9664 = vst [vmem:[#allocation8_spill] sm:$0xff] %v8610_v4  ;;  %v3781_v42 = vrot.slane %v3767_v17, %v6369_v36  ;;  %v5989_v63 = vpack.i.bf16 %v3955_v26, %v3487_v31 }
 0x4e1   : > { %v8601_v44 = vpop.permute.xlu1 %4332  ;;  %v8603_v11 = vpop.permute.xlu0 %4328  ;;  %v3552_v60 = vcombine.high %v8610_v4, %v9655_v43  ;;  %v8654_v17 = vrot.slane %v9669_v0, %v6369_v36  ;;  %v5994_v31 = vpack.i.bf16 %v3717_v55, %v3253_v19  ;;  %v3553_v19 = vcombine.high %v8493_v35, %v9655_v43 }
 0x4e2   : > { %v5984_v48 = vpack.i.bf16 %v3781_v42, %v3317_v45  ;;  %v4582_v0 = vcombine.low %v8333_v1, %v8342_v47  ;;  %v3785_v12 = vcombine.high %v3781_v42, %v9655_v43  ;;  %v3319_v42 = vcombine.high %v8543_v59, %v9655_v43 }
 0x4e3   : > { %9670 = vst [vmem:[#allocation21_spill] sm:$0xff] %v8654_v17  ;;  %v5999_v37 = vpack.i.bf16 %v4020_v7, %v3552_v60  ;;  %v3318_v62 = vcombine.high %v8654_v17, %v9655_v43  ;;  %v8680_v60 = vrot.slane %v4896_v20, %v6357_v21  ;;  %v4023_v7 = vcombine.high %v4019_v10, %v9655_v43 }
 0x4e4   : > { %5980 = vrot.lane.b32.xlu1 %v5979_v8, %s6245_s19  ;;  %5970 = vrot.lane.b32.xlu0 %v5969_v15, %s6245_s19  ;;  %v3784_v8 = vcombine.high %v3774_v9, %v9655_v43  ;;  %v3782_v15 = vcombine.high %v8638_v29, %v9655_v43  ;;  %v4897_v59 = vcombine.high %v8572_v3, %v8589_v40 }
 0x4e5   : > { %v8625_v38 = vpop.permute.xlu1 %4788  ;;  %v8627_v23 = vpop.permute.xlu0 %4336 }
 0x4e6   : > { %v6004_v55 = vpack.i.bf16 %v3782_v15, %v3318_v62  ;;  %v4364_v20 = vcombine.low %v8603_v11, %v8627_v23  ;;  %v4021_v15 = vcombine.high %v8499_v16, %v9655_v43  ;;  %v4348_v62 = vcombine.low %v8587_v24, %v8601_v44 }
 0x4e7   : > { %v3321_v16 = vcombine.high %v3317_v45, %v9655_v43 }
 0x4e8   : > { %5990 = vrot.lane.b32.xlu1 %v5989_v63, %s6247_s21  ;;  %5985 = vrot.lane.b32.xlu0 %v5984_v48, %s6246_s20  ;;  %v4416_v63 = vcombine.low %v8501_v56, %v8527_v22  ;;  %v6024_v48 = vpack.i.bf16 %v3784_v8, %v3320_v28 }
 0x4e9   : > { %v8644_v33 = vpop.permute.xlu1 %4796  ;;  %v8646_v34 = vpop.permute.xlu0 %4792 }
 0x4ea   : > { %v4812_v8 = vcombine.low %v8625_v38, %v8644_v33  ;;  %v8711_v28 = vrot.slane %v4416_v63, %v6357_v21  ;;  %v8726_v63 = vrot.slane %v4364_v20, %v6357_v21 }
 0x4ec   : > { %6000 = vrot.lane.b32.xlu1 %v5999_v37, %s6241_s24  ;;  %5995 = vrot.lane.b32.xlu0 %v5994_v31, %s6247_s21  ;;  %v8693_v37 = vrot.slane %v4880_v30, %v6357_v21  ;;  %v6029_v31 = vpack.i.bf16 %v4023_v7, %v3555_v54  ;;  %v4598_v30 = vcombine.low %v8345_v5, %v8353_v46 }
 0x4ed   : > { %v8670_v9 = vpop.permute.xlu1 %4096  ;;  %v8672_v26 = vpop.permute.xlu0 %4800  ;;  %v3783_v7 = vcombine.high %v8546_v13, %v9655_v43  ;;  %v8729_v32 = vrot.slane %v4812_v8, %v6357_v21  ;;  %v6034_v8 = vpack.i.bf16 %v3785_v12, %v3321_v16  ;;  %v4881_v12 = vcombine.high %v8548_v6, %v8570_v25 }
 0x4ee   : > { %v4828_v52 = vcombine.low %v8646_v34, %v8672_v26  ;;  %v4913_v54 = vcombine.high %v8693_v37, %v8680_v60  ;;  %v4433_v16 = vcombine.high %v8529_v49, %v8550_v2  ;;  %v8777_v6 = vrot.slane %v4897_v59, %v6357_v21 }
 0x4ef   : > { %v4022_v25 = vcombine.high %v8568_v61, %v9655_v43  ;;  %v8799_v59 = vrot.slane %v4881_v12, %v6357_v21  ;;  %v4829_v61 = vcombine.high %v8646_v34, %v8672_v26  ;;  %v4365_v12 = vcombine.high %v8603_v11, %v8627_v23 }
 0x4f0   : > { %6025 = vrot.lane.b32.xlu1 %v6024_v48, %s6245_s19  ;;  %6005 = vrot.lane.b32.xlu0 %v6004_v55, %s6241_s24  ;;  %v8716_v48 = vrot.slane %v4828_v52, %v6357_v21  ;;  %v6009_v55 = vpack.i.bf16 %v4021_v15, %v3553_v19  ;;  %v4449_v52 = vcombine.high %v8711_v28, %v8690_v14 }
 0x4f1   : > { %v8701_v35 = vpop.permute.xlu1 %4104  ;;  %v8703_v10 = vpop.permute.xlu0 %4100  ;;  %v8735_v19 = vrot.slane %v4582_v0, %v6357_v21  ;;  %v8748_v15 = vrot.slane %v4348_v62, %v6357_v21  ;;  %v8753_v40 = vrot.slane %v4913_v54, %v6369_v36  ;;  %v3554_v62 = vcombine.high %v8556_v50, %v9655_v43 }
 0x4f2   : > { %v4186_v13 = vcombine.low %v8670_v9, %v8701_v35  ;;  %v4845_v3 = vcombine.high %v8729_v32, %v8716_v48  ;;  %v8770_v54 = vrot.slane %v4449_v52, %v6369_v36  ;;  %v4813_v34 = vcombine.high %v8625_v38, %v8644_v33 }
 0x4f3   : > { %v4349_v11 = vcombine.high %v8587_v24, %v8601_v44  ;;  %v4843_v38 = vrot.slane %v4829_v61, %v6357_v21 }
 0x4f4   : > { %6030 = vrot.lane.b32.xlu1 %v6029_v31, %s6247_s21  ;;  %6010 = vrot.lane.b32.xlu0 %v6009_v55, %s6243_s17  ;;  %v8745_v31 = vrot.slane %v4598_v30, %v6357_v21  ;;  %v4417_v55 = vcombine.high %v8501_v56, %v8527_v22  ;;  %v6014_v30 = vpack.i.bf16 %v3783_v7, %v3319_v42 }
 0x4f5   : > { %v4095_v45 = vpop.permute.xlu1 %4094  ;;  %v8742_v20 = vpop.permute.xlu0 %4108  ;;  %v4381_v56 = vcombine.high %v8748_v15, %v8726_v63  ;;  %v4583_v22 = vcombine.high %v8333_v1, %v8342_v47  ;;  %v8780_v50 = vrot.slane %v4186_v13, %v6357_v21  ;;  %v9671_v42 = vcombine.high %v8345_v5, %v8353_v46 }
 0x4f6   : > { %v4202_v0 = vcombine.low %v8703_v10, %v8742_v20  ;;  %v6039_v1 = vpack.i.bf16 %v8753_v40, %v8770_v54  ;;  %v8794_v47 = vrot.slane %v4845_v3, %v6369_v36  ;;  %v4615_v52 = vcombine.high %v8735_v19, %v8745_v31 }
 0x4f7   : > { %v8789_v7 = vrot.slane %v9671_v42, %v6357_v21  ;;  %v6019_v13 = vpack.i.bf16 %v4022_v25, %v3554_v62  ;;  %v8806_v46 = vrot.slane %v4417_v55, %v6357_v21  ;;  %v8813_v3 = vrot.slane %v4381_v56, %v6369_v36 }
 0x4f8   : > { %v8766_v17 = vrot.slane %v4202_v0, %v6357_v21  ;;  %6035 = vrot.lane.b32.xlu1 %v6034_v8, %s6247_s21  ;;  %6015 = vrot.lane.b32.xlu0 %v6014_v30, %s6243_s17  ;;  %v8809_v8 = vrot.slane %v4433_v16, %v6357_v21  ;;  %v4928_v30 = vcombine.low %v8799_v59, %v8777_v6 }
 0x4f9   : > { %v4103_v49 = vpop.permute.xlu1 %4102  ;;  %v4099_v2 = vpop.permute.xlu0 %4098  ;;  %v6044_v25 = vpack.i.bf16 %v8794_v47, %v8813_v3  ;;  %v4203_v23 = vcombine.high %v8703_v10, %v8742_v20  ;;  %v4379_v10 = vrot.slane %v4365_v12, %v6357_v21  ;;  %v4827_v20 = vrot.slane %v4813_v34, %v6357_v21 }
 0x4fa   : > { %v4219_v5 = vcombine.high %v8780_v50, %v8766_v17  ;;  %v4119_v0 = vcombine.high %v4095_v45, %v4103_v49  ;;  %v4118_v26 = vcombine.low %v4095_v45, %v4103_v49  ;;  %v9672_v45 = vcombine.high %v8300_v51, %v8303_v18 }
 0x4fb   : > { %v4464_v44 = vcombine.low %v8806_v46, %v8809_v8  ;;  %v8867_v12 = vrot.slane %v4928_v30, %v6369_v36  ;;  %v4363_v34 = vrot.slane %v4349_v11, %v6357_v21  ;;  %v4861_v29 = vcombine.high %v4827_v20, %v4843_v38 }
 0x4fc   : > { %6040 = vrot.lane.b32.xlu1 %v6039_v1, %s6242_s16  ;;  %6020 = vrot.lane.b32.xlu0 %v6019_v13, %s6245_s19  ;;  %v8825_v56 = vrot.slane %v4219_v5, %v6369_v36  ;;  %v8838_v49 = vrot.slane %v9672_v45, %v6369_v36  ;;  %v4187_v1 = vcombine.high %v8670_v9, %v8701_v35 }
 0x4fd   : > { %v4107_v55 = vpop.permute.xlu0 %4106  ;;  %v8832_v33 = vpop.permute.xlu1 %5020  ;;  %v8857_v61 = vrot.slane %v4118_v26, %v6357_v21  ;;  %v8860_v5 = vrot.slane %v4583_v22, %v6357_v21  ;;  %v4217_v9 = vrot.slane %v4203_v23, %v6357_v21  ;;  %v4860_v26 = vcombine.low %v4827_v20, %v4843_v38 }
 0x4fe   : > { %v4134_v62 = vcombine.low %v4099_v2, %v4107_v55  ;;  %v4135_v16 = vcombine.high %v4099_v2, %v4107_v55  ;;  %v8841_v2 = vrot.slane %v4119_v0, %v6357_v21  ;;  %v6049_v55 = vpack.i.bf16 %v8838_v49, %v8825_v56 }
 0x4ff   : > { %v8875_v22 = vrot.slane %v4464_v44, %v6369_v36  ;;  %v8884_v23 = vrot.slane %v4615_v52, %v6369_v36  ;;  %v4396_v45 = vcombine.low %v4363_v34, %v4379_v10  ;;  %v8894_v58 = vrot.slane %v4860_v26, %v6369_v36 }
 0x500   : > { %v8844_v42 = vrot.slane %v4134_v62, %v6357_v21  ;;  %v8847_v24 = vrot.slane %v4135_v16, %v6357_v21  ;;  %6045 = vrot.lane.b32.xlu1 %v6044_v25, %s6242_s16  ;;  %v4630_v62 = vcombine.low %v8860_v5, %v8789_v7  ;;  %v4201_v16 = vrot.slane %v4187_v1, %v6357_v21 }
 0x501   : > { %v5025_v13 = vpop.permute.xlu0 %5024  ;;  %v5029_v30 = vpop.permute.xlu1 %5028  ;;  %v6054_v4 = vpack.i.bf16 %v8867_v12, %v8875_v22  ;;  %v4397_v53 = vcombine.high %v4363_v34, %v4379_v10  ;;  %v8903_v20 = vrot.slane %v4396_v45, %v6369_v36 }
 0x502   : > { %v4166_v0 = vcombine.low %v8841_v2, %v8847_v24  ;;  %v4151_v35 = vcombine.high %v8857_v61, %v8844_v42  ;;  %v5110_v52 = vcombine.low %v8832_v33, %v5029_v30  ;;  %v8899_v38 = vrot.slane %v4630_v62, %v6369_v36 }
 0x503   : > { %v6064_v62 = vpack.i.bf16 %v8894_v58, %v8903_v20 }
 0x504   : > { %6050 = vrot.lane.b32.xlu1 %v6049_v55, %s6242_s16  ;;  %v8881_v11 = vrot.slane %v4151_v35, %v6369_v36  ;;  %v8887_v55 = vrot.slane %v4166_v0, %v6369_v36  ;;  %v4234_v35 = vcombine.low %v4201_v16, %v4217_v9  ;;  %v8906_v0 = vrot.slane %v4861_v29, %v6369_v36 }
 0x505   : > { %v5033_v25 = vpop.permute.xlu0 %5032  ;;  %v8921_v29 = vrot.slane %v4397_v53, %v6369_v36 }
 0x506   : > { %v5126_v44 = vcombine.low %v5025_v13, %v5033_v25  ;;  %v6059_v1 = vpack.i.bf16 %v8884_v23, %v8881_v11  ;;  %v5127_v57 = vcombine.high %v5025_v13, %v5033_v25  ;;  %v6079_v34 = vpack.i.bf16 %v8899_v38, %v8887_v55 }
 0x507   : > { %v8918_v45 = vrot.slane %v4234_v35, %v6369_v36  ;;  %v5111_v13 = vcombine.high %v8832_v33, %v5029_v30  ;;  %v8925_v25 = vrot.slane %v5110_v52, %v6357_v21  ;;  %v6084_v30 = vpack.i.bf16 %v8906_v0, %v8921_v29 }
 0x508   : > { %6055 = vrot.lane.b32.xlu1 %v6054_v4, %s6244_s18  ;;  %6060 = vrot.lane.b32.xlu0 %v6059_v1, %s6242_s16  ;;  %v8909_v26 = vrot.slane %v5126_v44, %v6357_v21  ;;  %v4929_v4 = vcombine.high %v8799_v59, %v8777_v6  ;;  %v5019_v44 = vpop.permute.xlu1 %5018  ;;  %v4465_v6 = vcombine.high %v8806_v46, %v8809_v8 }
 0x509   : > { %v5023_v10 = vpop.permute.xlu0 %5022  ;;  %v9673_v59 = vcombine.low %v8306_v41, %v8309_v27  ;;  %v5141_v53 = vrot.slane %v5127_v57, %v6357_v21  ;;  %v4235_v46 = vcombine.high %v4201_v16, %v4217_v9  ;;  %v5125_v52 = vrot.slane %v5111_v13, %v6357_v21 }
 0x50a   : > { %v5143_v33 = vcombine.high %v8925_v25, %v8909_v26  ;;  %v8943_v35 = vrot.slane %v4929_v4, %v6369_v36  ;;  %v8951_v57 = vrot.slane %v4465_v6, %v6369_v36  ;;  %v4167_v13 = vcombine.high %v8841_v2, %v8847_v24 }
 0x50b   : > { %v8935_v1 = vrot.slane %v9673_v59, %v6369_v36  ;;  %v5158_v59 = vcombine.low %v5125_v52, %v5141_v53  ;;  %v8959_v16 = vrot.slane %v4235_v46, %v6369_v36  ;;  %v4448_v6 = vcombine.low %v8711_v28, %v8690_v14 }
 0x50c   : > { %6080 = vrot.lane.b32.xlu1 %v6079_v34, %s6244_s18  ;;  %6065 = vrot.lane.b32.xlu0 %v6064_v62, %s6244_s18  ;;  %v4912_v62 = vcombine.low %v8693_v37, %v8680_v60  ;;  %v5027_v4 = vpop.permute.xlu1 %5026  ;;  %v8956_v9 = vrot.slane %v5143_v33, %v6369_v36  ;;  %v9674_v37 = vcombine.high %v8306_v41, %v8309_v27 }
 0x50d   : > { %v6069_v8 = vpack.i.bf16 %v8935_v1, %v8918_v45  ;;  %v5031_v34 = vpop.permute.xlu0 %5030  ;;  %v5042_v60 = vcombine.low %v5019_v44, %v5027_v4  ;;  %v4631_v2 = vcombine.high %v8860_v5, %v8789_v7  ;;  %v5159_v46 = vcombine.high %v5125_v52, %v5141_v53 }
 0x50e   : > { %v8974_v33 = vrot.slane %v9674_v37, %v6369_v36  ;;  %v8979_v24 = vrot.slane %v4912_v62, %v6369_v36  ;;  %v8982_v14 = vrot.slane %v5158_v59, %v6369_v36  ;;  %v8985_v28 = vrot.slane %v4167_v13, %v6369_v36 }
 0x50f   : > { %v8993_v27 = vrot.slane %v4448_v6, %v6369_v36  ;;  %v5043_v7 = vcombine.high %v5019_v44, %v5027_v4  ;;  %v8998_v5 = vrot.slane %v5042_v60, %v6357_v21  ;;  %v9005_v53 = vrot.slane %v5159_v46, %v6369_v36 }
 0x510   : > { %6085 = vrot.lane.b32.xlu1 %v6084_v30, %s6246_s20  ;;  %6070 = vrot.lane.b32.xlu0 %v6069_v8, %s6244_s18  ;;  %v5058_v30 = vcombine.low %v5023_v10, %v5031_v34  ;;  %v6074_v8 = vpack.i.bf16 %v8943_v35, %v8951_v57  ;;  %v6089_v41 = vpack.i.bf16 %v8974_v33, %v8959_v16 }
 0x511   : > { %v4944_v52 = vcombine.high %v8979_v24, %v9655_v43  ;;  %v4480_v59 = vcombine.high %v8993_v27, %v9655_v43  ;;  %v5057_v4 = vrot.slane %v5043_v7, %v6357_v21  ;;  %v4251_v13 = vcombine.high %v8825_v56, %v9655_v43 }
 0x512   : > { %v8988_v39 = vrot.slane %v5058_v30, %v6357_v21  ;;  %v4844_v6 = vcombine.low %v8729_v32, %v8716_v48  ;;  %v4946_v56 = vcombine.high %v8867_v12, %v9655_v43  ;;  %v4218_v48 = vcombine.low %v8780_v50, %v8766_v17 }
 0x513   : > { %v6099_v30 = vpack.i.bf16 %v4944_v52, %v4480_v59  ;;  %v4183_v12 = vcombine.high %v8881_v11, %v9655_v43  ;;  %v4647_v7 = vcombine.high %v8884_v23, %v9655_v43  ;;  %v9675_v52 = vcombine.low %v8300_v51, %v8303_v18 }
 0x514   : > { %5211 = vrot.lane.b32.xlu1 %v8956_v9, %s6242_s16  ;;  %6075 = vrot.lane.b32.xlu0 %v6074_v8, %s6246_s20  ;;  %v5059_v8 = vcombine.high %v5023_v10, %v5031_v34  ;;  %v9002_v10 = vrot.slane %v4631_v2, %v6369_v36  ;;  %v5075_v62 = vcombine.high %v8998_v5, %v8988_v39 }
 0x515   : > { %v4715_v2 = vcombine.high %v8838_v49, %v9655_v43  ;;  %v9037_v32 = vrot.slane %v4844_v6, %v6369_v36  ;;  %v9055_v17 = vrot.slane %v4218_v48, %v6369_v36  ;;  %v4150_v23 = vcombine.low %v8857_v61, %v8844_v42 }
 0x516   : > { %v5073_v34 = vrot.slane %v5059_v8, %v6357_v21  ;;  %v6094_v44 = vpack.i.bf16 %v9002_v10, %v8985_v28  ;;  %v9025_v37 = vrot.slane %v5075_v62, %v6369_v36  ;;  %v4380_v21 = vcombine.low %v8748_v15, %v8726_v63 }
 0x517   : > { %v6129_v46 = vpack.i.bf16 %v4715_v2, %v4251_v13  ;;  %v4482_v63 = vcombine.high %v8875_v22, %v9655_v43  ;;  %v4876_v22 = vcombine.high %v9037_v32, %v9655_v43  ;;  %v4878_v62 = vcombine.high %v8894_v58, %v9655_v43 }
 0x518   : > { %5219 = vrot.lane.b32.xlu1 %v8982_v14, %s6244_s18  ;;  %6090 = vrot.lane.b32.xlu0 %v6089_v41, %s6246_s20  ;;  %v5090_v60 = vcombine.low %v5057_v4, %v5073_v34  ;;  %v5091_v8 = vcombine.high %v5057_v4, %v5073_v34  ;;  %v9048_v15 = vrot.slane %v4380_v21, %v6369_v36 }
 0x519   : > { %v6134_v41 = vpack.i.bf16 %v4946_v56, %v4482_v63  ;;  %v9073_v34 = vrot.slane %v9675_v52, %v6369_v36  ;;  %v4250_v4 = vcombine.high %v9055_v17, %v9655_v43  ;;  %v4414_v13 = vcombine.high %v8903_v20, %v9655_v43 }
 0x51a   : > { %v9042_v49 = vrot.slane %v5090_v60, %v6369_v36  ;;  %v9058_v50 = vrot.slane %v5091_v8, %v6369_v36  ;;  %v4412_v11 = vcombine.high %v9048_v15, %v9655_v43  ;;  %v4614_v51 = vcombine.low %v8735_v19, %v8745_v31 }
 0x51b   : > { %v4714_v18 = vcombine.high %v9073_v34, %v9655_v43  ;;  %v6144_v58 = vpack.i.bf16 %v4878_v62, %v4414_v13  ;;  %v4184_v42 = vcombine.high %v8887_v55, %v9655_v43  ;;  %v4945_v61 = vcombine.high %v8753_v40, %v9655_v43 }
 0x51c   : > { %5227 = vrot.lane.b32.xlu1 %v9005_v53, %s6246_s20  ;;  %6095 = vrot.lane.b32.xlu0 %v6094_v44, %s6246_s20  ;;  %v6139_v44 = vpack.i.bf16 %v4647_v7, %v4183_v12  ;;  %v6104_v59 = vpack.i.bf16 %v4876_v22, %v4412_v11  ;;  %v4648_v19 = vcombine.high %v8899_v38, %v9655_v43 }
 0x51d   : > { %v6109_v20 = vpack.i.bf16 %v4714_v18, %v4250_v4  ;;  %v4481_v31 = vcombine.high %v8770_v54, %v9655_v43  ;;  %v9103_v6 = vrot.slane %v4614_v51, %v6369_v36  ;;  %v4879_v40 = vcombine.high %v8906_v0, %v9655_v43 }
 0x51e   : > { %v6159_v55 = vpack.i.bf16 %v4648_v19, %v4184_v42  ;;  %v4415_v38 = vcombine.high %v8921_v29, %v9655_v43  ;;  %v5142_v21 = vcombine.low %v8925_v25, %v8909_v26  ;;  %v4877_v48 = vcombine.high %v8794_v47, %v9655_v43 }
 0x51f   : > { %v6114_v60 = vpack.i.bf16 %v4945_v61, %v4481_v31  ;;  %v4646_v54 = vcombine.high %v9103_v6, %v9655_v43  ;;  %v4717_v29 = vcombine.high %v8974_v33, %v9655_v43  ;;  %v4413_v63 = vcombine.high %v8813_v3, %v9655_v43 }
 0x520   : > { %6100 = vrot.lane.b32.xlu1 %v6099_v30, %s6241_s24  ;;  %5183 = vrot.lane.b32.xlu0 %v9025_v37, %s6242_s16  ;;  %v9094_v30 = vrot.slane %v4150_v23, %v6369_v36  ;;  %v6164_v0 = vpack.i.bf16 %v4879_v40, %v4415_v38  ;;  %v9130_v26 = vrot.slane %v5142_v21, %v6369_v36 }
 0x521   : > { %v4252_v47 = vcombine.high %v8918_v45, %v9655_v43  ;;  %v4716_v33 = vcombine.high %v8935_v1, %v9655_v43  ;;  %v4947_v52 = vcombine.high %v8943_v35, %v9655_v43  ;;  %v4483_v45 = vcombine.high %v8951_v57, %v9655_v43 }
 0x522   : > { %v4182_v2 = vcombine.high %v9094_v30, %v9655_v43  ;;  %v5174_v7 = vcombine.high %v9130_v26, %v9655_v43  ;;  %v5074_v23 = vcombine.low %v8998_v5, %v8988_v39  ;;  %v4185_v35 = vcombine.high %v8985_v28, %v9655_v43 }
 0x523   : > { %v6149_v11 = vpack.i.bf16 %v4716_v33, %v4252_v47  ;;  %v4649_v57 = vcombine.high %v9002_v10, %v9655_v43  ;;  %v5176_v51 = vcombine.high %v8982_v14, %v9655_v43  ;;  %v5177_v18 = vcombine.high %v9005_v53, %v9655_v43 }
 0x524   : > { %6130 = vrot.lane.b32.xlu1 %v6129_v46, %s6243_s17  ;;  %5191 = vrot.lane.b32.xlu0 %v9042_v49, %s6244_s18  ;;  %v4253_v46 = vcombine.high %v8959_v16, %v9655_v43  ;;  %v6119_v8 = vpack.i.bf16 %v4646_v54, %v4182_v2  ;;  %v5107_v42 = vcombine.high %v9025_v37, %v9655_v43 }
 0x525   : > { %v6174_v39 = vpack.i.bf16 %v4649_v57, %v4185_v35 }
 0x526   : > { %v6169_v12 = vpack.i.bf16 %v4717_v29, %v4253_v46  ;;  %v5368_v46 = vld [vmem:[%s9558_s6] sm:$0xf] }
 0x528   : > { %6135 = vrot.lane.b32.xlu1 %v6134_v41, %s6245_s19  ;;  %5199 = vrot.lane.b32.xlu0 %v9058_v50, %s6246_s20  ;;  %v6124_v41 = vpack.i.bf16 %v4877_v48, %v4413_v63  ;;  %v9676_v48 = vld [vmem:[#allocation19_spill] sm:$0xff] }
 0x52c   : > { %6140 = vrot.lane.b32.xlu1 %v6139_v44, %s6243_s17  ;;  %6105 = vrot.lane.b32.xlu0 %v6104_v59, %s6241_s24  ;;  %v5175_v44 = vcombine.high %v8956_v9, %v9655_v43  ;;  %v6154_v59 = vpack.i.bf16 %v4947_v52, %v4483_v45  ;;  %v9171_v9 = vrot.slane %v5074_v23, %v6369_v36 }
 0x52e   : > { %v5106_v10 = vcombine.high %v9171_v9, %v9655_v43 }
 0x530   : > { %6145 = vrot.lane.b32.xlu1 %v6144_v58, %s6245_s19  ;;  %6110 = vrot.lane.b32.xlu0 %v6109_v20, %s6241_s24  ;;  %v5360_v58 = vld [vmem:[%s9557_s5] sm:$0xf]  ;;  %v5108_v20 = vcombine.high %v9042_v49, %v9655_v43 }
 0x532   : > { %v9117_v56 = vpop.permute.xlu1 %5900 }
 0x533   : > { %v5903_v38 = vunpack.i.h.bf16 %v9117_v56  ;;  %v5902_v54 = vunpack.i.l.bf16 %v9117_v56  ;;  %v9678_v56 = vld [vmem:[#allocation16_spill] sm:$0xff] }
 0x534   : > { %6160 = vrot.lane.b32.xlu1 %v6159_v55, %s6245_s19  ;;  %6115 = vrot.lane.b32.xlu0 %v6114_v60, %s6243_s17  ;;  %v5109_v60 = vcombine.high %v9058_v50, %v9655_v43  ;;  %v9677_v50 = vld [vmem:[#allocation18_spill] sm:$0xff] }
 0x538   : > { %6165 = vrot.lane.b32.xlu1 %v6164_v0, %s6247_s21  ;;  %6120 = vrot.lane.b32.xlu0 %v6119_v8, %s6241_s24 }
 0x53a   : > { %v9132_v25 = vpop.permute.xlu1 %5905  ;;  %v9134_v16 = vpop.permute.xlu0 %5915 }
 0x53b   : > { %v5908_v21 = vunpack.i.h.bf16 %v9132_v25  ;;  %v5907_v49 = vunpack.i.l.bf16 %v9132_v25  ;;  %v9679_v25 = vld [vmem:[#allocation7_spill] sm:$0xff]  ;;  %v5917_v52 = vunpack.i.l.bf16 %v9134_v16 }
 0x53c   : > { %6170 = vrot.lane.b32.xlu1 %v6169_v12, %s6247_s21  ;;  %6125 = vrot.lane.b32.xlu0 %v6124_v41, %s6243_s17 }
 0x53e   : > { %v9142_v3 = vpop.permute.xlu1 %5910  ;;  %v9144_v22 = vpop.permute.xlu0 %5920 }
 0x53f   : > { %v5913_v45 = vunpack.i.h.bf16 %v9142_v3  ;;  %v5923_v23 = vunpack.i.h.bf16 %v9144_v22 }
 0x540   : > { %5207 = vrot.lane.b32.xlu1 %v5174_v7, %s6241_s24  ;;  %6150 = vrot.lane.b32.xlu0 %v6149_v11, %s6245_s19  ;;  %v5918_v11 = vunpack.i.h.bf16 %v9134_v16 }
 0x542   : > { %v9154_v1 = vpop.permute.xlu1 %5935  ;;  %v9156_v62 = vpop.permute.xlu0 %5925 }
 0x544   : > { %5215 = vrot.lane.b32.xlu1 %v5175_v44, %s6243_s17  ;;  %6155 = vrot.lane.b32.xlu0 %v6154_v59, %s6247_s21  ;;  %v5912_v44 = vunpack.i.l.bf16 %v9142_v3  ;;  %v5922_v59 = vunpack.i.l.bf16 %v9144_v22 }
 0x546   : > { %v5941_v4 = vpop.permute.xlu1 %5940  ;;  %v5931_v13 = vpop.permute.xlu0 %5930 }
 0x547   : > { %v5933_v31 = vunpack.i.h.bf16 %v5931_v13  ;;  %v5932_v55 = vunpack.i.l.bf16 %v5931_v13  ;;  %v5943_v2 = vunpack.i.h.bf16 %v5941_v4  ;;  %v5942_v37 = vunpack.i.l.bf16 %v5941_v4 }
 0x548   : > { %5223 = vrot.lane.b32.xlu1 %v5176_v51, %s6245_s19  ;;  %6175 = vrot.lane.b32.xlu0 %v6174_v39, %s6247_s21 }
 0x549   : > { %v4080_v43 = vsel %vm569_vm4, %v9676_v48, %v5933_v31  ;;  %v3612_v8 = vsel %vm569_vm4, %v9677_v50, %v5932_v55  ;;  %v3842_v47 = vsel %vm569_vm4, %v9678_v56, %v5943_v2  ;;  %v3378_v41 = vsel %vm569_vm4, %v9679_v25, %v5942_v37 }
 0x54a   : > { %v5951_v28 = vpop.permute.xlu1 %5950  ;;  %v9175_v5 = vpop.permute.xlu0 %5945  ;;  %v3613_v35 = vsel %vm571_vm5, %v3612_v8, %v5902_v54  ;;  %v4081_v57 = vsel %vm571_vm5, %v4080_v43, %v5903_v38  ;;  %v3379_v16 = vsel %vm571_vm5, %v3378_v41, %v5907_v49  ;;  %v3843_v39 = vsel %vm571_vm5, %v3842_v47, %v5908_v21 }
 0x54b   : > { %v5953_v29 = vunpack.i.h.bf16 %v5951_v28  ;;  %v5952_v63 = vunpack.i.l.bf16 %v5951_v28  ;;  %v5928_v31 = vunpack.i.h.bf16 %v9156_v62  ;;  %v5927_v55 = vunpack.i.l.bf16 %v9156_v62 }
 0x54c   : > { %5231 = vrot.lane.b32.xlu1 %v5177_v18, %s6247_s21  ;;  %5179 = vrot.lane.b32.xlu0 %v5106_v10, %s6241_s24  ;;  %v5947_v2 = vunpack.i.l.bf16 %v9175_v5 }
 0x54d   : > { %v3614_v13 = vsel %vm573_vm6, %v3613_v35, %v5952_v63  ;;  %v4082_v51 = vsel %vm573_vm6, %v4081_v57, %v5953_v29  ;;  %v9680_v57 = vld [vmem:[#allocation10_spill] sm:$0xff] }
 0x54e   : > { %v9183_v36 = vpop.permute.xlu1 %5965  ;;  %v9185_v14 = vpop.permute.xlu0 %5955  ;;  %v3615_v54 = vsel %vm575_vm7, %v3614_v13, %v5912_v44 }
 0x54f   : > { %v5967_v49 = vunpack.i.l.bf16 %v9183_v36  ;;  %v5958_v8 = vunpack.i.h.bf16 %v9185_v14  ;;  %v5957_v29 = vunpack.i.l.bf16 %v9185_v14 }
 0x550   : > { %5363 = vperm.xlu1 %6179, %v5360_v58   ;;  %5187 = vrot.lane.b32.xlu0 %v5107_v42, %s6243_s17  ;;  %v5938_v58 = vunpack.i.h.bf16 %v9154_v1  ;;  %v5937_v42 = vunpack.i.l.bf16 %v9154_v1  ;;  %v4083_v1 = vsel %vm575_vm7, %v4082_v51, %v5913_v45 }
 0x552   : > { %v9193_v53 = vpop.permute.xlu1 %5975  ;;  %v5961_v61 = vpop.permute.xlu0 %5960 }
 0x553   : > { %v5963_v33 = vunpack.i.h.bf16 %v5961_v61  ;;  %v5962_v7 = vunpack.i.l.bf16 %v5961_v61  ;;  %v5977_v25 = vunpack.i.l.bf16 %v9193_v53 }
 0x554   : > { %5195 = vrot.lane.b32.xlu0 %v5108_v20, %s6245_s19 }
 0x555   : > { %v3844_v3 = vsel %vm573_vm6, %v3843_v39, %v5963_v33  ;;  %v3380_v18 = vsel %vm573_vm6, %v3379_v16, %v5962_v7 }
 0x556   : > { %v5981_v19 = vpop.permute.xlu1 %5980  ;;  %v5971_v40 = vpop.permute.xlu0 %5970  ;;  %v3381_v38 = vsel %vm575_vm7, %v3380_v18, %v5917_v52 }
 0x557   : > { %v5983_v22 = vunpack.i.h.bf16 %v5981_v19  ;;  %v5982_v10 = vunpack.i.l.bf16 %v5981_v19  ;;  %v5973_v61 = vunpack.i.h.bf16 %v5971_v40  ;;  %v5972_v20 = vunpack.i.l.bf16 %v5971_v40 }
 0x558   : > { %5203 = vrot.lane.b32.xlu0 %v5109_v60, %s6247_s21  ;;  %v5948_v60 = vunpack.i.h.bf16 %v9175_v5  ;;  %v3845_v19 = vsel %vm575_vm7, %v3844_v3, %v5918_v11  ;;  %v5968_v40 = vunpack.i.h.bf16 %v9183_v36  ;;  %v5978_v36 = vunpack.i.h.bf16 %v9193_v53 }
 0x559   : > { %v3382_v62 = vsel %vm577_vm8, %v3381_v38, %v5982_v10  ;;  %v3616_v5 = vsel %vm577_vm8, %v3615_v54, %v5972_v20  ;;  %v4084_v48 = vsel %vm577_vm8, %v4083_v1, %v5973_v61 }
 0x55a   : > { %v9205_v0 = vpop.permute.xlu1 %5990  ;;  %v9214_v12 = vpop.permute.xlu0 %5985  ;;  %v3617_v11 = vsel %vm579_vm9, %v3616_v5, %v5922_v59  ;;  %v4085_v52 = vsel %vm579_vm9, %v4084_v48, %v5923_v23  ;;  %v3383_v45 = vsel %vm579_vm9, %v3382_v62, %v5927_v55  ;;  %v9683_v59 = vld [vmem:[#allocation21_spill] sm:$0xff] }
 0x55b   : > { %v5993_v41 = vunpack.i.h.bf16 %v9205_v0  ;;  %v5992_v33 = vunpack.i.l.bf16 %v9205_v0  ;;  %v5988_v44 = vunpack.i.h.bf16 %v9214_v12  ;;  %v5987_v35 = vunpack.i.l.bf16 %v9214_v12  ;;  %v9682_v0 = vld [vmem:[#allocation23_spill] sm:$0xff] }
 0x55c   : > { %5371 = vperm.xlu0 %6180, %v5368_v46   ;;  %v3846_v46 = vsel %vm577_vm8, %v3845_v19, %v5983_v22 }
 0x55d   : > { %v3847_v14 = vsel %vm579_vm9, %v3846_v46, %v5928_v31  ;;  %v3618_v18 = vsel %vm581_vm10, %v3617_v11, %v5992_v33  ;;  %v4086_v22 = vsel %vm581_vm10, %v4085_v52, %v5993_v41 }
 0x55e   : > { %v6001_v4 = vpop.permute.xlu1 %6000  ;;  %v9232_v28 = vpop.permute.xlu0 %5995  ;;  %v5256_v48 = vrot.slane %v4086_v22, 4 }
 0x55f   : > { %v6003_v43 = vunpack.i.h.bf16 %v6001_v4  ;;  %v6002_v50 = vunpack.i.l.bf16 %v6001_v4  ;;  %v9681_v4 = vld [vmem:[#allocation8_spill] sm:$0xff]  ;;  %v5998_v12 = vunpack.i.h.bf16 %v9232_v28  ;;  %v5997_v10 = vunpack.i.l.bf16 %v9232_v28 }
 0x561   : > { %v4087_v53 = vsel %vm569_vm4, %v9680_v57, %v6003_v43  ;;  %v3619_v13 = vsel %vm569_vm4, %v9681_v4, %v6002_v50  ;;  %v3848_v11 = vsel %vm581_vm10, %v3847_v14, %v5998_v12 }
 0x562   : > { %v9242_v37 = vpop.permute.xlu1 %6025  ;;  %v6006_v21 = vpop.permute.xlu0 %6005  ;;  %v3620_v20 = vsel %vm571_vm5, %v3619_v13, %v5937_v42  ;;  %v4088_v31 = vsel %vm571_vm5, %v4087_v53, %v5938_v58  ;;  %v5250_v58 = vrot.slane %v3618_v18, 4 }
 0x563   : > { %v6008_v63 = vunpack.i.h.bf16 %v6006_v21  ;;  %v6007_v56 = vunpack.i.l.bf16 %v6006_v21  ;;  %v6028_v19 = vunpack.i.h.bf16 %v9242_v37  ;;  %v6027_v54 = vunpack.i.l.bf16 %v9242_v37 }
 0x565   : > { %v3849_v51 = vsel %vm569_vm4, %v9682_v0, %v6008_v63  ;;  %v3385_v23 = vsel %vm569_vm4, %v9683_v59, %v6007_v56 }
 0x566   : > { %v9256_v47 = vpop.permute.xlu1 %6030  ;;  %v6011_v7 = vpop.permute.xlu0 %6010  ;;  %v3386_v1 = vsel %vm571_vm5, %v3385_v23, %v5947_v2  ;;  %v3850_v21 = vsel %vm571_vm5, %v3849_v51, %v5948_v60 }
 0x567   : > { %v6013_v16 = vunpack.i.h.bf16 %v6011_v7  ;;  %v6012_v39 = vunpack.i.l.bf16 %v6011_v7  ;;  %v3384_v7 = vsel %vm581_vm10, %v3383_v45, %v5997_v10  ;;  %v6033_v52 = vunpack.i.h.bf16 %v9256_v47 }
 0x569   : > { %v4089_v62 = vsel %vm573_vm6, %v4088_v31, %v6013_v16  ;;  %v3621_v46 = vsel %vm573_vm6, %v3620_v20, %v6012_v39 }
 0x56a   : > { %v6036_v3 = vpop.permute.xlu1 %6035  ;;  %v6016_v61 = vpop.permute.xlu0 %6015  ;;  %v3622_v41 = vsel %vm575_vm7, %v3621_v46, %v5957_v29  ;;  %v4090_v33 = vsel %vm575_vm7, %v4089_v62, %v5958_v8 }
 0x56b   : > { %v6018_v55 = vunpack.i.h.bf16 %v6016_v61  ;;  %v6017_v38 = vunpack.i.l.bf16 %v6016_v61  ;;  %v6038_v13 = vunpack.i.h.bf16 %v6036_v3  ;;  %v6037_v14 = vunpack.i.l.bf16 %v6036_v3 }
 0x56d   : > { %v3387_v28 = vsel %vm573_vm6, %v3386_v1, %v6017_v38  ;;  %v3851_v42 = vsel %vm573_vm6, %v3850_v21, %v6018_v55 }
 0x56e   : > { %v9290_v5 = vpop.permute.xlu1 %6040  ;;  %v3388_v43 = vsel %vm575_vm7, %v3387_v28, %v5967_v49  ;;  %v3852_v37 = vsel %vm575_vm7, %v3851_v42, %v5968_v40  ;;  %v6021_v50 = vpop.permute.xlu0 %6020  ;;  %v6032_v49 = vunpack.i.l.bf16 %v9256_v47 }
 0x56f   : > { %v6023_v2 = vunpack.i.h.bf16 %v6021_v50  ;;  %v6022_v63 = vunpack.i.l.bf16 %v6021_v50  ;;  %v3389_v60 = vsel %vm577_vm8, %v3388_v43, %v6027_v54  ;;  %v3853_v56 = vsel %vm577_vm8, %v3852_v37, %v6028_v19 }
 0x570   : > { %v3390_v4 = vsel %vm579_vm9, %v3389_v60, %v5987_v35  ;;  %v3854_v8 = vsel %vm579_vm9, %v3853_v56, %v5988_v44  ;;  %v5274_v44 = vsel %vm2770_vm12, %v3848_v11, %v5256_v48  ;;  %v6043_v50 = vunpack.i.h.bf16 %v9290_v5 }
 0x571   : > { %v3623_v40 = vsel %vm577_vm8, %v3622_v41, %v6022_v63  ;;  %v4091_v57 = vsel %vm577_vm8, %v4090_v33, %v6023_v2  ;;  %v3391_v16 = vsel %vm581_vm10, %v3390_v4, %v6037_v14  ;;  %v3855_v35 = vsel %vm581_vm10, %v3854_v8, %v6038_v13 }
 0x572   : > { %v9304_v53 = vpop.permute.xlu1 %6045  ;;  %v3624_v29 = vsel %vm579_vm9, %v3623_v40, %v5977_v25  ;;  %v4092_v45 = vsel %vm579_vm9, %v4091_v57, %v5978_v36  ;;  %v5272_v25 = vsel %vm2770_vm12, %v3384_v7, %v5250_v58  ;;  %v6042_v2 = vunpack.i.l.bf16 %v9290_v5 }
 0x573   : > { %v3625_v0 = vsel %vm581_vm10, %v3624_v29, %v6032_v49  ;;  %v4093_v47 = vsel %vm581_vm10, %v4092_v45, %v6033_v52  ;;  %v5539_v18 = vpack.c.bf16 %v5274_v44, %v5272_v25  ;;  %v6048_v63 = vunpack.i.h.bf16 %v9304_v53 }
 0x574   : > { %v5251_v51 = vrot.slane %v3625_v0, 4  ;;  %v5257_v59 = vrot.slane %v4093_v47, 4  ;;  %v6047_v60 = vunpack.i.l.bf16 %v9304_v53 }
 0x576   : > { %v9312_v23 = vpop.permute.xlu1 %6050  ;;  %v5273_v36 = vsel %vm2770_vm12, %v3391_v16, %v5251_v51  ;;  %v5275_v39 = vsel %vm2770_vm12, %v3855_v35, %v5257_v59 }
 0x577   : > { %v5537_v3 = vpack.c.bf16 %v5275_v39, %v5273_v36  ;;  %v6053_v56 = vunpack.i.h.bf16 %v9312_v23  ;;  %v6052_v41 = vunpack.i.l.bf16 %v9312_v23 }
 0x579   : > { %5538 = vmatprep.subr.bf16.mxu1 %v5537_v3 }
 0x57a   : > { %v9320_v22 = vpop.permute.xlu1 %6055  ;;  %v9322_v12 = vpop.permute.xlu0 %6060  ;;  %5540 = vmatpush1.bf16.msra.mxu1 %v5539_v18 }
 0x57b   : > { %v6058_v33 = vunpack.i.h.bf16 %v9320_v22  ;;  %v6057_v11 = vunpack.i.l.bf16 %v9320_v22  ;;  %v6063_v52 = vunpack.i.h.bf16 %v9322_v12  ;;  %v6062_v49 = vunpack.i.l.bf16 %v9322_v12 }
 0x57e   : > { %v9324_v10 = vpop.permute.xlu1 %6080  ;;  %v9326_v61 = vpop.permute.xlu0 %6065 }
 0x57f   : > { %v6083_v5 = vunpack.i.h.bf16 %v9324_v10  ;;  %v6082_v53 = vunpack.i.l.bf16 %v9324_v10  ;;  %v6068_v4 = vunpack.i.h.bf16 %v9326_v61  ;;  %v6067_v29 = vunpack.i.l.bf16 %v9326_v61 }
 0x582   : > { %v9328_v20 = vpop.permute.xlu1 %6085  ;;  %v9330_v31 = vpop.permute.xlu0 %6070 }
 0x583   : > { %v6088_v45 = vunpack.i.h.bf16 %v9328_v20  ;;  %v6087_v13 = vunpack.i.l.bf16 %v9328_v20  ;;  %v6073_v47 = vunpack.i.h.bf16 %v9330_v31  ;;  %v6072_v51 = vunpack.i.l.bf16 %v9330_v31 }
 0x586   : > { %v9332_v55 = vpop.permute.xlu1 %5211  ;;  %v9334_v38 = vpop.permute.xlu0 %6075 }
 0x587   : > { %v6078_v59 = vunpack.i.h.bf16 %v9334_v38  ;;  %v6077_v16 = vunpack.i.l.bf16 %v9334_v38 }
 0x58a   : > { %v9336_v19 = vpop.permute.xlu1 %5219  ;;  %v9338_v54 = vpop.permute.xlu0 %6090 }
 0x58e   : > { %v9340_v1 = vpop.permute.xlu1 %5227  ;;  %v9342_v21 = vpop.permute.xlu0 %6095 }
 0x58f   : > { %v9686_v38 = vunpack.i.l.bf16 %v9342_v21 }
 0x592   : > { %v6101_v62 = vpop.permute.xlu1 %6100  ;;  %v9344_v46 = vpop.permute.xlu0 %5183 }
 0x593   : > { %v6102_v7 = vunpack.i.l.bf16 %v6101_v62  ;;  %v6103_v40 = vunpack.i.h.bf16 %v6101_v62 }
 0x595   : > { %v4547_v23 = vsel %vm569_vm4, %v8993_v27, %v6102_v7  ;;  %v5011_v35 = vsel %vm569_vm4, %v8979_v24, %v6103_v40 }
 0x596   : > { %v9346_v28 = vpop.permute.xlu1 %6130  ;;  %v9348_v42 = vpop.permute.xlu0 %5191  ;;  %v4548_v24 = vsel %vm571_vm5, %v4547_v23, %v6042_v2 }
 0x597   : > { %v6133_v7 = vunpack.i.h.bf16 %v9346_v28  ;;  %v6132_v40 = vunpack.i.l.bf16 %v9346_v28 }
 0x59a   : > { %v9350_v58 = vpop.permute.xlu1 %6135  ;;  %v9352_v48 = vpop.permute.xlu0 %5199 }
 0x59b   : > { %v6138_v18 = vunpack.i.h.bf16 %v9350_v58  ;;  %v6137_v12 = vunpack.i.l.bf16 %v9350_v58 }
 0x59e   : > { %v9354_v43 = vpop.permute.xlu1 %6140  ;;  %v6106_v37 = vpop.permute.xlu0 %6105 }
 0x59f   : > { %v6108_v25 = vunpack.i.h.bf16 %v6106_v37  ;;  %v6107_v44 = vunpack.i.l.bf16 %v6106_v37  ;;  %v6143_v2 = vunpack.i.h.bf16 %v9354_v43 }
 0x5a2   : > { %v9366_v57 = vpop.permute.xlu1 %6145  ;;  %v6111_v8 = vpop.permute.xlu0 %6110 }
 0x5a3   : > { %v6113_v14 = vunpack.i.h.bf16 %v6111_v8  ;;  %v6112_v0 = vunpack.i.l.bf16 %v6111_v8  ;;  %v5012_v8 = vsel %vm571_vm5, %v5011_v35, %v6043_v50  ;;  %v6148_v35 = vunpack.i.h.bf16 %v9366_v57 }
 0x5a5   : > { %v4781_v27 = vsel %vm569_vm4, %v9073_v34, %v6113_v14  ;;  %v4317_v62 = vsel %vm569_vm4, %v9055_v17, %v6112_v0  ;;  %v5004_v34 = vsel %vm569_vm4, %v9037_v32, %v6108_v25  ;;  %v4540_v17 = vsel %vm569_vm4, %v9048_v15, %v6107_v44 }
 0x5a6   : > { %v9382_v36 = vpop.permute.xlu1 %6160  ;;  %v6116_v31 = vpop.permute.xlu0 %6115  ;;  %v6142_v0 = vunpack.i.l.bf16 %v9354_v43  ;;  %v4782_v28 = vsel %vm571_vm5, %v4781_v27, %v6053_v56  ;;  %v4318_v50 = vsel %vm571_vm5, %v4317_v62, %v6052_v41  ;;  %v6147_v25 = vunpack.i.l.bf16 %v9366_v57 }
 0x5a7   : > { %v6117_v37 = vunpack.i.l.bf16 %v6116_v31  ;;  %v6118_v39 = vunpack.i.h.bf16 %v6116_v31  ;;  %v4541_v44 = vsel %vm571_vm5, %v4540_v17, %v6047_v60  ;;  %v5005_v3 = vsel %vm571_vm5, %v5004_v34, %v6048_v63 }
 0x5a8   : > { %v4319_v27 = vsel %vm573_vm6, %v4318_v50, %v6132_v40  ;;  %v4783_v62 = vsel %vm573_vm6, %v4782_v28, %v6133_v7  ;;  %v6163_v57 = vunpack.i.h.bf16 %v9382_v36  ;;  %v6162_v40 = vunpack.i.l.bf16 %v9382_v36 }
 0x5a9   : > { %v4549_v58 = vsel %vm573_vm6, %v4548_v24, %v6117_v37  ;;  %v5013_v15 = vsel %vm573_vm6, %v5012_v8, %v6118_v39  ;;  %v4320_v34 = vsel %vm575_vm7, %v4319_v27, %v6072_v51 }
 0x5aa   : > { %v9402_v14 = vpop.permute.xlu1 %6165  ;;  %v6121_v23 = vpop.permute.xlu0 %6120  ;;  %v4550_v39 = vsel %vm575_vm7, %v4549_v58, %v6057_v11  ;;  %v4784_v11 = vsel %vm575_vm7, %v4783_v62, %v6073_v47 }
 0x5ab   : > { %v6123_v31 = vunpack.i.h.bf16 %v6121_v23  ;;  %v6122_v32 = vunpack.i.l.bf16 %v6121_v23  ;;  %v6168_v7 = vunpack.i.h.bf16 %v9402_v14  ;;  %v6167_v23 = vunpack.i.l.bf16 %v9402_v14 }
 0x5ad   : > { %v4774_v43 = vsel %vm569_vm4, %v9103_v6, %v6123_v31  ;;  %v4310_v56 = vsel %vm569_vm4, %v9094_v30, %v6122_v32  ;;  %v5014_v6 = vsel %vm575_vm7, %v5013_v15, %v6058_v33  ;;  %v4551_v33 = vsel %vm577_vm8, %v4550_v39, %v6137_v12 }
 0x5ae   : > { %v9418_v41 = vpop.permute.xlu1 %6170  ;;  %v4311_v60 = vsel %vm571_vm5, %v4310_v56, %v6062_v49  ;;  %v4775_v63 = vsel %vm571_vm5, %v4774_v43, %v6063_v52  ;;  %v6126_v24 = vpop.permute.xlu0 %6125  ;;  %v5015_v47 = vsel %vm577_vm8, %v5014_v6, %v6138_v18  ;;  %v9685_v56 = vunpack.i.h.bf16 %v9338_v54 }
 0x5af   : > { %v4312_v30 = vsel %vm573_vm6, %v4311_v60, %v6142_v0  ;;  %v6128_v37 = vunpack.i.h.bf16 %v6126_v24  ;;  %v6127_v8 = vunpack.i.l.bf16 %v6126_v24  ;;  %v4776_v49 = vsel %vm573_vm6, %v4775_v63, %v6143_v2 }
 0x5b0   : > { %v4313_v2 = vsel %vm575_vm7, %v4312_v30, %v6082_v53  ;;  %v4777_v53 = vsel %vm575_vm7, %v4776_v49, %v6083_v5  ;;  %v6172_v31 = vunpack.i.l.bf16 %v9418_v41  ;;  %v9687_v24 = vunpack.i.h.bf16 %v9342_v21 }
 0x5b1   : > { %v4542_v52 = vsel %vm573_vm6, %v4541_v44, %v6127_v8  ;;  %v5006_v22 = vsel %vm573_vm6, %v5005_v3, %v6128_v37  ;;  %v4314_v58 = vsel %vm577_vm8, %v4313_v2, %v6162_v40  ;;  %v4778_v15 = vsel %vm577_vm8, %v4777_v53, %v6163_v57  ;;  %v2907_v53 = vld [vmem:[%s9556_s4] sm:$0xf] }
 0x5b2   : > { %v5208_v17 = vpop.permute.xlu1 %5207  ;;  %v4543_v0 = vsel %vm575_vm7, %v4542_v52, %v6067_v29  ;;  %v5007_v36 = vsel %vm575_vm7, %v5006_v22, %v6068_v4  ;;  %v6151_v51 = vpop.permute.xlu0 %6150  ;;  %v4552_v4 = vsel %vm579_vm9, %v4551_v33, %v6077_v16  ;;  %v9684_v44 = vunpack.i.l.bf16 %v9338_v54 }
 0x5b3   : > { %v4544_v3 = vsel %vm577_vm8, %v4543_v0, %v6147_v25  ;;  %v5008_v28 = vsel %vm577_vm8, %v5007_v36, %v6148_v35  ;;  %v6153_v12 = vunpack.i.h.bf16 %v6151_v51  ;;  %v6152_v50 = vunpack.i.l.bf16 %v6151_v51 }
 0x5b4   : > { %v4545_v61 = vsel %vm579_vm9, %v4544_v3, %v6087_v13  ;;  %v5241_v29 = vsel %vm569_vm4, %v9130_v26, %v5208_v17  ;;  %v6173_v13 = vunpack.i.h.bf16 %v9418_v41  ;;  %v5009_v10 = vsel %vm579_vm9, %v5008_v28, %v6088_v45 }
 0x5b5   : > { %v4321_v18 = vsel %vm577_vm8, %v4320_v34, %v6152_v50  ;;  %v4785_v35 = vsel %vm577_vm8, %v4784_v11, %v6153_v12  ;;  %v5016_v26 = vsel %vm579_vm9, %v5015_v47, %v6078_v59  ;;  %v4546_v25 = vsel %vm581_vm10, %v4545_v61, %v6167_v23 }
 0x5b6   : > { %v5216_v14 = vpop.permute.xlu1 %5215  ;;  %v6156_v16 = vpop.permute.xlu0 %6155  ;;  %v4322_v43 = vsel %vm579_vm9, %v4321_v18, %v9684_v44  ;;  %v4786_v20 = vsel %vm579_vm9, %v4785_v35, %v9685_v56  ;;  %v5242_v45 = vsel %vm571_vm5, %v5241_v29, %v9332_v55  ;;  %v4315_v59 = vsel %vm579_vm9, %v4314_v58, %v9686_v38 }
 0x5b7   : > { %v6158_v5 = vunpack.i.h.bf16 %v6156_v16  ;;  %v6157_v32 = vunpack.i.l.bf16 %v6156_v16  ;;  %v5243_v41 = vsel %vm573_vm6, %v5242_v45, %v5216_v14  ;;  %v5010_v39 = vsel %vm581_vm10, %v5009_v10, %v6168_v7  ;;  %v9689_v16 = vld [vmem:[#allocation17_spill] sm:$0xff] }
 0x5b8   : > { %v4779_v55 = vsel %vm579_vm9, %v4778_v15, %v9687_v24  ;;  %v5262_v6 = vrot.slane %v4546_v25, 4  ;;  %v4323_v30 = vsel %vm581_vm10, %v4322_v43, %v6172_v31  ;;  %v4787_v37 = vsel %vm581_vm10, %v4786_v20, %v6173_v13 }
 0x5b9   : > { %v4553_v27 = vsel %vm581_vm10, %v4552_v4, %v6157_v32  ;;  %v5017_v62 = vsel %vm581_vm10, %v5016_v26, %v6158_v5  ;;  %v5244_v34 = vsel %vm575_vm7, %v5243_v41, %v9336_v19  ;;  %v5268_v11 = vrot.slane %v5010_v39, 4 }
 0x5ba   : > { %v5224_v57 = vpop.permute.xlu1 %5223  ;;  %v5263_v60 = vrot.slane %v4553_v27, 4  ;;  %v5269_v54 = vrot.slane %v5017_v62, 4  ;;  %v6176_v63 = vpop.permute.xlu0 %6175 }
 0x5bb   : > { %v6178_v8 = vunpack.i.h.bf16 %v6176_v63  ;;  %v6177_v40 = vunpack.i.l.bf16 %v6176_v63  ;;  %v5245_v52 = vsel %vm577_vm8, %v5244_v34, %v5224_v57 }
 0x5bc   : > { %v5277_v7 = vsel %vm2770_vm12, %v4323_v30, %v5263_v60  ;;  %v5279_v49 = vsel %vm2770_vm12, %v4787_v37, %v5269_v54  ;;  %v5246_v2 = vsel %vm579_vm9, %v5245_v52, %v9340_v1 }
 0x5bd   : > { %v4316_v21 = vsel %vm581_vm10, %v4315_v59, %v6177_v40  ;;  %v4780_v22 = vsel %vm581_vm10, %v4779_v55, %v6178_v8  ;;  %v5541_v17 = vpack.c.bf16 %v5279_v49, %v5277_v7 }
 0x5be   : > { %v5276_v33 = vsel %vm2770_vm12, %v4316_v21, %v5262_v6  ;;  %v5278_v0 = vsel %vm2770_vm12, %v4780_v22, %v5268_v11  ;;  %v5232_v36 = vpop.permute.xlu1 %5231  ;;  %v5180_v51 = vpop.permute.xlu0 %5179 }
 0x5bf   : > { %v5234_v19 = vsel %vm569_vm4, %v9171_v9, %v5180_v51  ;;  %5542 = vmatprep.subr.bf16.mxu1 %v5541_v17  ;;  %v5543_v47 = vpack.c.bf16 %v5278_v0, %v5276_v33  ;;  %v5247_v3 = vsel %vm581_vm10, %v5246_v2, %v5232_v36 }
 0x5c0   : > { %v5235_v28 = vsel %vm571_vm5, %v5234_v19, %v9344_v46 }
 0x5c1   : > { %5544 = vmatpush1.bf16.msra.mxu1 %v5543_v47 }
 0x5c2   : > { %v5188_v12 = vpop.permute.xlu0 %5187  ;;  %5522 = vmatprep.subr.msk.mxu1 %vm2770_vm12, %v5247_v3 }
 0x5c3   : > { %v5236_v50 = vsel %vm573_vm6, %v5235_v28, %v5188_v12 }
 0x5c4   : > { %v5237_v23 = vsel %vm575_vm7, %v5236_v50, %v9348_v42 }
 0x5c6   : > { %v5196_v9 = vpop.permute.xlu0 %5195 }
 0x5c7   : > { %v5238_v61 = vsel %vm577_vm8, %v5237_v23, %v5196_v9 }
 0x5c8   : > { %v5239_v1 = vsel %vm579_vm9, %v5238_v61, %v9352_v48  ;;  %v9688_v48 = vld [vmem:[#allocation11_spill] sm:$0xff] }
 0x5ca   : > { %v5204_v4 = vpop.permute.xlu0 %5203 }
 0x5cb   : > { %v5240_v46 = vsel %vm581_vm10, %v5239_v1, %v5204_v4 }
 0x5cc   : > { %5523 = vmatpush1.msk.msra.mxu1 %vm2770_vm12, %v5240_v46 }
 0x5cd   : > { %5524 = vmatmul.mubr.msk.f32.vlgmr.msra.gmra.mrb[0].mxu1 %vm2779_vm13, %v2907_v53 }
 0x5cf   : > { %v5364_v29 = vpop.permute.xlu1 %5363 }
 0x5db   : > { %v5372_v42 = vpop.permute.xlu0 %5371 }
 0x6a0   : > { %v5355_v18 = vpop.f32.mrb[0].mxu1  ;;  %5380 = sbr.rel (%p5516_p12) target bundleno = 1707 (0x6ab), region = 98 }
 0x6a1   : > { %v5366_v35 = vmul.f32 %v5364_v29, %v5355_v18  ;;  %v5357_v14 = vpop.f32.mrb[1].mxu1 }
 0x6a2   : > { %v5367_v58 = vmul.f32 %v5364_v29, %v5357_v14 }
 0x6a3   : > { %v5374_v13 = vadd.f32 %v5372_v42, %v5366_v35 }
 0x6a4   : > { %v5375_v31 = vadd.f32 %v5372_v42, %v5367_v58 }
 0x6a5   : > { %v5376_v10 = vadd.f32 %v5374_v13, %v9688_v48 }
 0x6a6   : > { %v5377_v26 = vadd.f32 %v5375_v31, %v9689_v16 }
 0x6a8   : > { %v5383_v5 = vcombine.low %v5376_v10, %v5377_v26 }
 0x6aa   : > { %5385 = vst [vmem:[#allocation4] sm:$0xff] %v5383_v5 }
 0x6ab PF: > { %5388 = sbr.rel (%p5517_p13) target bundleno = 1721 (0x6b9), region = 102  ;;  %v5390_v25 = vld [vmem:[#allocation5] sm:$0xff] (!%p5517_p13)  ;;  %v5395_v44 = vcombine.low (!%p5517_p13), %v5376_v10, %v5377_v26 }
 0x6b1   : > { %v5389_v32 = vld [vmem:[#allocation4] sm:$0xff] (!%p5517_p13) }
 0x6b2   : > { %v5391_v15 = vsub.f32 %v5389_v32, %v5390_v25 }
 0x6b4   : > { %v5392_v43 = vmul.f32 0.25, %v5391_v15 }
 0x6b6   : > { %v5397_v56 = vadd.f32 %v5395_v44, %v5392_v43 }
 0x6b8   : > { %5398 = vst [vmem:[#allocation4] sm:$0xff] %v5397_v56 }
 0x6b9 PF:  {}
 0x6bf   : > { %v5399_v20 = vld [vmem:[#allocation4] sm:$0xff] }
 0x6c0   : > { %v5400_v45 = vmul.f32 100.0, %v5399_v20 }
 0x6c2   : > { %v5401_v38 = vmax.f32 %v5400_v45, 0.0 }
 0x6c4   : > { %v5402_v59 = vmin.f32 %v5401_v38, 511.0 }
 0x6c6   : > { %v5546_v41 = vround.rtne.f32 %v5402_v59 }
 0x6c8   : > { %v5404_v27 = vmul.f32 0.01, %v5546_v41 }
 0x6ca   : > { %5405 = vst [vmem:[#allocation5] sm:$0xff] %v5404_v27  ;;  %5406 = vst [vmem:[%s7293_s11] sm:$0xff] %v5404_v27 }
 0x6cb PF: > { %s17_s30 = sadd.s32 1, %s6235_s30   ;;  %s9690_s24 = smov %s6215_s25 }
 0x6cc   : > { %p14_p0 = scmp.ge.s32.totalorder %s17_s30, 10   ;;  %s9691_s25 = smov %s6342_s14 }
 0x6cd   : > { %s9692_s26 = smov %s6227_s28  ;;  %s9693_s27 = smov %s6231_s29 }
 0x6ce   : > { %s9694_s28 = smov %s9697_s8  ;;  %s9695_s29 = smov %s9701_s9 }
 0x6cf   :  { %16 = sbr.rel (!%p14_p0) target bundleno = 4 (0x4), region = 137 }

</bundles_post_ra>
